<compile_context>
chip_gen: v7x
topology: tpu7x:2x2x1
jax: 0.10.0
libtpu: 0.0.40
codegen_flags: <defaults>
</compile_context>

<pallas_src>
import functools

import jax
import jax.numpy as jnp
from jax.experimental import pallas as pl
from jax.experimental.pallas import tpu as pltpu


LANES = 128
CONV1_ROWS = 960      # 30 oh rows * 32 ow positions; row = oh*32 + ow
PATCH = 75            # 5*5*3 conv1 patch size packed into lanes


# ----------------------------------------------------------------------------
# Pallas kernels
# ----------------------------------------------------------------------------
def conv_stack_kernel(x_ref, w1_ref, w2_ref, b_ref, o_ref, pool_scr):
    """Fused conv1+ReLU+pool -> conv2+ReLU+pool for ONE image, fully in VMEM.

    x_ref    : (1, 960, 128) bf16  im2col patches: row = oh*32+ow, lane = (kh*5+kw)*3+cin
    w1_ref   : (128, 128)   bf16   conv1 weights: row = (kh*5+kw)*3+cin, col = cout (padded)
    w2_ref   : (3200, 128)  bf16   conv2 taps over conv1-output lanes:
                                   row = (kh*5+kw)*128 + cin, col = cout (padded)
    b_ref    : (8, 128)     f32    row0 = conv1 bias, row1 = conv2 bias (lane padded)
    o_ref    : (1, 40, 128) bf16   pooled conv2 features, row = h*8+w (h,w<5 valid), lane = c
    pool_scr : (896, 128)   f32    VMEM scratch for strided max-pool downsampling
    """
    # ---- conv1: ONE matmul (patch dim lives in lanes), f32 accumulation ----
    c1 = jnp.dot(x_ref[0], w1_ref[...], preferred_element_type=jnp.float32)   # (960,128)
    c1 = jnp.maximum(c1 + b_ref[0:1, :], 0.0)                                 # bias + ReLU
    # ---- fused 2x2/2 max-pool: max of 4 shifted views, then stride-2 row gather ----
    m1 = jnp.maximum(jnp.maximum(c1[0:896, :], c1[1:897, :]),
                     jnp.maximum(c1[32:928, :], c1[33:929, :]))                # (896,128)
    pool_scr[...] = m1
    p1 = pool_scr[pl.ds(0, 448, stride=2), :]                                  # even ow -> (448,128)
    p1 = p1.reshape(14, 2, 16, 128)[:, 0]                                      # even oh -> (14,16,128)
    p1 = jnp.concatenate([p1, jnp.zeros((2, 16, 128), jnp.float32)], axis=0)   # pad H 14->16
    y1 = p1.reshape(256, 128).astype(jnp.bfloat16)                             # row = h*16 + w

    # ---- conv2: 25 shifted matmuls of the resident activation slab, row stride 16 ----
    acc = jnp.zeros((184, 128), jnp.float32)
    for kh in range(5):
        for kw in range(5):
            t = kh * 5 + kw
            sh = kh * 16 + kw
            acc = acc + jnp.dot(
                y1[sh:sh + 184, :],
                w2_ref[t * 128:(t + 1) * 128, :],
                preferred_element_type=jnp.float32)
    c2 = jnp.maximum(acc + b_ref[1:2, :], 0.0)
    m2 = jnp.maximum(jnp.maximum(c2[0:160, :], c2[1:161, :]),
                     jnp.maximum(c2[16:176, :], c2[17:177, :]))                # (160,128)
    pool_scr[0:160, :] = m2
    p2 = pool_scr[pl.ds(0, 80, stride=2), :]                                   # (80,128)
    p2 = p2.reshape(5, 2, 8, 128)[:, 0]                                        # (5,8,128)
    o_ref[0] = p2.reshape(40, 128).astype(jnp.bfloat16)


def fc_stack_kernel(f_ref, w1_ref, w2_ref, w3_ref, b_ref, o_ref):
    """fc1 -> ReLU -> fc2 -> ReLU -> fc3, all weights resident, f32 accumulation."""
    a = jnp.dot(f_ref[...], w1_ref[...], preferred_element_type=jnp.float32)
    a = jnp.maximum(a + b_ref[2:3, :], 0.0)
    a = jnp.dot(a.astype(jnp.bfloat16), w2_ref[...], preferred_element_type=jnp.float32)
    a = jnp.maximum(a + b_ref[3:4, :], 0.0)
    a = jnp.dot(a.astype(jnp.bfloat16), w3_ref[...], preferred_element_type=jnp.float32)
    o_ref[...] = a + b_ref[4:5, :]


# ----------------------------------------------------------------------------
# pallas_call wrappers
# ----------------------------------------------------------------------------
def _conv_stack(x_patches, w1, w2, bias):
    n = x_patches.shape[0]
    return pl.pallas_call(
        conv_stack_kernel,
        out_shape=jax.ShapeDtypeStruct((n, 40, LANES), jnp.bfloat16),
        grid=(n,),
        in_specs=[
            pl.BlockSpec((1, CONV1_ROWS, LANES), lambda i: (i, 0, 0)),
            pl.BlockSpec((LANES, LANES), lambda i: (0, 0)),
            pl.BlockSpec((25 * LANES, LANES), lambda i: (0, 0)),
            pl.BlockSpec((8, LANES), lambda i: (0, 0)),
        ],
        out_specs=pl.BlockSpec((1, 40, LANES), lambda i: (i, 0, 0)),
        scratch_shapes=[pltpu.VMEM((896, LANES), jnp.float32)],
        compiler_params=pltpu.CompilerParams(dimension_semantics=("parallel",)),
    )(x_patches, w1, w2, bias)


def _fc_stack(feats, wf1, wf2, wf3, bias):
    n = feats.shape[0]
    return pl.pallas_call(
        fc_stack_kernel,
        out_shape=jax.ShapeDtypeStruct((n, LANES), jnp.float32),
        grid=(1,),
        in_specs=[
            pl.BlockSpec((n, 40 * LANES), lambda i: (0, 0)),
            pl.BlockSpec((40 * LANES, LANES), lambda i: (0, 0)),
            pl.BlockSpec((LANES, LANES), lambda i: (0, 0)),
            pl.BlockSpec((LANES, LANES), lambda i: (0, 0)),
            pl.BlockSpec((8, LANES), lambda i: (0, 0)),
        ],
        out_specs=pl.BlockSpec((n, LANES), lambda i: (0, 0)),
    )(feats, wf1, wf2, wf3, bias)


# ----------------------------------------------------------------------------
# Parameters: torch-shaped init + one-time padding/permutation to TPU layout
# ----------------------------------------------------------------------------
def init_params(key, num_out=10):
    ks = jax.random.split(key, 10)

    def w(k, shape, scale):
        return jax.random.normal(k, shape, jnp.float32) * scale

    return {
        "conv1_w": w(ks[0], (6, 3, 5, 5), 0.10),     # torch Conv2d: (Cout, Cin, KH, KW)
        "conv1_b": w(ks[1], (6,), 0.10),
        "conv2_w": w(ks[2], (16, 6, 5, 5), 0.10),
        "conv2_b": w(ks[3], (16,), 0.10),
        "fc1_w":   w(ks[4], (120, 400), 0.05),       # torch Linear: (out, in)
        "fc1_b":   w(ks[5], (120,), 0.05),
        "fc2_w":   w(ks[6], (84, 120), 0.05),
        "fc2_b":   w(ks[7], (84,), 0.05),
        "fc3_w":   w(ks[8], (num_out, 84), 0.05),
        "fc3_b":   w(ks[9], (num_out,), 0.05),
    }


def prepare_params(params, num_out):
    """One-time re-layout: pad every channel/feature dim to 128 lanes, bf16 weights."""
    # conv1: (6,3,5,5) -> (kh,kw,cin,cout) -> (75,6) -> zero-pad to (128,128)
    w1 = jnp.transpose(params["conv1_w"], (2, 3, 1, 0)).reshape(PATCH, 6)
    w1 = jnp.pad(w1, ((0, LANES - PATCH), (0, LANES - 6))).astype(jnp.bfloat16)
    # conv2: (16,6,5,5) -> (kh,kw,cin,cout) -> (5,5,128,128) -> (3200,128)
    w2 = jnp.transpose(params["conv2_w"], (2, 3, 1, 0))
    w2 = jnp.pad(w2, ((0, 0), (0, 0), (0, LANES - 6), (0, LANES - 16)))
    w2 = w2.reshape(25 * LANES, LANES).astype(jnp.bfloat16)
    # fc1: torch flatten order is (c, h, w); kernel feature layout is row=(h*8+w), lane=c.
    wf1 = params["fc1_w"].reshape(120, 16, 5, 5)          # (out, c, h, w)
    wf1 = jnp.transpose(wf1, (2, 3, 1, 0))                # (h, w, c, out)
    wf1 = jnp.pad(wf1, ((0, 0), (0, 3), (0, LANES - 16), (0, LANES - 120)))   # (5,8,128,128)
    wf1 = wf1.reshape(40 * LANES, LANES).astype(jnp.bfloat16)
    wf2 = jnp.pad(params["fc2_w"].T, ((0, LANES - 120), (0, LANES - 84))).astype(jnp.bfloat16)
    wf3 = jnp.pad(params["fc3_w"].T, ((0, LANES - 84), (0, LANES - num_out))).astype(jnp.bfloat16)
    # all biases packed into one (8,128) f32 block
    bias = jnp.zeros((8, LANES), jnp.float32)
    bias = bias.at[0, :6].set(params["conv1_b"])
    bias = bias.at[1, :16].set(params["conv2_b"])
    bias = bias.at[2, :120].set(params["fc1_b"])
    bias = bias.at[3, :84].set(params["fc2_b"])
    bias = bias.at[4, :num_out].set(params["fc3_b"])
    return {"w1": w1, "w2": w2, "wf1": wf1, "wf2": wf2, "wf3": wf3, "bias": bias}


def _prep_input(x_nchw):
    """NCHW -> lane-packed conv1 patches: (n, 960, 128) bf16.

    row = oh*32 + ow (oh < 30, ow < 32; only oh,ow < 28 valid, rest discarded by pooling),
    lane = (kh*5 + kw)*3 + cin (75 real lanes, rest zero).  Same HBM bytes as the plain
    lane-padded image (both are 128 lanes), so this im2col is free bandwidth-wise.
    """
    n = x_nchw.shape[0]
    x = jnp.transpose(x_nchw, (0, 2, 3, 1)).astype(jnp.float32)          # (n,32,32,3) NHWC
    x = jnp.pad(x, ((0, 0), (0, 2), (0, 4), (0, 0)))                     # (n,34,36,3)
    patches = [x[:, kh:kh + 30, kw:kw + 32, :]                           # (n,30,32,3) each
               for kh in range(5) for kw in range(5)]
    xp = jnp.concatenate(patches, axis=-1)                               # (n,30,32,75)
    xp = jnp.pad(xp, ((0, 0), (0, 0), (0, 0), (0, LANES - PATCH)))       # (n,30,32,128)
    return xp.astype(jnp.bfloat16).reshape(n, CONV1_ROWS, LANES)


# ----------------------------------------------------------------------------
# Forward pass (mirrors myLeNet.forward)
# ----------------------------------------------------------------------------
@functools.partial(jax.jit, static_argnames=("num_out",))
def mylenet_forward(prep, x_nchw, num_out):
    n = x_nchw.shape[0]
    x = _prep_input(x_nchw)                                              # (n,960,128) bf16
    feats = _conv_stack(x, prep["w1"], prep["w2"], prep["bias"])         # (n,40,128)
    feats = feats.reshape(n, 40 * LANES)                                 # free reshape
    logits = _fc_stack(feats, prep["wf1"], prep["wf2"], prep["wf3"], prep["bias"])
    return logits[:, :num_out]


# Pure-JAX reference (f32) for a sanity check of the fused kernels.
def reference_forward(params, x_nchw):
    x = jnp.transpose(x_nchw, (0, 2, 3, 1)).astype(jnp.float32)

    def conv(v, w, b):
        w_hwio = jnp.transpose(w, (2, 3, 1, 0))
        y = jax.lax.conv_general_dilated(
            v, w_hwio, window_strides=(1, 1), padding="VALID",
            dimension_numbers=("NHWC", "HWIO", "NHWC"))
        return jax.nn.relu(y + b)

    def pool(v):
        return jax.lax.reduce_window(v, -jnp.inf, jax.lax.max,
                                     (1, 2, 2, 1), (1, 2, 2, 1), "VALID")

    y = pool(conv(x, params["conv1_w"], params["conv1_b"]))
    y = pool(conv(y, params["conv2_w"], params["conv2_b"]))
    y = jnp.transpose(y, (0, 3, 1, 2)).reshape(y.shape[0], -1)   # torch NCHW flatten
    y = jax.nn.relu(y @ params["fc1_w"].T + params["fc1_b"])
    y = jax.nn.relu(y @ params["fc2_w"].T + params["fc2_b"])
    return y @ params["fc3_w"].T + params["fc3_b"]


if __name__ == "__main__":
    num_out = 10
    key = jax.random.PRNGKey(0)
    k_params, k_x = jax.random.split(key)

    params = init_params(k_params, num_out=num_out)
    # LeNet's fc1(400) implies 32x32 spatial input with 3 channels (NCHW, like PyTorch).
    x = jax.random.normal(k_x, (2, 3, 32, 32), jnp.float32)

    prep = prepare_params(params, num_out=num_out)
    out = mylenet_forward(prep, x, num_out=num_out)
    out = jax.block_until_ready(out)
    assert out.shape == (2, num_out), out.shape

    ref = reference_forward(params, x)
    max_err = float(jnp.max(jnp.abs(out - ref)))
    assert max_err < 1e-1, f"kernel/reference mismatch: max abs err = {max_err}"
    print("KERNEL_OK")
</pallas_src>

<mosaic_0001>
module attributes {stable_mosaic.version = 11 : i64} {
  func.func @conv_stack_kernel(%arg0: i32, %arg1: memref<1x960x128xbf16, #tpu.memory_space<vmem>>, %arg2: memref<128x128xbf16, #tpu.memory_space<vmem>>, %arg3: memref<3200x128xbf16, #tpu.memory_space<vmem>>, %arg4: memref<8x128xf32, #tpu.memory_space<vmem>>, %arg5: memref<1x40x128xbf16, #tpu.memory_space<vmem>>, %arg6: memref<896x128xf32, #tpu.memory_space<vmem>>) attributes {dimension_semantics = [#tpu.dimension_semantics<parallel>], iteration_bounds = array<i64: 2>, scalar_prefetch = 0 : i64, scratch_operands = 1 : i64, tpu.core_type = #tpu.core_type<tc>, window_params = [{transform_indices = @transform_0, window_bounds = array<i64: 1, 960, 128>}, {pipeline_mode = #tpu.pipeline_mode<synchronous>, transform_indices = @transform_1, window_bounds = array<i64: 128, 128>}, {pipeline_mode = #tpu.pipeline_mode<synchronous>, transform_indices = @transform_2, window_bounds = array<i64: 3200, 128>}, {pipeline_mode = #tpu.pipeline_mode<synchronous>, transform_indices = @transform_3, window_bounds = array<i64: 8, 128>}, {transform_indices = @transform_4, window_bounds = array<i64: 1, 40, 128>}]} {
    %c0 = arith.constant 0 : index
    %c0_0 = arith.constant 0 : index
    %c0_1 = arith.constant 0 : index
    %0 = vector.load %arg1[%c0, %c0_0, %c0_1] : memref<1x960x128xbf16, #tpu.memory_space<vmem>>, vector<1x960x128xbf16>
    %1 = vector.shape_cast %0 : vector<1x960x128xbf16> to vector<960x128xbf16>
    %c0_2 = arith.constant 0 : index
    %c0_3 = arith.constant 0 : index
    %2 = vector.load %arg2[%c0_2, %c0_3] : memref<128x128xbf16, #tpu.memory_space<vmem>>, vector<128x128xbf16>
    %cst = arith.constant dense<0.000000e+00> : vector<960x128xf32>
    %3 = tpu.matmul %1, %2, %cst {dimension_numbers = #tpu.dot_dimension_numbers<[1], [0], [0], [1], [0, 0, 1, 1], [], []>} : vector<960x128xbf16>, vector<128x128xbf16>, vector<960x128xf32> -> vector<960x128xf32>
    %c0_4 = arith.constant 0 : index
    %c0_5 = arith.constant 0 : index
    %4 = vector.load %arg4[%c0_4, %c0_5] : memref<8x128xf32, #tpu.memory_space<vmem>>, vector<1x128xf32>
    %5 = vector.broadcast %4 : vector<1x128xf32> to vector<960x128xf32>
    %6 = arith.addf %3, %5 : vector<960x128xf32>
    %cst_6 = arith.constant 0.000000e+00 : f32
    %7 = vector.broadcast %cst_6 : f32 to vector<960x128xf32>
    %8 = arith.maximumf %6, %7 : vector<960x128xf32>
    %9 = vector.extract_strided_slice %8 {offsets = [0, 0], sizes = [896, 128], strides = [1, 1]} : vector<960x128xf32> to vector<896x128xf32>
    %10 = vector.extract_strided_slice %8 {offsets = [1, 0], sizes = [896, 128], strides = [1, 1]} : vector<960x128xf32> to vector<896x128xf32>
    %11 = arith.maximumf %9, %10 : vector<896x128xf32>
    %12 = vector.extract_strided_slice %8 {offsets = [32, 0], sizes = [896, 128], strides = [1, 1]} : vector<960x128xf32> to vector<896x128xf32>
    %13 = vector.extract_strided_slice %8 {offsets = [33, 0], sizes = [896, 128], strides = [1, 1]} : vector<960x128xf32> to vector<896x128xf32>
    %14 = arith.maximumf %12, %13 : vector<896x128xf32>
    %15 = arith.maximumf %11, %14 : vector<896x128xf32>
    %c0_7 = arith.constant 0 : index
    %c0_8 = arith.constant 0 : index
    %16 = vector.load %arg6[%c0_7, %c0_8] : memref<896x128xf32, #tpu.memory_space<vmem>>, vector<896x128xf32>
    tpu.vector_store %arg6[%c0_7, %c0_8], %15 {strides = array<i32>} : memref<896x128xf32, #tpu.memory_space<vmem>>, vector<896x128xf32>,
    %c0_9 = arith.constant 0 : index
    %c0_10 = arith.constant 0 : index
    %17 = tpu.strided_load %arg6[%c0_9, %c0_10] {strides = array<i32: 2, 1>} : memref<896x128xf32, #tpu.memory_space<vmem>>, vector<448x128xf32>
    %18 = vector.shape_cast %17 : vector<448x128xf32> to vector<14x2x16x128xf32>
    %19 = vector.extract_strided_slice %18 {offsets = [0, 0, 0, 0], sizes = [14, 1, 16, 128], strides = [1, 1, 1, 1]} : vector<14x2x16x128xf32> to vector<14x1x16x128xf32>
    %20 = vector.shape_cast %19 : vector<14x1x16x128xf32> to vector<14x16x128xf32>
    %cst_11 = arith.constant 0.000000e+00 : f32
    %21 = vector.broadcast %cst_11 : f32 to vector<2x16x128xf32>
    %22 = tpu.concatenate %20, %21 in 0 : vector<14x16x128xf32>, vector<2x16x128xf32> -> vector<16x16x128xf32>
    %23 = vector.shape_cast %22 : vector<16x16x128xf32> to vector<256x128xf32>
    %24 = arith.truncf %23 : vector<256x128xf32> to vector<256x128xbf16>
    %cst_12 = arith.constant 0.000000e+00 : f32
    %25 = vector.broadcast %cst_12 : f32 to vector<184x128xf32>
    %26 = vector.extract_strided_slice %24 {offsets = [0, 0], sizes = [184, 128], strides = [1, 1]} : vector<256x128xbf16> to vector<184x128xbf16>
    %c0_13 = arith.constant 0 : index
    %c0_14 = arith.constant 0 : index
    %27 = vector.load %arg3[%c0_13, %c0_14] : memref<3200x128xbf16, #tpu.memory_space<vmem>>, vector<128x128xbf16>
    %cst_15 = arith.constant dense<0.000000e+00> : vector<184x128xf32>
    %28 = tpu.matmul %26, %27, %cst_15 {dimension_numbers = #tpu.dot_dimension_numbers<[1], [0], [0], [1], [0, 0, 1, 1], [], []>} : vector<184x128xbf16>, vector<128x128xbf16>, vector<184x128xf32> -> vector<184x128xf32>
    %29 = arith.addf %25, %28 : vector<184x128xf32>
    %30 = vector.extract_strided_slice %24 {offsets = [1, 0], sizes = [184, 128], strides = [1, 1]} : vector<256x128xbf16> to vector<184x128xbf16>
    %c128 = arith.constant 128 : index
    %c0_16 = arith.constant 0 : index
    %31 = vector.load %arg3[%c128, %c0_16] : memref<3200x128xbf16, #tpu.memory_space<vmem>>, vector<128x128xbf16>
    %cst_17 = arith.constant dense<0.000000e+00> : vector<184x128xf32>
    %32 = tpu.matmul %30, %31, %cst_17 {dimension_numbers = #tpu.dot_dimension_numbers<[1], [0], [0], [1], [0, 0, 1, 1], [], []>} : vector<184x128xbf16>, vector<128x128xbf16>, vector<184x128xf32> -> vector<184x128xf32>
    %33 = arith.addf %29, %32 : vector<184x128xf32>
    %34 = vector.extract_strided_slice %24 {offsets = [2, 0], sizes = [184, 128], strides = [1, 1]} : vector<256x128xbf16> to vector<184x128xbf16>
    %c256 = arith.constant 256 : index
    %c0_18 = arith.constant 0 : index
    %35 = vector.load %arg3[%c256, %c0_18] : memref<3200x128xbf16, #tpu.memory_space<vmem>>, vector<128x128xbf16>
    %cst_19 = arith.constant dense<0.000000e+00> : vector<184x128xf32>
    %36 = tpu.matmul %34, %35, %cst_19 {dimension_numbers = #tpu.dot_dimension_numbers<[1], [0], [0], [1], [0, 0, 1, 1], [], []>} : vector<184x128xbf16>, vector<128x128xbf16>, vector<184x128xf32> -> vector<184x128xf32>
    %37 = arith.addf %33, %36 : vector<184x128xf32>
    %38 = vector.extract_strided_slice %24 {offsets = [3, 0], sizes = [184, 128], strides = [1, 1]} : vector<256x128xbf16> to vector<184x128xbf16>
    %c384 = arith.constant 384 : index
    %c0_20 = arith.constant 0 : index
    %39 = vector.load %arg3[%c384, %c0_20] : memref<3200x128xbf16, #tpu.memory_space<vmem>>, vector<128x128xbf16>
    %cst_21 = arith.constant dense<0.000000e+00> : vector<184x128xf32>
    %40 = tpu.matmul %38, %39, %cst_21 {dimension_numbers = #tpu.dot_dimension_numbers<[1], [0], [0], [1], [0, 0, 1, 1], [], []>} : vector<184x128xbf16>, vector<128x128xbf16>, vector<184x128xf32> -> vector<184x128xf32>
    %41 = arith.addf %37, %40 : vector<184x128xf32>
    %42 = vector.extract_strided_slice %24 {offsets = [4, 0], sizes = [184, 128], strides = [1, 1]} : vector<256x128xbf16> to vector<184x128xbf16>
    %c512 = arith.constant 512 : index
    %c0_22 = arith.constant 0 : index
    %43 = vector.load %arg3[%c512, %c0_22] : memref<3200x128xbf16, #tpu.memory_space<vmem>>, vector<128x128xbf16>
    %cst_23 = arith.constant dense<0.000000e+00> : vector<184x128xf32>
    %44 = tpu.matmul %42, %43, %cst_23 {dimension_numbers = #tpu.dot_dimension_numbers<[1], [0], [0], [1], [0, 0, 1, 1], [], []>} : vector<184x128xbf16>, vector<128x128xbf16>, vector<184x128xf32> -> vector<184x128xf32>
    %45 = arith.addf %41, %44 : vector<184x128xf32>
    %46 = vector.extract_strided_slice %24 {offsets = [16, 0], sizes = [184, 128], strides = [1, 1]} : vector<256x128xbf16> to vector<184x128xbf16>
    %c640 = arith.constant 640 : index
    %c0_24 = arith.constant 0 : index
    %47 = vector.load %arg3[%c640, %c0_24] : memref<3200x128xbf16, #tpu.memory_space<vmem>>, vector<128x128xbf16>
    %cst_25 = arith.constant dense<0.000000e+00> : vector<184x128xf32>
    %48 = tpu.matmul %46, %47, %cst_25 {dimension_numbers = #tpu.dot_dimension_numbers<[1], [0], [0], [1], [0, 0, 1, 1], [], []>} : vector<184x128xbf16>, vector<128x128xbf16>, vector<184x128xf32> -> vector<184x128xf32>
    %49 = arith.addf %45, %48 : vector<184x128xf32>
    %50 = vector.extract_strided_slice %24 {offsets = [17, 0], sizes = [184, 128], strides = [1, 1]} : vector<256x128xbf16> to vector<184x128xbf16>
    %c768 = arith.constant 768 : index
    %c0_26 = arith.constant 0 : index
    %51 = vector.load %arg3[%c768, %c0_26] : memref<3200x128xbf16, #tpu.memory_space<vmem>>, vector<128x128xbf16>
    %cst_27 = arith.constant dense<0.000000e+00> : vector<184x128xf32>
    %52 = tpu.matmul %50, %51, %cst_27 {dimension_numbers = #tpu.dot_dimension_numbers<[1], [0], [0], [1], [0, 0, 1, 1], [], []>} : vector<184x128xbf16>, vector<128x128xbf16>, vector<184x128xf32> -> vector<184x128xf32>
    %53 = arith.addf %49, %52 : vector<184x128xf32>
    %54 = vector.extract_strided_slice %24 {offsets = [18, 0], sizes = [184, 128], strides = [1, 1]} : vector<256x128xbf16> to vector<184x128xbf16>
    %c896 = arith.constant 896 : index
    %c0_28 = arith.constant 0 : index
    %55 = vector.load %arg3[%c896, %c0_28] : memref<3200x128xbf16, #tpu.memory_space<vmem>>, vector<128x128xbf16>
    %cst_29 = arith.constant dense<0.000000e+00> : vector<184x128xf32>
    %56 = tpu.matmul %54, %55, %cst_29 {dimension_numbers = #tpu.dot_dimension_numbers<[1], [0], [0], [1], [0, 0, 1, 1], [], []>} : vector<184x128xbf16>, vector<128x128xbf16>, vector<184x128xf32> -> vector<184x128xf32>
    %57 = arith.addf %53, %56 : vector<184x128xf32>
    %58 = vector.extract_strided_slice %24 {offsets = [19, 0], sizes = [184, 128], strides = [1, 1]} : vector<256x128xbf16> to vector<184x128xbf16>
    %c1024 = arith.constant 1024 : index
    %c0_30 = arith.constant 0 : index
    %59 = vector.load %arg3[%c1024, %c0_30] : memref<3200x128xbf16, #tpu.memory_space<vmem>>, vector<128x128xbf16>
    %cst_31 = arith.constant dense<0.000000e+00> : vector<184x128xf32>
    %60 = tpu.matmul %58, %59, %cst_31 {dimension_numbers = #tpu.dot_dimension_numbers<[1], [0], [0], [1], [0, 0, 1, 1], [], []>} : vector<184x128xbf16>, vector<128x128xbf16>, vector<184x128xf32> -> vector<184x128xf32>
    %61 = arith.addf %57, %60 : vector<184x128xf32>
    %62 = vector.extract_strided_slice %24 {offsets = [20, 0], sizes = [184, 128], strides = [1, 1]} : vector<256x128xbf16> to vector<184x128xbf16>
    %c1152 = arith.constant 1152 : index
    %c0_32 = arith.constant 0 : index
    %63 = vector.load %arg3[%c1152, %c0_32] : memref<3200x128xbf16, #tpu.memory_space<vmem>>, vector<128x128xbf16>
    %cst_33 = arith.constant dense<0.000000e+00> : vector<184x128xf32>
    %64 = tpu.matmul %62, %63, %cst_33 {dimension_numbers = #tpu.dot_dimension_numbers<[1], [0], [0], [1], [0, 0, 1, 1], [], []>} : vector<184x128xbf16>, vector<128x128xbf16>, vector<184x128xf32> -> vector<184x128xf32>
    %65 = arith.addf %61, %64 : vector<184x128xf32>
    %66 = vector.extract_strided_slice %24 {offsets = [32, 0], sizes = [184, 128], strides = [1, 1]} : vector<256x128xbf16> to vector<184x128xbf16>
    %c1280 = arith.constant 1280 : index
    %c0_34 = arith.constant 0 : index
    %67 = vector.load %arg3[%c1280, %c0_34] : memref<3200x128xbf16, #tpu.memory_space<vmem>>, vector<128x128xbf16>
    %cst_35 = arith.constant dense<0.000000e+00> : vector<184x128xf32>
    %68 = tpu.matmul %66, %67, %cst_35 {dimension_numbers = #tpu.dot_dimension_numbers<[1], [0], [0], [1], [0, 0, 1, 1], [], []>} : vector<184x128xbf16>, vector<128x128xbf16>, vector<184x128xf32> -> vector<184x128xf32>
    %69 = arith.addf %65, %68 : vector<184x128xf32>
    %70 = vector.extract_strided_slice %24 {offsets = [33, 0], sizes = [184, 128], strides = [1, 1]} : vector<256x128xbf16> to vector<184x128xbf16>
    %c1408 = arith.constant 1408 : index
    %c0_36 = arith.constant 0 : index
    %71 = vector.load %arg3[%c1408, %c0_36] : memref<3200x128xbf16, #tpu.memory_space<vmem>>, vector<128x128xbf16>
    %cst_37 = arith.constant dense<0.000000e+00> : vector<184x128xf32>
    %72 = tpu.matmul %70, %71, %cst_37 {dimension_numbers = #tpu.dot_dimension_numbers<[1], [0], [0], [1], [0, 0, 1, 1], [], []>} : vector<184x128xbf16>, vector<128x128xbf16>, vector<184x128xf32> -> vector<184x128xf32>
    %73 = arith.addf %69, %72 : vector<184x128xf32>
    %74 = vector.extract_strided_slice %24 {offsets = [34, 0], sizes = [184, 128], strides = [1, 1]} : vector<256x128xbf16> to vector<184x128xbf16>
    %c1536 = arith.constant 1536 : index
    %c0_38 = arith.constant 0 : index
    %75 = vector.load %arg3[%c1536, %c0_38] : memref<3200x128xbf16, #tpu.memory_space<vmem>>, vector<128x128xbf16>
    %cst_39 = arith.constant dense<0.000000e+00> : vector<184x128xf32>
    %76 = tpu.matmul %74, %75, %cst_39 {dimension_numbers = #tpu.dot_dimension_numbers<[1], [0], [0], [1], [0, 0, 1, 1], [], []>} : vector<184x128xbf16>, vector<128x128xbf16>, vector<184x128xf32> -> vector<184x128xf32>
    %77 = arith.addf %73, %76 : vector<184x128xf32>
    %78 = vector.extract_strided_slice %24 {offsets = [35, 0], sizes = [184, 128], strides = [1, 1]} : vector<256x128xbf16> to vector<184x128xbf16>
    %c1664 = arith.constant 1664 : index
    %c0_40 = arith.constant 0 : index
    %79 = vector.load %arg3[%c1664, %c0_40] : memref<3200x128xbf16, #tpu.memory_space<vmem>>, vector<128x128xbf16>
    %cst_41 = arith.constant dense<0.000000e+00> : vector<184x128xf32>
    %80 = tpu.matmul %78, %79, %cst_41 {dimension_numbers = #tpu.dot_dimension_numbers<[1], [0], [0], [1], [0, 0, 1, 1], [], []>} : vector<184x128xbf16>, vector<128x128xbf16>, vector<184x128xf32> -> vector<184x128xf32>
    %81 = arith.addf %77, %80 : vector<184x128xf32>
    %82 = vector.extract_strided_slice %24 {offsets = [36, 0], sizes = [184, 128], strides = [1, 1]} : vector<256x128xbf16> to vector<184x128xbf16>
    %c1792 = arith.constant 1792 : index
    %c0_42 = arith.constant 0 : index
    %83 = vector.load %arg3[%c1792, %c0_42] : memref<3200x128xbf16, #tpu.memory_space<vmem>>, vector<128x128xbf16>
    %cst_43 = arith.constant dense<0.000000e+00> : vector<184x128xf32>
    %84 = tpu.matmul %82, %83, %cst_43 {dimension_numbers = #tpu.dot_dimension_numbers<[1], [0], [0], [1], [0, 0, 1, 1], [], []>} : vector<184x128xbf16>, vector<128x128xbf16>, vector<184x128xf32> -> vector<184x128xf32>
    %85 = arith.addf %81, %84 : vector<184x128xf32>
    %86 = vector.extract_strided_slice %24 {offsets = [48, 0], sizes = [184, 128], strides = [1, 1]} : vector<256x128xbf16> to vector<184x128xbf16>
    %c1920 = arith.constant 1920 : index
    %c0_44 = arith.constant 0 : index
    %87 = vector.load %arg3[%c1920, %c0_44] : memref<3200x128xbf16, #tpu.memory_space<vmem>>, vector<128x128xbf16>
    %cst_45 = arith.constant dense<0.000000e+00> : vector<184x128xf32>
    %88 = tpu.matmul %86, %87, %cst_45 {dimension_numbers = #tpu.dot_dimension_numbers<[1], [0], [0], [1], [0, 0, 1, 1], [], []>} : vector<184x128xbf16>, vector<128x128xbf16>, vector<184x128xf32> -> vector<184x128xf32>
    %89 = arith.addf %85, %88 : vector<184x128xf32>
    %90 = vector.extract_strided_slice %24 {offsets = [49, 0], sizes = [184, 128], strides = [1, 1]} : vector<256x128xbf16> to vector<184x128xbf16>
    %c2048 = arith.constant 2048 : index
    %c0_46 = arith.constant 0 : index
    %91 = vector.load %arg3[%c2048, %c0_46] : memref<3200x128xbf16, #tpu.memory_space<vmem>>, vector<128x128xbf16>
    %cst_47 = arith.constant dense<0.000000e+00> : vector<184x128xf32>
    %92 = tpu.matmul %90, %91, %cst_47 {dimension_numbers = #tpu.dot_dimension_numbers<[1], [0], [0], [1], [0, 0, 1, 1], [], []>} : vector<184x128xbf16>, vector<128x128xbf16>, vector<184x128xf32> -> vector<184x128xf32>
    %93 = arith.addf %89, %92 : vector<184x128xf32>
    %94 = vector.extract_strided_slice %24 {offsets = [50, 0], sizes = [184, 128], strides = [1, 1]} : vector<256x128xbf16> to vector<184x128xbf16>
    %c2176 = arith.constant 2176 : index
    %c0_48 = arith.constant 0 : index
    %95 = vector.load %arg3[%c2176, %c0_48] : memref<3200x128xbf16, #tpu.memory_space<vmem>>, vector<128x128xbf16>
    %cst_49 = arith.constant dense<0.000000e+00> : vector<184x128xf32>
    %96 = tpu.matmul %94, %95, %cst_49 {dimension_numbers = #tpu.dot_dimension_numbers<[1], [0], [0], [1], [0, 0, 1, 1], [], []>} : vector<184x128xbf16>, vector<128x128xbf16>, vector<184x128xf32> -> vector<184x128xf32>
    %97 = arith.addf %93, %96 : vector<184x128xf32>
    %98 = vector.extract_strided_slice %24 {offsets = [51, 0], sizes = [184, 128], strides = [1, 1]} : vector<256x128xbf16> to vector<184x128xbf16>
    %c2304 = arith.constant 2304 : index
    %c0_50 = arith.constant 0 : index
    %99 = vector.load %arg3[%c2304, %c0_50] : memref<3200x128xbf16, #tpu.memory_space<vmem>>, vector<128x128xbf16>
    %cst_51 = arith.constant dense<0.000000e+00> : vector<184x128xf32>
    %100 = tpu.matmul %98, %99, %cst_51 {dimension_numbers = #tpu.dot_dimension_numbers<[1], [0], [0], [1], [0, 0, 1, 1], [], []>} : vector<184x128xbf16>, vector<128x128xbf16>, vector<184x128xf32> -> vector<184x128xf32>
    %101 = arith.addf %97, %100 : vector<184x128xf32>
    %102 = vector.extract_strided_slice %24 {offsets = [52, 0], sizes = [184, 128], strides = [1, 1]} : vector<256x128xbf16> to vector<184x128xbf16>
    %c2432 = arith.constant 2432 : index
    %c0_52 = arith.constant 0 : index
    %103 = vector.load %arg3[%c2432, %c0_52] : memref<3200x128xbf16, #tpu.memory_space<vmem>>, vector<128x128xbf16>
    %cst_53 = arith.constant dense<0.000000e+00> : vector<184x128xf32>
    %104 = tpu.matmul %102, %103, %cst_53 {dimension_numbers = #tpu.dot_dimension_numbers<[1], [0], [0], [1], [0, 0, 1, 1], [], []>} : vector<184x128xbf16>, vector<128x128xbf16>, vector<184x128xf32> -> vector<184x128xf32>
    %105 = arith.addf %101, %104 : vector<184x128xf32>
    %106 = vector.extract_strided_slice %24 {offsets = [64, 0], sizes = [184, 128], strides = [1, 1]} : vector<256x128xbf16> to vector<184x128xbf16>
    %c2560 = arith.constant 2560 : index
    %c0_54 = arith.constant 0 : index
    %107 = vector.load %arg3[%c2560, %c0_54] : memref<3200x128xbf16, #tpu.memory_space<vmem>>, vector<128x128xbf16>
    %cst_55 = arith.constant dense<0.000000e+00> : vector<184x128xf32>
    %108 = tpu.matmul %106, %107, %cst_55 {dimension_numbers = #tpu.dot_dimension_numbers<[1], [0], [0], [1], [0, 0, 1, 1], [], []>} : vector<184x128xbf16>, vector<128x128xbf16>, vector<184x128xf32> -> vector<184x128xf32>
    %109 = arith.addf %105, %108 : vector<184x128xf32>
    %110 = vector.extract_strided_slice %24 {offsets = [65, 0], sizes = [184, 128], strides = [1, 1]} : vector<256x128xbf16> to vector<184x128xbf16>
    %c2688 = arith.constant 2688 : index
    %c0_56 = arith.constant 0 : index
    %111 = vector.load %arg3[%c2688, %c0_56] : memref<3200x128xbf16, #tpu.memory_space<vmem>>, vector<128x128xbf16>
    %cst_57 = arith.constant dense<0.000000e+00> : vector<184x128xf32>
    %112 = tpu.matmul %110, %111, %cst_57 {dimension_numbers = #tpu.dot_dimension_numbers<[1], [0], [0], [1], [0, 0, 1, 1], [], []>} : vector<184x128xbf16>, vector<128x128xbf16>, vector<184x128xf32> -> vector<184x128xf32>
    %113 = arith.addf %109, %112 : vector<184x128xf32>
    %114 = vector.extract_strided_slice %24 {offsets = [66, 0], sizes = [184, 128], strides = [1, 1]} : vector<256x128xbf16> to vector<184x128xbf16>
    %c2816 = arith.constant 2816 : index
    %c0_58 = arith.constant 0 : index
    %115 = vector.load %arg3[%c2816, %c0_58] : memref<3200x128xbf16, #tpu.memory_space<vmem>>, vector<128x128xbf16>
    %cst_59 = arith.constant dense<0.000000e+00> : vector<184x128xf32>
    %116 = tpu.matmul %114, %115, %cst_59 {dimension_numbers = #tpu.dot_dimension_numbers<[1], [0], [0], [1], [0, 0, 1, 1], [], []>} : vector<184x128xbf16>, vector<128x128xbf16>, vector<184x128xf32> -> vector<184x128xf32>
    %117 = arith.addf %113, %116 : vector<184x128xf32>
    %118 = vector.extract_strided_slice %24 {offsets = [67, 0], sizes = [184, 128], strides = [1, 1]} : vector<256x128xbf16> to vector<184x128xbf16>
    %c2944 = arith.constant 2944 : index
    %c0_60 = arith.constant 0 : index
    %119 = vector.load %arg3[%c2944, %c0_60] : memref<3200x128xbf16, #tpu.memory_space<vmem>>, vector<128x128xbf16>
    %cst_61 = arith.constant dense<0.000000e+00> : vector<184x128xf32>
    %120 = tpu.matmul %118, %119, %cst_61 {dimension_numbers = #tpu.dot_dimension_numbers<[1], [0], [0], [1], [0, 0, 1, 1], [], []>} : vector<184x128xbf16>, vector<128x128xbf16>, vector<184x128xf32> -> vector<184x128xf32>
    %121 = arith.addf %117, %120 : vector<184x128xf32>
    %122 = vector.extract_strided_slice %24 {offsets = [68, 0], sizes = [184, 128], strides = [1, 1]} : vector<256x128xbf16> to vector<184x128xbf16>
    %c3072 = arith.constant 3072 : index
    %c0_62 = arith.constant 0 : index
    %123 = vector.load %arg3[%c3072, %c0_62] : memref<3200x128xbf16, #tpu.memory_space<vmem>>, vector<128x128xbf16>
    %cst_63 = arith.constant dense<0.000000e+00> : vector<184x128xf32>
    %124 = tpu.matmul %122, %123, %cst_63 {dimension_numbers = #tpu.dot_dimension_numbers<[1], [0], [0], [1], [0, 0, 1, 1], [], []>} : vector<184x128xbf16>, vector<128x128xbf16>, vector<184x128xf32> -> vector<184x128xf32>
    %125 = arith.addf %121, %124 : vector<184x128xf32>
    %c1 = arith.constant 1 : index
    %c0_64 = arith.constant 0 : index
    %126 = vector.load %arg4[%c1, %c0_64] : memref<8x128xf32, #tpu.memory_space<vmem>>, vector<1x128xf32>
    %127 = vector.broadcast %126 : vector<1x128xf32> to vector<184x128xf32>
    %128 = arith.addf %125, %127 : vector<184x128xf32>
    %cst_65 = arith.constant 0.000000e+00 : f32
    %129 = vector.broadcast %cst_65 : f32 to vector<184x128xf32>
    %130 = arith.maximumf %128, %129 : vector<184x128xf32>
    %131 = vector.extract_strided_slice %130 {offsets = [0, 0], sizes = [160, 128], strides = [1, 1]} : vector<184x128xf32> to vector<160x128xf32>
    %132 = vector.extract_strided_slice %130 {offsets = [1, 0], sizes = [160, 128], strides = [1, 1]} : vector<184x128xf32> to vector<160x128xf32>
    %133 = arith.maximumf %131, %132 : vector<160x128xf32>
    %134 = vector.extract_strided_slice %130 {offsets = [16, 0], sizes = [160, 128], strides = [1, 1]} : vector<184x128xf32> to vector<160x128xf32>
    %135 = vector.extract_strided_slice %130 {offsets = [17, 0], sizes = [160, 128], strides = [1, 1]} : vector<184x128xf32> to vector<160x128xf32>
    %136 = arith.maximumf %134, %135 : vector<160x128xf32>
    %137 = arith.maximumf %133, %136 : vector<160x128xf32>
    %c0_66 = arith.constant 0 : index
    %c0_67 = arith.constant 0 : index
    %138 = vector.load %arg6[%c0_66, %c0_67] : memref<896x128xf32, #tpu.memory_space<vmem>>, vector<160x128xf32>
    tpu.vector_store %arg6[%c0_66, %c0_67], %137 {strides = array<i32>} : memref<896x128xf32, #tpu.memory_space<vmem>>, vector<160x128xf32>,
    %c0_68 = arith.constant 0 : index
    %c0_69 = arith.constant 0 : index
    %139 = tpu.strided_load %arg6[%c0_68, %c0_69] {strides = array<i32: 2, 1>} : memref<896x128xf32, #tpu.memory_space<vmem>>, vector<80x128xf32>
    %140 = vector.shape_cast %139 : vector<80x128xf32> to vector<5x2x8x128xf32>
    %141 = vector.extract_strided_slice %140 {offsets = [0, 0, 0, 0], sizes = [5, 1, 8, 128], strides = [1, 1, 1, 1]} : vector<5x2x8x128xf32> to vector<5x1x8x128xf32>
    %142 = vector.shape_cast %141 : vector<5x1x8x128xf32> to vector<5x8x128xf32>
    %143 = vector.shape_cast %142 : vector<5x8x128xf32> to vector<40x128xf32>
    %144 = arith.truncf %143 : vector<40x128xf32> to vector<40x128xbf16>
    %c0_70 = arith.constant 0 : index
    %c0_71 = arith.constant 0 : index
    %c0_72 = arith.constant 0 : index
    %145 = vector.load %arg5[%c0_70, %c0_71, %c0_72] : memref<1x40x128xbf16, #tpu.memory_space<vmem>>, vector<1x40x128xbf16>
    %146 = vector.shape_cast %145 : vector<1x40x128xbf16> to vector<40x128xbf16>
    %147 = vector.shape_cast %144 : vector<40x128xbf16> to vector<1x40x128xbf16>
    tpu.vector_store %arg5[%c0_70, %c0_71, %c0_72], %147 {strides = array<i32>} : memref<1x40x128xbf16, #tpu.memory_space<vmem>>, vector<1x40x128xbf16>,
    return
  }
  func.func @transform_0(%arg0: i32) -> (i32, i32, i32) {
    %c0_i32 = arith.constant 0 : i32
    %c0_i32_0 = arith.constant 0 : i32
    %c0_i32_1 = arith.constant 0 : i32
    return %arg0, %c0_i32, %c0_i32_0 : i32, i32, i32
  }
  func.func @transform_1(%arg0: i32) -> (i32, i32) {
    %c0_i32 = arith.constant 0 : i32
    %c0_i32_0 = arith.constant 0 : i32
    %c0_i32_1 = arith.constant 0 : i32
    return %c0_i32, %c0_i32_0 : i32, i32
  }
  func.func @transform_2(%arg0: i32) -> (i32, i32) {
    %c0_i32 = arith.constant 0 : i32
    %c0_i32_0 = arith.constant 0 : i32
    %c0_i32_1 = arith.constant 0 : i32
    return %c0_i32, %c0_i32_0 : i32, i32
  }
  func.func @transform_3(%arg0: i32) -> (i32, i32) {
    %c0_i32 = arith.constant 0 : i32
    %c0_i32_0 = arith.constant 0 : i32
    %c0_i32_1 = arith.constant 0 : i32
    return %c0_i32, %c0_i32_0 : i32, i32
  }
  func.func @transform_4(%arg0: i32) -> (i32, i32, i32) {
    %c0_i32 = arith.constant 0 : i32
    %c0_i32_0 = arith.constant 0 : i32
    %c0_i32_1 = arith.constant 0 : i32
    return %arg0, %c0_i32, %c0_i32_0 : i32, i32, i32
  }
}

module attributes {stable_mosaic.version = 11 : i64} {
  func.func @fc_stack_kernel(%arg0: i32, %arg1: memref<2x5120xbf16, #tpu.memory_space<vmem>>, %arg2: memref<5120x128xbf16, #tpu.memory_space<vmem>>, %arg3: memref<128x128xbf16, #tpu.memory_space<vmem>>, %arg4: memref<128x128xbf16, #tpu.memory_space<vmem>>, %arg5: memref<8x128xf32, #tpu.memory_space<vmem>>, %arg6: memref<2x128xf32, #tpu.memory_space<vmem>>) attributes {dimension_semantics = [#tpu.dimension_semantics<arbitrary>], iteration_bounds = array<i64: 1>, scalar_prefetch = 0 : i64, scratch_operands = 0 : i64, tpu.core_type = #tpu.core_type<tc>, window_params = [{pipeline_mode = #tpu.pipeline_mode<synchronous>, transform_indices = @transform_0, window_bounds = array<i64: 2, 5120>}, {pipeline_mode = #tpu.pipeline_mode<synchronous>, transform_indices = @transform_1, window_bounds = array<i64: 5120, 128>}, {pipeline_mode = #tpu.pipeline_mode<synchronous>, transform_indices = @transform_2, window_bounds = array<i64: 128, 128>}, {pipeline_mode = #tpu.pipeline_mode<synchronous>, transform_indices = @transform_3, window_bounds = array<i64: 128, 128>}, {pipeline_mode = #tpu.pipeline_mode<synchronous>, transform_indices = @transform_4, window_bounds = array<i64: 8, 128>}, {pipeline_mode = #tpu.pipeline_mode<synchronous>, transform_indices = @transform_5, window_bounds = array<i64: 2, 128>}]} {
    %c0 = arith.constant 0 : index
    %c0_0 = arith.constant 0 : index
    %0 = vector.load %arg1[%c0, %c0_0] : memref<2x5120xbf16, #tpu.memory_space<vmem>>, vector<2x5120xbf16>
    %c0_1 = arith.constant 0 : index
    %c0_2 = arith.constant 0 : index
    %1 = vector.load %arg2[%c0_1, %c0_2] : memref<5120x128xbf16, #tpu.memory_space<vmem>>, vector<5120x128xbf16>
    %cst = arith.constant dense<0.000000e+00> : vector<2x128xf32>
    %2 = tpu.matmul %0, %1, %cst {dimension_numbers = #tpu.dot_dimension_numbers<[1], [0], [0], [1], [0, 0, 1, 1], [], []>} : vector<2x5120xbf16>, vector<5120x128xbf16>, vector<2x128xf32> -> vector<2x128xf32>
    %c2 = arith.constant 2 : index
    %c0_3 = arith.constant 0 : index
    %3 = vector.load %arg5[%c2, %c0_3] : memref<8x128xf32, #tpu.memory_space<vmem>>, vector<1x128xf32>
    %4 = vector.broadcast %3 : vector<1x128xf32> to vector<2x128xf32>
    %5 = arith.addf %2, %4 : vector<2x128xf32>
    %cst_4 = arith.constant 0.000000e+00 : f32
    %6 = vector.broadcast %cst_4 : f32 to vector<2x128xf32>
    %7 = arith.maximumf %5, %6 : vector<2x128xf32>
    %8 = arith.truncf %7 : vector<2x128xf32> to vector<2x128xbf16>
    %c0_5 = arith.constant 0 : index
    %c0_6 = arith.constant 0 : index
    %9 = vector.load %arg3[%c0_5, %c0_6] : memref<128x128xbf16, #tpu.memory_space<vmem>>, vector<128x128xbf16>
    %cst_7 = arith.constant dense<0.000000e+00> : vector<2x128xf32>
    %10 = tpu.matmul %8, %9, %cst_7 {dimension_numbers = #tpu.dot_dimension_numbers<[1], [0], [0], [1], [0, 0, 1, 1], [], []>} : vector<2x128xbf16>, vector<128x128xbf16>, vector<2x128xf32> -> vector<2x128xf32>
    %c3 = arith.constant 3 : index
    %c0_8 = arith.constant 0 : index
    %11 = vector.load %arg5[%c3, %c0_8] : memref<8x128xf32, #tpu.memory_space<vmem>>, vector<1x128xf32>
    %12 = vector.broadcast %11 : vector<1x128xf32> to vector<2x128xf32>
    %13 = arith.addf %10, %12 : vector<2x128xf32>
    %cst_9 = arith.constant 0.000000e+00 : f32
    %14 = vector.broadcast %cst_9 : f32 to vector<2x128xf32>
    %15 = arith.maximumf %13, %14 : vector<2x128xf32>
    %16 = arith.truncf %15 : vector<2x128xf32> to vector<2x128xbf16>
    %c0_10 = arith.constant 0 : index
    %c0_11 = arith.constant 0 : index
    %17 = vector.load %arg4[%c0_10, %c0_11] : memref<128x128xbf16, #tpu.memory_space<vmem>>, vector<128x128xbf16>
    %cst_12 = arith.constant dense<0.000000e+00> : vector<2x128xf32>
    %18 = tpu.matmul %16, %17, %cst_12 {dimension_numbers = #tpu.dot_dimension_numbers<[1], [0], [0], [1], [0, 0, 1, 1], [], []>} : vector<2x128xbf16>, vector<128x128xbf16>, vector<2x128xf32> -> vector<2x128xf32>
    %c4 = arith.constant 4 : index
    %c0_13 = arith.constant 0 : index
    %19 = vector.load %arg5[%c4, %c0_13] : memref<8x128xf32, #tpu.memory_space<vmem>>, vector<1x128xf32>
    %20 = vector.broadcast %19 : vector<1x128xf32> to vector<2x128xf32>
    %21 = arith.addf %18, %20 : vector<2x128xf32>
    %c0_14 = arith.constant 0 : index
    %c0_15 = arith.constant 0 : index
    %22 = vector.load %arg6[%c0_14, %c0_15] : memref<2x128xf32, #tpu.memory_space<vmem>>, vector<2x128xf32>
    tpu.vector_store %arg6[%c0_14, %c0_15], %21 {strides = array<i32>} : memref<2x128xf32, #tpu.memory_space<vmem>>, vector<2x128xf32>,
    return
  }
  func.func @transform_0(%arg0: i32) -> (i32, i32) {
    %c0_i32 = arith.constant 0 : i32
    %c0_i32_0 = arith.constant 0 : i32
    %c0_i32_1 = arith.constant 0 : i32
    return %c0_i32, %c0_i32_0 : i32, i32
  }
  func.func @transform_1(%arg0: i32) -> (i32, i32) {
    %c0_i32 = arith.constant 0 : i32
    %c0_i32_0 = arith.constant 0 : i32
    %c0_i32_1 = arith.constant 0 : i32
    return %c0_i32, %c0_i32_0 : i32, i32
  }
  func.func @transform_2(%arg0: i32) -> (i32, i32) {
    %c0_i32 = arith.constant 0 : i32
    %c0_i32_0 = arith.constant 0 : i32
    %c0_i32_1 = arith.constant 0 : i32
    return %c0_i32, %c0_i32_0 : i32, i32
  }
  func.func @transform_3(%arg0: i32) -> (i32, i32) {
    %c0_i32 = arith.constant 0 : i32
    %c0_i32_0 = arith.constant 0 : i32
    %c0_i32_1 = arith.constant 0 : i32
    return %c0_i32, %c0_i32_0 : i32, i32
  }
  func.func @transform_4(%arg0: i32) -> (i32, i32) {
    %c0_i32 = arith.constant 0 : i32
    %c0_i32_0 = arith.constant 0 : i32
    %c0_i32_1 = arith.constant 0 : i32
    return %c0_i32, %c0_i32_0 : i32, i32
  }
  func.func @transform_5(%arg0: i32) -> (i32, i32) {
    %c0_i32 = arith.constant 0 : i32
    %c0_i32_0 = arith.constant 0 : i32
    %c0_i32_1 = arith.constant 0 : i32
    return %c0_i32, %c0_i32_0 : i32, i32
  }
}

</mosaic_0001>

<bundles_post_ra>
// kernel: mylenet_forward.2
= control target key start
LH: loop header
LB: loop body
LE: loop exit
PB: predicated region body
PF: predicated region fallthrough
CT: control target
= control target key end

     0   :  { %s11012_s15 = smov 0   ;;  %s12940_s0 = inlined_call_operand.vmem [shape: bf16[2,960,128], index: 0, kind: input, shape index: {}]   ;;  %s12941_s1 = inlined_call_operand.vmem [shape: bf16[128,128], index: 1, kind: input, shape index: {}]   ;;  %s12942_s2 = inlined_call_operand.vmem [shape: bf16[3200,128], index: 2, kind: input, shape index: {}]   ;;  %s12943_s3 = inlined_call_operand.vmem [shape: f32[8,128], index: 3, kind: input, shape index: {}]   ;;  %s12944_s4 = inlined_call_operand.vmem [shape: bf16[2,40,128], index: 4, kind: output, shape index: {}]  }
   0x1 LB: > { %s8209_s16 = sadd.s32 4294967295, %s10983_s15   ;;  %p8213_p0 = scmp.ge.s32.totalorder %s10983_s15, 1  ;;  %s10983_s15 = sphi %s11012_s15, %s14_s15  }
   0x2   : > { %p162_p1 = scmp.lt.s32.totalorder %s10983_s15, 3 }
   0x4   : > { %p163_p2 = pnand %p8213_p0, %p162_p1 }
   0x6   : > { %166 = sbr.rel (%p163_p2) target bundleno = 1413 (0x585), region = 36 }
   0xd   : > { %v10705_v0 = vld [vmem:[%s12941_s1] sm:$0xff]   ;;  %p188_p3 = scmp.lt.s32.totalorder %s8209_s16, 1  ;;  %v10706_v1 = vld [vmem:[%s12941_s1 + $0x8] sm:$0xff]   ;;  %v10707_v2 = vld [vmem:[%s12941_s1 + $0x10] sm:$0xff]   ;;  %vm1488_vm0 = vcmask 1046528   ;;  %vm3298_vm3 = vcmask 1045504  }
   0xe   : > { %9077 = vmatprep.subr.bf16.mxu0 %v10705_v0  ;;  %v10708_v3 = vld [vmem:[%s12941_s1 + $0x18] sm:$0xff]   ;;  %v10709_v5 = vld [vmem:[%s12941_s1 + $0x20] sm:$0xff]   ;;  %v10710_v6 = vld [vmem:[%s12941_s1 + $0x28] sm:$0xff]   ;;  %vm2284_vm1 = vsmask.f32 7424 }
   0xf   : > { %s13045_s16 = smov (!%p188_p3, %s8209_s16), 1  ;;  %9078 = vmatpush3.bf16.msra.mxu0 %v10705_v0  ;;  %v10711_v7 = vld [vmem:[%s12941_s1 + $0x30] sm:$0xff]   ;;  %v10712_v8 = vld [vmem:[%s12941_s1 + $0x38] sm:$0xff]   ;;  %v10773_v43 = vld [vmem:[%s12942_s2 + $0x40] sm:$0xff]   ;;  %vm3023_vm2 = vsmask.f32 6400 }
  0x10   : > { %9079 = vmatprep.subr.bf16.mxu0 %v10706_v1  ;;  %s10693_s23 = smul.u32 480, %s13045_s16  ;;  %v10774_v45 = vld [vmem:[%s12942_s2 + $0x48] sm:$0xff]   ;;  %v10775_v47 = vld [vmem:[%s12942_s2 + $0x50] sm:$0xff]   ;;  %v10776_v48 = vld [vmem:[%s12942_s2 + $0x280] sm:$0xff]  }
  0x11   : > { %v10777_v50 = vld [vmem:[%s12942_s2 + $0x58] sm:$0xff]   ;;  %9613 = vmatprep.subr.bf16.mxu1 %v10776_v48  ;;  %v10778_v52 = vld [vmem:[%s12942_s2 + $0x288] sm:$0xff]   ;;  %v10779_v53 = vld [vmem:[%s12942_s2 + $0x60] sm:$0xff]   ;;  %s10694_s18 = smul.u32 20, %s13045_s16 }
  0x12   : > { %s11035_s26 = scalar_lea.vmem %s12940_s0, %s10693_s23  ;;  %9614 = vmatpush3.bf16.msra.mxu1 %v10776_v48  ;;  %v10780_v55 = vld [vmem:[%s12942_s2 + $0x290] sm:$0xff]   ;;  %v10781_v57 = vld [vmem:[%s12942_s2 + $0x68] sm:$0xff]   ;;  %v10782_v58 = vld [vmem:[%s12942_s2 + $0x298] sm:$0xff]  }
  0x13   : > { %9080 = vmatpush3.bf16.msra.mxu0 %v10706_v1  ;;  %v10713_v4 = vld [vmem:[%s11035_s26] sm:$0xff]   ;;  %v10714_v9 = vld [vmem:[%s11035_s26 + $0x8] sm:$0xff]   ;;  %v10715_v10 = vld [vmem:[%s11035_s26 + $0x10] sm:$0xff]   ;;  %9615 = vmatprep.subr.bf16.mxu1 %v10778_v52  ;;  %s12915_s20 = scalar_lea.vmem %s12944_s4, %s10694_s18 }
  0x14   : > { %9081 = vmatprep.subr.bf16.mxu0 %v10707_v2  ;;  %9093 = vmatprep.mubr.bf16.mxu0 %v10713_v4  ;;  %v10716_v11 = vld [vmem:[%s11035_s26 + $0x18] sm:$0xff]   ;;  %v10717_v12 = vld [vmem:[%s11035_s26 + $0x20] sm:$0xff]   ;;  %v10718_v13 = vld [vmem:[%s11035_s26 + $0x28] sm:$0xff]  }
  0x15   : > { %v10719_v14 = vld [vmem:[%s11035_s26 + $0x30] sm:$0xff]   ;;  %v10720_v15 = vld [vmem:[%s11035_s26 + $0x38] sm:$0xff]   ;;  %v10721_v16 = vld [vmem:[%s11035_s26 + $0x40] sm:$0xff]  }
  0x16   : > { %v10722_v17 = vld [vmem:[%s11035_s26 + $0x48] sm:$0xff]   ;;  %v10723_v18 = vld [vmem:[%s11035_s26 + $0x50] sm:$0xff]   ;;  %v10724_v19 = vld [vmem:[%s11035_s26 + $0x58] sm:$0xff]   ;;  %9616 = vmatpush3.bf16.msra.mxu1 %v10778_v52 }
  0x17   : > { %9082 = vmatpush3.bf16.msra.mxu0 %v10707_v2  ;;  %v10725_v20 = vld [vmem:[%s11035_s26 + $0x60] sm:$0xff]   ;;  %v10726_v21 = vld [vmem:[%s11035_s26 + $0x68] sm:$0xff]   ;;  %v10727_v22 = vld [vmem:[%s11035_s26 + $0x70] sm:$0xff]   ;;  %9617 = vmatprep.subr.bf16.mxu1 %v10780_v55 }
  0x18   : > { %9083 = vmatprep.subr.bf16.mxu0 %v10708_v3  ;;  %v10728_v23 = vld [vmem:[%s11035_s26 + $0x78] sm:$0xff]   ;;  %v10729_v24 = vld [vmem:[%s11035_s26 + $0x80] sm:$0xff]   ;;  %v10730_v25 = vld [vmem:[%s11035_s26 + $0x88] sm:$0xff]  }
  0x19   : > { %v10731_v26 = vld [vmem:[%s11035_s26 + $0x90] sm:$0xff]   ;;  %v10732_v27 = vld [vmem:[%s11035_s26 + $0x98] sm:$0xff]   ;;  %v10733_v28 = vld [vmem:[%s11035_s26 + $0xa0] sm:$0xff]  }
  0x1a   : > { %v10734_v29 = vld [vmem:[%s11035_s26 + $0xa8] sm:$0xff]   ;;  %v10735_v30 = vld [vmem:[%s11035_s26 + $0xb0] sm:$0xff]   ;;  %v10736_v31 = vld [vmem:[%s11035_s26 + $0xb8] sm:$0xff]   ;;  %9618 = vmatpush3.bf16.msra.mxu1 %v10780_v55 }
  0x1b   : > { %9084 = vmatpush3.bf16.msra.mxu0 %v10708_v3  ;;  %v10737_v32 = vld [vmem:[%s11035_s26 + $0xc0] sm:$0xff]   ;;  %v10738_v33 = vld [vmem:[%s11035_s26 + $0xc8] sm:$0xff]   ;;  %v10739_v34 = vld [vmem:[%s11035_s26 + $0xd0] sm:$0xff]   ;;  %9619 = vmatprep.subr.bf16.mxu1 %v10782_v58 }
  0x1c   : > { %9085 = vmatprep.subr.bf16.mxu0 %v10709_v5  ;;  %v10740_v35 = vld [vmem:[%s11035_s26 + $0xd8] sm:$0xff]   ;;  %v10741_v36 = vld [vmem:[%s11035_s26 + $0xe0] sm:$0xff]   ;;  %v10742_v37 = vld [vmem:[%s11035_s26 + $0xe8] sm:$0xff]  }
  0x1d   : > { %v10743_v38 = vld [vmem:[%s11035_s26 + $0xf0] sm:$0xff]   ;;  %v10744_v39 = vld [vmem:[%s11035_s26 + $0xf8] sm:$0xff]   ;;  %v10745_v40 = vld [vmem:[%s11035_s26 + $0x100] sm:$0xff]  }
  0x1e   : > { %v10746_v41 = vld [vmem:[%s11035_s26 + $0x108] sm:$0xff]   ;;  %v10747_v42 = vld [vmem:[%s11035_s26 + $0x110] sm:$0xff]   ;;  %v10748_v44 = vld [vmem:[%s11035_s26 + $0x118] sm:$0xff]   ;;  %9620 = vmatpush3.bf16.msra.mxu1 %v10782_v58 }
  0x1f   : > { %9086 = vmatpush3.bf16.msra.mxu0 %v10709_v5  ;;  %v10749_v46 = vld [vmem:[%s11035_s26 + $0x120] sm:$0xff]   ;;  %v10750_v49 = vld [vmem:[%s11035_s26 + $0x128] sm:$0xff]   ;;  %v10751_v51 = vld [vmem:[%s11035_s26 + $0x130] sm:$0xff]  }
  0x20   : > { %9087 = vmatprep.subr.bf16.mxu0 %v10710_v6  ;;  %v10752_v54 = vld [vmem:[%s11035_s26 + $0x138] sm:$0xff]   ;;  %v10753_v56 = vld [vmem:[%s11035_s26 + $0x140] sm:$0xff]   ;;  %v10783_v59 = vld [vmem:[%s12942_s2 + $0x70] sm:$0xff]  }
  0x21   : > { %v10754_v60 = vld [vmem:[%s11035_s26 + $0x148] sm:$0xff]   ;;  %v10755_v61 = vld [vmem:[%s11035_s26 + $0x150] sm:$0xff]   ;;  %v10784_v62 = vld [vmem:[%s12942_s2 + $0x2a0] sm:$0xff]  }
  0x22   : > { %v10785_v63 = vld [vmem:[%s12942_s2 + $0x78] sm:$0xff]   ;;  %9621 = vmatprep.subr.bf16.mxu1 %v10784_v62  ;;  %v10786_v0 = vld [vmem:[%s12942_s2 + $0x2a8] sm:$0xff]   ;;  %v10757_v2 = vld [vmem:[%s11035_s26 + $0x160] sm:$0xff]  }
  0x23   : > { %9088 = vmatpush3.bf16.msra.mxu0 %v10710_v6  ;;  %9622 = vmatpush3.bf16.msra.mxu1 %v10784_v62  ;;  %v10756_v1 = vld [vmem:[%s11035_s26 + $0x158] sm:$0xff]   ;;  %v10787_v3 = vld [vmem:[%s12942_s2 + $0x2b0] sm:$0xff]   ;;  %v10758_v5 = vld [vmem:[%s11035_s26 + $0x168] sm:$0xff]  }
  0x24   : > { %9089 = vmatprep.subr.bf16.mxu0 %v10711_v7  ;;  %9623 = vmatprep.subr.bf16.mxu1 %v10786_v0  ;;  %v10788_v4 = vld [vmem:[%s12942_s2 + $0x2b8] sm:$0xff]   ;;  %v10759_v6 = vld [vmem:[%s11035_s26 + $0x170] sm:$0xff]  }
  0x27   : > { %9090 = vmatpush3.bf16.msra.mxu0 %v10711_v7  ;;  %9624 = vmatpush3.bf16.msra.mxu1 %v10786_v0  ;;  %v10760_v7 = vld [vmem:[%s11035_s26 + $0x178] sm:$0xff]  }
  0x28   : > { %9091 = vmatprep.subr.bf16.mxu0 %v10712_v8  ;;  %9625 = vmatprep.subr.bf16.mxu1 %v10787_v3  ;;  %v10772_v0 = vld [vmem:[%s11035_s26 + $0x1d8] sm:$0xff]  }
  0x2b   : > { %9092 = vmatpush3.bf16.msra.mxu0 %v10712_v8  ;;  %9626 = vmatpush3.bf16.msra.mxu1 %v10787_v3  ;;  %v10761_v8 = vld [vmem:[%s11035_s26 + $0x180] sm:$0xff]  }
  0x2c   : > { %9213 = vmatprep.subr.bf16.mxu0 %v10773_v43  ;;  %9627 = vmatprep.subr.bf16.mxu1 %v10788_v4 }
  0x2e   : > { %9094 = vmatmul.mubr.bf16.vlgmr.msra.gmra.mrb[0].mxu0 %v10714_v9  ;;  %v10762_v9 = vld [vmem:[%s11035_s26 + $0x188] sm:$0xff]  }
  0x2f   : > { %9097 = vmatprep.mubr.bf16.mxu0 %v10715_v10  ;;  %9214 = vmatpush3.bf16.msra.mxu0 %v10773_v43  ;;  %v10763_v10 = vld [vmem:[%s11035_s26 + $0x190] sm:$0xff]  }
  0x30   : > { %9215 = vmatprep.subr.bf16.mxu0 %v10774_v45  ;;  %9628 = vmatpush3.bf16.msra.mxu1 %v10788_v4 }
  0x33   : > { %9216 = vmatpush3.bf16.msra.mxu0 %v10774_v45 }
  0x34   : > { %9217 = vmatprep.subr.bf16.mxu0 %v10775_v47 }
  0x36   : > { %9098 = vmatmul.mubr.bf16.gmra.mrb[4].mxu0 %v10716_v11  ;;  %v10764_v11 = vld [vmem:[%s11035_s26 + $0x198] sm:$0xff]  }
  0x37   : > { %9101 = vmatprep.mubr.bf16.mxu0 %v10717_v12  ;;  %9218 = vmatpush3.bf16.msra.mxu0 %v10775_v47  ;;  %v10765_v12 = vld [vmem:[%s11035_s26 + $0x1a0] sm:$0xff]  }
  0x38   : > { %9219 = vmatprep.subr.bf16.mxu0 %v10777_v50 }
  0x3b   : > { %9220 = vmatpush3.bf16.msra.mxu0 %v10777_v50 }
  0x3c   : > { %9221 = vmatprep.subr.bf16.mxu0 %v10779_v53 }
  0x3e   : > { %9102 = vmatmul.mubr.bf16.gmra.mrb[8].mxu0 %v10718_v13  ;;  %v10766_v13 = vld [vmem:[%s11035_s26 + $0x1a8] sm:$0xff]  }
  0x3f   : > { %9105 = vmatprep.mubr.bf16.mxu0 %v10719_v14  ;;  %9222 = vmatpush3.bf16.msra.mxu0 %v10779_v53  ;;  %v10767_v14 = vld [vmem:[%s11035_s26 + $0x1b0] sm:$0xff]  }
  0x40   : > { %9223 = vmatprep.subr.bf16.mxu0 %v10781_v57 }
  0x43   : > { %9224 = vmatpush3.bf16.msra.mxu0 %v10781_v57 }
  0x44   : > { %9225 = vmatprep.subr.bf16.mxu0 %v10783_v59 }
  0x46   : > { %9106 = vmatmul.mubr.bf16.gmra.mrb[12].mxu0 %v10720_v15  ;;  %v11158_v15 = vld [vmem:[%s12943_s3] ss:$0 sm:$0xff] }
  0x47   : > { %9109 = vmatprep.mubr.bf16.mxu0 %v10721_v16  ;;  %9226 = vmatpush3.bf16.msra.mxu0 %v10783_v59 }
  0x48   : > { %9227 = vmatprep.subr.bf16.mxu0 %v10785_v63 }
  0x4b   : > { %9228 = vmatpush3.bf16.msra.mxu0 %v10785_v63 }
  0x4e   : > { %9110 = vmatmul.mubr.bf16.gmra.mrb[16].mxu0 %v10722_v17 }
  0x4f   : > { %9113 = vmatprep.mubr.bf16.mxu0 %v10723_v18 }
  0x56   : > { %9114 = vmatmul.mubr.bf16.gmra.mrb[20].mxu0 %v10724_v19  ;;  %v10768_v19 = vld [vmem:[%s11035_s26 + $0x1b8] sm:$0xff]  }
  0x57   : > { %9117 = vmatprep.mubr.bf16.mxu0 %v10725_v20 }
  0x5e   : > { %9118 = vmatmul.mubr.bf16.gmra.mrb[24].mxu0 %v10726_v21 }
  0x5f   : > { %9121 = vmatprep.mubr.bf16.mxu0 %v10727_v22  ;;  %v10769_v22 = vld [vmem:[%s11035_s26 + $0x1c0] sm:$0xff]  }
  0x66   : > { %9122 = vmatmul.mubr.bf16.gmra.mrb[28].mxu0 %v10728_v23 }
  0x67   : > { %9125 = vmatprep.mubr.bf16.mxu0 %v10729_v24 }
  0x6e   : > { %9126 = vmatmul.mubr.bf16.gmra.mrb[32].mxu0 %v10730_v25 }
  0x6f   : > { %9129 = vmatprep.mubr.bf16.mxu0 %v10731_v26 }
  0x76   : > { %9130 = vmatmul.mubr.bf16.gmra.mrb[36].mxu0 %v10732_v27 }
  0x77   : > { %9133 = vmatprep.mubr.bf16.mxu0 %v10733_v28 }
  0x7e   : > { %9134 = vmatmul.mubr.bf16.gmra.mrb[40].mxu0 %v10734_v29 }
  0x7f   : > { %9137 = vmatprep.mubr.bf16.mxu0 %v10735_v30 }
  0x86   : > { %9138 = vmatmul.mubr.bf16.gmra.mrb[44].mxu0 %v10736_v31 }
  0x87   : > { %9141 = vmatprep.mubr.bf16.mxu0 %v10737_v32 }
  0x8e   : > { %9142 = vmatmul.mubr.bf16.gmra.mrb[48].mxu0 %v10738_v33 }
  0x8f   : > { %9145 = vmatprep.mubr.bf16.mxu0 %v10739_v34 }
  0x96   : > { %9146 = vmatmul.mubr.bf16.gmra.mrb[52].mxu0 %v10740_v35 }
  0x97   : > { %9149 = vmatprep.mubr.bf16.mxu0 %v10741_v36 }
  0x9e   : > { %9150 = vmatmul.mubr.bf16.gmra.mrb[56].mxu0 %v10742_v37 }
  0x9f   : > { %9153 = vmatprep.mubr.bf16.mxu0 %v10743_v38  ;;  %v10770_v38 = vld [vmem:[%s11035_s26 + $0x1c8] sm:$0xff]  }
  0xa6   : > { %9154 = vmatmul.mubr.bf16.gmra.mrb[60].mxu0 %v10744_v39 }
  0xa7   : > { %9157 = vmatprep.mubr.bf16.mxu0 %v10745_v40 }
  0xae   : > { %9158 = vmatmul.mubr.bf16.gmra.mrb[64].mxu0 %v10746_v41 }
  0xaf   : > { %9161 = vmatprep.mubr.bf16.mxu0 %v10747_v42 }
  0xb6   : > { %9162 = vmatmul.mubr.bf16.gmra.mrb[68].mxu0 %v10748_v44  ;;  %v10771_v44 = vld [vmem:[%s11035_s26 + $0x1d0] sm:$0xff]  }
  0xb7   : > { %9165 = vmatprep.mubr.bf16.mxu0 %v10749_v46 }
  0xbe   : > { %9166 = vmatmul.mubr.bf16.gmra.mrb[72].mxu0 %v10750_v49 }
  0xbf   : > { %9169 = vmatprep.mubr.bf16.mxu0 %v10751_v51 }
  0xc6   : > { %9170 = vmatmul.mubr.bf16.gmra.mrb[76].mxu0 %v10752_v54 }
  0xc7   : > { %9173 = vmatprep.mubr.bf16.mxu0 %v10753_v56 }
  0xce   : > { %9174 = vmatmul.mubr.bf16.gmra.mrb[80].mxu0 %v10754_v60 }
  0xcf   : > { %9177 = vmatprep.mubr.bf16.mxu0 %v10755_v61 }
  0xd6   : > { %9178 = vmatmul.mubr.bf16.gmra.mrb[84].mxu0 %v10756_v1 }
  0xd7   : > { %9181 = vmatprep.mubr.bf16.mxu0 %v10757_v2 }
  0xde   : > { %9182 = vmatmul.mubr.bf16.gmra.mrb[88].mxu0 %v10758_v5 }
  0xdf   : > { %9185 = vmatprep.mubr.bf16.mxu0 %v10759_v6 }
  0xe6   : > { %9186 = vmatmul.mubr.bf16.gmra.mrb[92].mxu0 %v10760_v7 }
  0xe7   : > { %9189 = vmatprep.mubr.bf16.mxu0 %v10761_v8 }
  0xee   : > { %9190 = vmatmul.mubr.bf16.gmra.mrb[96].mxu0 %v10762_v9 }
  0xef   : > { %9193 = vmatprep.mubr.bf16.mxu0 %v10763_v10 }
  0xf6   : > { %9194 = vmatmul.mubr.bf16.gmra.mrb[100].mxu0 %v10764_v11 }
  0xf7   : > { %9197 = vmatprep.mubr.bf16.mxu0 %v10765_v12 }
  0xfe   : > { %9198 = vmatmul.mubr.bf16.gmra.mrb[104].mxu0 %v10766_v13 }
  0xff   : > { %9201 = vmatprep.mubr.bf16.mxu0 %v10767_v14 }
 0x101   : > { %v9095_v16 = vpop.f32.mrb[0].mxu0 }
 0x102   : > { %v791_v17 = vadd.f32 %v9095_v16, %v11158_v15  ;;  %v782_v18 = vpop.f32.mrb[1].mxu0 }
 0x103   : > { %v783_v20 = vadd.f32 %v11158_v15, %v782_v18  ;;  %v9096_v21 = vpop.f32.mrb[2].mxu0 }
 0x104   : > { %v1260_v23 = vmax.f32 %v791_v17, 0.0  ;;  %v794_v24 = vadd.f32 %v9096_v21, %v11158_v15  ;;  %v785_v25 = vpop.f32.mrb[3].mxu0 }
 0x105   : > { %v1258_v26 = vmax.f32 %v783_v20, 0.0  ;;  %v786_v27 = vadd.f32 %v11158_v15, %v785_v25 }
 0x106   : > { %v1261_v28 = vmax.f32 %v794_v24, 0.0  ;;  %9202 = vmatmul.mubr.bf16.gmra.mrb[108].mxu0 %v10768_v19  ;;  %v1492_v30 = vrot.slane %v1260_v23, 1 }
 0x107   : > { %v1259_v29 = vmax.f32 %v786_v27, 0.0  ;;  %9205 = vmatprep.mubr.bf16.mxu0 %v10769_v22  ;;  %v1489_v32 = vrot.slane %v1258_v26, 1 }
 0x108   : > { %v1494_v31 = vrot.slane %v1261_v28, 1 }
 0x109   : > { %v1490_v33 = vrot.slane %v1259_v29, 1  ;;  %v9099_v34 = vpop.f32.mrb[4].mxu0 }
 0x10a   : > { %v1495_v35 = vsel %vm1488_vm0, %v1492_v30, %v1494_v31  ;;  %v807_v36 = vadd.f32 %v9099_v34, %v11158_v15  ;;  %v798_v37 = vpop.f32.mrb[5].mxu0 }
 0x10b   : > { %v1828_v39 = vmax.f32 %v1260_v23, %v1495_v35  ;;  %v1491_v40 = vsel %vm1488_vm0, %v1489_v32, %v1490_v33  ;;  %v1493_v41 = vsel %vm1488_vm0, %v1490_v33, %v1492_v30  ;;  %v799_v42 = vadd.f32 %v11158_v15, %v798_v37  ;;  %v9100_v43 = vpop.f32.mrb[6].mxu0 }
 0x10c   : > { %v1826_v45 = vmax.f32 %v1258_v26, %v1491_v40  ;;  %v1827_v46 = vmax.f32 %v1259_v29, %v1493_v41  ;;  %v1264_v47 = vmax.f32 %v807_v36, 0.0  ;;  %v810_v48 = vadd.f32 %v9100_v43, %v11158_v15  ;;  %v801_v49 = vpop.f32.mrb[7].mxu0 }
 0x10d   : > { %v1262_v50 = vmax.f32 %v799_v42, 0.0  ;;  %v802_v51 = vadd.f32 %v11158_v15, %v801_v49 }
 0x10e   : > { %v1265_v52 = vmax.f32 %v810_v48, 0.0  ;;  %9206 = vmatmul.mubr.bf16.gmra.mrb[112].mxu0 %v10770_v38  ;;  %v1500_v55 = vrot.slane %v1264_v47, 1 }
 0x10f   : > { %v1496_v53 = vrot.slane %v1262_v50, 1  ;;  %v1263_v54 = vmax.f32 %v802_v51, 0.0  ;;  %9209 = vmatprep.mubr.bf16.mxu0 %v10771_v44 }
 0x110   : > { %v1502_v56 = vrot.slane %v1265_v52, 1 }
 0x111   : > { %v1497_v57 = vsel %vm1488_vm0, %v1494_v31, %v1496_v53  ;;  %v1498_v58 = vrot.slane %v1263_v54, 1  ;;  %v9103_v59 = vpop.f32.mrb[8].mxu0 }
 0x112   : > { %v1829_v60 = vmax.f32 %v1261_v28, %v1497_v57  ;;  %v1503_v61 = vsel %vm1488_vm0, %v1500_v55, %v1502_v56  ;;  %v823_v62 = vadd.f32 %v9103_v59, %v11158_v15  ;;  %v814_v63 = vpop.f32.mrb[9].mxu0 }
 0x113   : > { %v1832_v1 = vmax.f32 %v1264_v47, %v1503_v61  ;;  %v1499_v2 = vsel %vm1488_vm0, %v1496_v53, %v1498_v58  ;;  %v1501_v3 = vsel %vm1488_vm0, %v1498_v58, %v1500_v55  ;;  %v815_v4 = vadd.f32 %v11158_v15, %v814_v63  ;;  %v9104_v5 = vpop.f32.mrb[10].mxu0 }
 0x114   : > { %v1830_v6 = vmax.f32 %v1262_v50, %v1499_v2  ;;  %v1831_v7 = vmax.f32 %v1263_v54, %v1501_v3  ;;  %v1268_v8 = vmax.f32 %v823_v62, 0.0  ;;  %v826_v9 = vadd.f32 %v9104_v5, %v11158_v15  ;;  %v817_v10 = vpop.f32.mrb[11].mxu0 }
 0x115   : > { %v1960_v11 = vmax.f32 %v1828_v39, %v1832_v1  ;;  %v1266_v12 = vmax.f32 %v815_v4, 0.0  ;;  %v818_v13 = vadd.f32 %v11158_v15, %v817_v10 }
 0x116   : > { %v1958_v14 = vmax.f32 %v1826_v45, %v1830_v6  ;;  %v1959_v16 = vmax.f32 %v1827_v46, %v1831_v7  ;;  %v1269_v17 = vmax.f32 %v826_v9, 0.0  ;;  %9210 = vmatmul.mubr.bf16.gmra.mrb[116].mxu0 %v10772_v0  ;;  %v1508_v20 = vrot.slane %v1268_v8, 1 }
 0x117   : > { %2072 = vst [vmem:[#allocation2 + $0x10] sm:$0xff] %v1960_v11  ;;  %v1504_v18 = vrot.slane %v1266_v12, 1  ;;  %v1267_v19 = vmax.f32 %v818_v13, 0.0 }
 0x118   : > { %2070 = vst [vmem:[#allocation2] sm:$0xff] %v1958_v14  ;;  %2071 = vst [vmem:[#allocation2 + $0x8] sm:$0xff] %v1959_v16  ;;  %v1510_v21 = vrot.slane %v1269_v17, 1 }
 0x119   : > { %v1505_v22 = vsel %vm1488_vm0, %v1502_v56, %v1504_v18  ;;  %v1506_v23 = vrot.slane %v1267_v19, 1  ;;  %v9107_v24 = vpop.f32.mrb[12].mxu0 }
 0x11a   : > { %v1833_v25 = vmax.f32 %v1265_v52, %v1505_v22  ;;  %v1511_v26 = vsel %vm1488_vm0, %v1508_v20, %v1510_v21  ;;  %v839_v27 = vadd.f32 %v9107_v24, %v11158_v15  ;;  %v830_v28 = vpop.f32.mrb[13].mxu0 }
 0x11b   : > { %v1836_v29 = vmax.f32 %v1268_v8, %v1511_v26  ;;  %v1507_v30 = vsel %vm1488_vm0, %v1504_v18, %v1506_v23  ;;  %v1509_v31 = vsel %vm1488_vm0, %v1506_v23, %v1508_v20  ;;  %v831_v32 = vadd.f32 %v11158_v15, %v830_v28  ;;  %v9108_v33 = vpop.f32.mrb[14].mxu0 }
 0x11c   : > { %v1961_v34 = vmax.f32 %v1829_v60, %v1833_v25  ;;  %v1834_v35 = vmax.f32 %v1266_v12, %v1507_v30  ;;  %v1835_v36 = vmax.f32 %v1267_v19, %v1509_v31  ;;  %v833_v37 = vpop.f32.mrb[15].mxu0  ;;  %v1272_v38 = vmax.f32 %v839_v27, 0.0 }
 0x11d   : > { %v1270_v39 = vmax.f32 %v831_v32, 0.0  ;;  %v842_v40 = vadd.f32 %v9108_v33, %v11158_v15  ;;  %v834_v41 = vadd.f32 %v11158_v15, %v833_v37 }
 0x11e   : > { %2073 = vst [vmem:[#allocation2 + $0x18] sm:$0xff] %v1961_v34  ;;  %v1516_v45 = vrot.slane %v1272_v38, 1 }
 0x11f   : > { %v1512_v42 = vrot.slane %v1270_v39, 1  ;;  %v1273_v43 = vmax.f32 %v842_v40, 0.0  ;;  %v1271_v44 = vmax.f32 %v834_v41, 0.0  ;;  %v2182_v6 = vld [vmem:[#allocation2] ss:$2 sm:$0xff] }
 0x121   : > { %v1513_v46 = vsel %vm1488_vm0, %v1510_v21, %v1512_v42  ;;  %v1518_v47 = vrot.slane %v1273_v43, 1  ;;  %v1514_v48 = vrot.slane %v1271_v44, 1  ;;  %v9111_v49 = vpop.f32.mrb[16].mxu0 }
 0x122   : > { %v1837_v50 = vmax.f32 %v1269_v17, %v1513_v46  ;;  %v855_v51 = vadd.f32 %v9111_v49, %v11158_v15  ;;  %v846_v52 = vpop.f32.mrb[17].mxu0 }
 0x123   : > { %v1519_v53 = vsel %vm1488_vm0, %v1516_v45, %v1518_v47  ;;  %v1515_v54 = vsel %vm1488_vm0, %v1512_v42, %v1514_v48  ;;  %v1517_v55 = vsel %vm1488_vm0, %v1514_v48, %v1516_v45  ;;  %v847_v56 = vadd.f32 %v11158_v15, %v846_v52  ;;  %v9112_v57 = vpop.f32.mrb[18].mxu0 }
 0x124   : > { %v1840_v58 = vmax.f32 %v1272_v38, %v1519_v53  ;;  %v1838_v59 = vmax.f32 %v1270_v39, %v1515_v54  ;;  %v1839_v60 = vmax.f32 %v1271_v44, %v1517_v55  ;;  %v849_v61 = vpop.f32.mrb[19].mxu0  ;;  %v1276_v62 = vmax.f32 %v855_v51, 0.0 }
 0x125   : > { %v1274_v63 = vmax.f32 %v847_v56, 0.0  ;;  %v858_v0 = vadd.f32 %v9112_v57, %v11158_v15  ;;  %v850_v1 = vadd.f32 %v11158_v15, %v849_v61  ;;  %v2184_v2 = vld [vmem:[#allocation2 + $0x10] ss:$2 sm:$0xff] }
 0x126   : > { %v1968_v3 = vmax.f32 %v1836_v29, %v1840_v58  ;;  %v1966_v4 = vmax.f32 %v1834_v35, %v1838_v59  ;;  %v1967_v5 = vmax.f32 %v1835_v36, %v1839_v60  ;;  %v11200_v10 = vpack.c.bf16 %v2184_v2, %v2182_v6 }
 0x127   : > { %v1520_v7 = vrot.slane %v1274_v63, 1  ;;  %v1277_v8 = vmax.f32 %v858_v0, 0.0  ;;  %v1275_v9 = vmax.f32 %v850_v1, 0.0  ;;  %v1524_v11 = vrot.slane %v1276_v62, 1 }
 0x128   : > { %2080 = vst [vmem:[#allocation2 + $0x50] sm:$0xff] %v1968_v3  ;;  %2078 = vst [vmem:[#allocation2 + $0x40] sm:$0xff] %v1966_v4  ;;  %v2286_v20 = vshrl.u32 %v11200_v10, 16  ;;  %v2288_v21 = vshll.u32 %v11200_v10, 16 }
 0x129   : > { %2079 = vst [vmem:[#allocation2 + $0x48] sm:$0xff] %v1967_v5  ;;  %v1521_v12 = vsel %vm1488_vm0, %v1518_v47, %v1520_v7  ;;  %v1526_v13 = vrot.slane %v1277_v8, 1  ;;  %v1522_v14 = vrot.slane %v1275_v9, 1  ;;  %v9115_v16 = vpop.f32.mrb[20].mxu0 }
 0x12a   : > { %v1841_v17 = vmax.f32 %v1273_v43, %v1521_v12  ;;  %v871_v18 = vadd.f32 %v9115_v16, %v11158_v15  ;;  %v862_v19 = vpop.f32.mrb[21].mxu0  ;;  %v11212_v36 = vrot.slane %v2286_v20, 1  ;;  %v11214_v37 = vrot.slane %v2288_v21, 2 }
 0x12b   : > { %v1527_v22 = vsel %vm1488_vm0, %v1524_v11, %v1526_v13  ;;  %v1523_v23 = vsel %vm1488_vm0, %v1520_v7, %v1522_v14  ;;  %v1525_v24 = vsel %vm1488_vm0, %v1522_v14, %v1524_v11  ;;  %v863_v25 = vadd.f32 %v11158_v15, %v862_v19  ;;  %v9116_v26 = vpop.f32.mrb[22].mxu0 }
 0x12c   : > { %v1969_v27 = vmax.f32 %v1837_v50, %v1841_v17  ;;  %v1844_v28 = vmax.f32 %v1276_v62, %v1527_v22  ;;  %v1842_v29 = vmax.f32 %v1274_v63, %v1523_v23  ;;  %v1843_v30 = vmax.f32 %v1275_v9, %v1525_v24  ;;  %v865_v31 = vpop.f32.mrb[23].mxu0 }
 0x12d   : > { %v1280_v32 = vmax.f32 %v871_v18, 0.0  ;;  %v1278_v33 = vmax.f32 %v863_v25, 0.0  ;;  %v874_v34 = vadd.f32 %v9116_v26, %v11158_v15  ;;  %v866_v35 = vadd.f32 %v11158_v15, %v865_v31 }
 0x12e   : > { %2081 = vst [vmem:[#allocation2 + $0x58] sm:$0xff] %v1969_v27  ;;  %v3026_v41 = vor.u32 %v11214_v37, %v11212_v36  ;;  %v2290_v59 = vrot.slane %v2288_v21, 1 }
 0x12f   : > { %v1528_v38 = vrot.slane %v1278_v33, 1  ;;  %v1281_v39 = vmax.f32 %v874_v34, 0.0  ;;  %v1279_v40 = vmax.f32 %v866_v35, 0.0  ;;  %v1532_v42 = vrot.slane %v1280_v32, 1 }
 0x130   : > { %v2186_v4 = vld [vmem:[#allocation2 + $0x40] ss:$2 sm:$0xff]  ;;  %v2291_v9 = vor.u32 %v2290_v59, %v2286_v20 }
 0x131   : > { %v1529_v43 = vsel %vm1488_vm0, %v1526_v13, %v1528_v38  ;;  %v1534_v44 = vrot.slane %v1281_v39, 1  ;;  %v1530_v45 = vrot.slane %v1279_v40, 1  ;;  %v9119_v46 = vpop.f32.mrb[24].mxu0 }
 0x132   : > { %v1845_v47 = vmax.f32 %v1277_v8, %v1529_v43  ;;  %v887_v48 = vadd.f32 %v9119_v46, %v11158_v15  ;;  %v878_v49 = vpop.f32.mrb[25].mxu0 }
 0x133   : > { %v1535_v50 = vsel %vm1488_vm0, %v1532_v42, %v1534_v44  ;;  %v1531_v51 = vsel %vm1488_vm0, %v1528_v38, %v1530_v45  ;;  %v1533_v52 = vsel %vm1488_vm0, %v1530_v45, %v1532_v42  ;;  %v879_v53 = vadd.f32 %v11158_v15, %v878_v49  ;;  %v9120_v54 = vpop.f32.mrb[26].mxu0 }
 0x134   : > { %v1848_v55 = vmax.f32 %v1280_v32, %v1535_v50  ;;  %v1846_v56 = vmax.f32 %v1278_v33, %v1531_v51  ;;  %v1847_v57 = vmax.f32 %v1279_v40, %v1533_v52  ;;  %v881_v58 = vpop.f32.mrb[27].mxu0  ;;  %v1284_v60 = vmax.f32 %v887_v48, 0.0 }
 0x135   : > { %v1282_v61 = vmax.f32 %v879_v53, 0.0  ;;  %v890_v62 = vadd.f32 %v9120_v54, %v11158_v15  ;;  %v882_v63 = vadd.f32 %v11158_v15, %v881_v58  ;;  %v2188_v0 = vld [vmem:[#allocation2 + $0x50] ss:$2 sm:$0xff] }
 0x136   : > { %v1976_v1 = vmax.f32 %v1844_v28, %v1848_v55  ;;  %v1974_v2 = vmax.f32 %v1842_v29, %v1846_v56  ;;  %v1975_v3 = vmax.f32 %v1843_v30, %v1847_v57  ;;  %v11226_v8 = vpack.c.bf16 %v2188_v0, %v2186_v4 }
 0x137   : > { %v1536_v5 = vrot.slane %v1282_v61, 1  ;;  %v1285_v6 = vmax.f32 %v890_v62, 0.0  ;;  %v1283_v7 = vmax.f32 %v882_v63, 0.0  ;;  %v1540_v11 = vrot.slane %v1284_v60, 1 }
 0x138   : > { %2088 = vst [vmem:[#allocation2 + $0x90] sm:$0xff] %v1976_v1  ;;  %2086 = vst [vmem:[#allocation2 + $0x80] sm:$0xff] %v1974_v2  ;;  %v2293_v21 = vshll.u32 %v11226_v8, 16  ;;  %v2297_v22 = vshrl.u32 %v11226_v8, 16 }
 0x139   : > { %2087 = vst [vmem:[#allocation2 + $0x88] sm:$0xff] %v1975_v3  ;;  %v1537_v12 = vsel %vm1488_vm0, %v1534_v44, %v1536_v5  ;;  %v1542_v13 = vrot.slane %v1285_v6, 1  ;;  %v1538_v14 = vrot.slane %v1283_v7, 1  ;;  %v9123_v16 = vpop.f32.mrb[28].mxu0 }
 0x13a   : > { %v1849_v17 = vmax.f32 %v1281_v39, %v1537_v12  ;;  %v903_v18 = vadd.f32 %v9123_v16, %v11158_v15  ;;  %v894_v19 = vpop.f32.mrb[29].mxu0  ;;  %v2295_v38 = vrot.slane %v2293_v21, 1  ;;  %v3027_v52 = vrot.slane %v2297_v22, 1 }
 0x13b   : > { %v1543_v23 = vsel %vm1488_vm0, %v1540_v11, %v1542_v13  ;;  %v1539_v24 = vsel %vm1488_vm0, %v1536_v5, %v1538_v14  ;;  %v1541_v20 = vsel %vm1488_vm0, %v1538_v14, %v1540_v11  ;;  %v895_v25 = vadd.f32 %v11158_v15, %v894_v19  ;;  %v9124_v26 = vpop.f32.mrb[30].mxu0 }
 0x13c   : > { %v1977_v27 = vmax.f32 %v1845_v47, %v1849_v17  ;;  %v1852_v28 = vmax.f32 %v1284_v60, %v1543_v23  ;;  %v1850_v29 = vmax.f32 %v1282_v61, %v1539_v24  ;;  %v1851_v30 = vmax.f32 %v1283_v7, %v1541_v20  ;;  %v897_v31 = vpop.f32.mrb[31].mxu0 }
 0x13d   : > { %v1288_v32 = vmax.f32 %v903_v18, 0.0  ;;  %v1286_v33 = vmax.f32 %v895_v25, 0.0  ;;  %v906_v34 = vadd.f32 %v9124_v26, %v11158_v15  ;;  %v898_v35 = vadd.f32 %v11158_v15, %v897_v31  ;;  %v10789_v18 = vld [vmem:[%s12942_s2] sm:$0xff]  }
 0x13e   : > { %2089 = vst [vmem:[#allocation2 + $0x98] sm:$0xff] %v1977_v27  ;;  %v2296_v43 = vsel %vm2284_vm1, %v2291_v9, %v2295_v38  ;;  %v3028_v53 = vrot.slane %v2293_v21, 2  ;;  %v2299_v14 = vor.u32 %v2297_v22, %v2295_v38  ;;  %9253 = vmatprep.subr.bf16.mxu0 %v10789_v18 }
 0x13f   : > { %v1544_v39 = vrot.slane %v1286_v33, 1  ;;  %v1289_v40 = vmax.f32 %v906_v34, 0.0  ;;  %v1287_v42 = vmax.f32 %v898_v35, 0.0  ;;  %v1548_v44 = vrot.slane %v1288_v32, 1  ;;  %9229 = vmatprep.mubr.bf16.mxu0 %v2296_v43 }
 0x140   : > { %v2190_v3 = vld [vmem:[#allocation2 + $0x80] ss:$2 sm:$0xff]  ;;  %v11260_v19 = vor.u32 %v3028_v53, %v3027_v52 }
 0x141   : > { %v1545_v45 = vsel %vm1488_vm0, %v1542_v13, %v1544_v39  ;;  %v1550_v46 = vrot.slane %v1289_v40, 1  ;;  %v1546_v47 = vrot.slane %v1287_v42, 1  ;;  %v9127_v48 = vpop.f32.mrb[32].mxu0 }
 0x142   : > { %v11240_v49 = vmax.f32 %v1285_v6, %v1545_v45  ;;  %v919_v50 = vadd.f32 %v9127_v48, %v11158_v15  ;;  %v910_v51 = vpop.f32.mrb[33].mxu0  ;;  %v11291_v52 = vsel %vm3023_vm2, %v3026_v41, %v11260_v19 }
 0x143   : > { %v1551_v54 = vsel %vm1488_vm0, %v1548_v44, %v1550_v46  ;;  %v1547_v55 = vsel %vm1488_vm0, %v1544_v39, %v1546_v47  ;;  %v1549_v56 = vsel %vm1488_vm0, %v1546_v47, %v1548_v44  ;;  %v911_v57 = vadd.f32 %v11158_v15, %v910_v51  ;;  %v9128_v58 = vpop.f32.mrb[34].mxu0  ;;  %v10790_v47 = vld [vmem:[%s12942_s2 + $0x8] sm:$0xff]  }
 0x144   : > { %v1856_v59 = vmax.f32 %v1288_v32, %v1551_v54  ;;  %v1854_v60 = vmax.f32 %v1286_v33, %v1547_v55  ;;  %v1855_v61 = vmax.f32 %v1287_v42, %v1549_v56  ;;  %v913_v62 = vpop.f32.mrb[35].mxu0  ;;  %v1292_v63 = vmax.f32 %v919_v50, 0.0 }
 0x145   : > { %v1290_v0 = vmax.f32 %v911_v57, 0.0  ;;  %v11248_v1 = vadd.f32 %v9128_v58, %v11158_v15  ;;  %v914_v2 = vadd.f32 %v11158_v15, %v913_v62  ;;  %v2192_v4 = vld [vmem:[#allocation2 + $0x90] ss:$2 sm:$0xff] }
 0x146   : > { %v1984_v5 = vmax.f32 %v1852_v28, %v1856_v59  ;;  %v1982_v6 = vmax.f32 %v1850_v29, %v1854_v60  ;;  %v1983_v7 = vmax.f32 %v1851_v30, %v1855_v61  ;;  %v11251_v9 = vpack.c.bf16 %v2192_v4, %v2190_v3  ;;  %v10791_v59 = vld [vmem:[%s12942_s2 + $0x10] sm:$0xff]  }
 0x147   : > { %v1552_v11 = vrot.slane %v1290_v0, 1  ;;  %v1293_v12 = vmax.f32 %v11248_v1, 0.0  ;;  %v1291_v13 = vmax.f32 %v914_v2, 0.0  ;;  %v1556_v21 = vrot.slane %v1292_v63, 1 }
 0x148   : > { %2096 = vst [vmem:[#allocation2 + $0xd0] sm:$0xff] %v1984_v5  ;;  %2094 = vst [vmem:[#allocation2 + $0xc0] sm:$0xff] %v1982_v6  ;;  %9629 = vmatprep.mubr.bf16.mxu1 %v11251_v9  ;;  %v2301_v16 = vshll.u32 %v11251_v9, 16  ;;  %v2305_v17 = vshrl.u32 %v11251_v9, 16 }
 0x149   : > { %2095 = vst [vmem:[#allocation2 + $0xc8] sm:$0xff] %v1983_v7  ;;  %v1553_v23 = vsel %vm1488_vm0, %v1550_v46, %v1552_v11  ;;  %v1558_v24 = vrot.slane %v1293_v12, 1  ;;  %v1554_v20 = vrot.slane %v1291_v13, 1  ;;  %v9131_v25 = vpop.f32.mrb[36].mxu0 }
 0x14a   : > { %v1857_v26 = vmax.f32 %v1289_v40, %v1553_v23  ;;  %v935_v22 = vadd.f32 %v9131_v25, %v11158_v15  ;;  %v926_v27 = vpop.f32.mrb[37].mxu0  ;;  %v11264_v28 = vrot.slane %v2301_v16, 1  ;;  %v3031_v29 = vrot.slane %v2305_v17, 1 }
 0x14b   : > { %v1559_v30 = vsel %vm1488_vm0, %v1556_v21, %v1558_v24  ;;  %v1555_v31 = vsel %vm1488_vm0, %v1552_v11, %v1554_v20  ;;  %v1557_v32 = vsel %vm1488_vm0, %v1554_v20, %v1556_v21  ;;  %v927_v33 = vadd.f32 %v11158_v15, %v926_v27  ;;  %v9132_v34 = vpop.f32.mrb[38].mxu0 }
 0x14c   : > { %v1985_v35 = vmax.f32 %v11240_v49, %v1857_v26  ;;  %v1860_v38 = vmax.f32 %v1292_v63, %v1559_v30  ;;  %v1858_v39 = vmax.f32 %v1290_v0, %v1555_v31  ;;  %v1859_v40 = vmax.f32 %v1291_v13, %v1557_v32  ;;  %v929_v42 = vpop.f32.mrb[39].mxu0 }
 0x14d   : > { %v1296_v43 = vmax.f32 %v935_v22, 0.0  ;;  %v1294_v44 = vmax.f32 %v927_v33, 0.0  ;;  %v11274_v45 = vadd.f32 %v9132_v34, %v11158_v15  ;;  %v930_v46 = vadd.f32 %v11158_v15, %v929_v42 }
 0x14e   : > { %2097 = vst [vmem:[#allocation2 + $0xd8] sm:$0xff] %v1985_v35  ;;  %v11282_v48 = vsel %vm2284_vm1, %v2299_v14, %v11264_v28  ;;  %v3032_v53 = vrot.slane %v2301_v16, 2  ;;  %v10793_v16 = vld [vmem:[%s12942_s2 + $0x18] sm:$0xff]   ;;  %v2307_v22 = vor.u32 %v2305_v17, %v11264_v28  ;;  %v10795_v17 = vld [vmem:[%s12942_s2 + $0x20] sm:$0xff]  }
 0x14f   : > { %12977 = vst [vmem:[#allocation3_spill] sm:$0xff] %v11282_v48  ;;  %v1560_v49 = vrot.slane %v1294_v44, 1  ;;  %v1297_v50 = vmax.f32 %v11274_v45, 0.0  ;;  %v1295_v51 = vmax.f32 %v930_v46, 0.0  ;;  %9230 = vmatmul.mubr.bf16.vlgmr.msra.gmra.mrb[120].mxu0 %v11282_v48  ;;  %v1564_v54 = vrot.slane %v1296_v43, 1 }
 0x150   : > { %9254 = vmatpush3.bf16.msra.mxu0 %v10789_v18  ;;  %v11300_v37 = vor.u32 %v3032_v53, %v3031_v29  ;;  %v2194_v6 = vld [vmem:[#allocation2 + $0xc0] ss:$2 sm:$0xff] }
 0x151   : > { %v1561_v55 = vsel %vm1488_vm0, %v1558_v24, %v1560_v49  ;;  %v1566_v56 = vrot.slane %v1297_v50, 1  ;;  %v1562_v57 = vrot.slane %v1295_v51, 1  ;;  %v9135_v58 = vpop.f32.mrb[40].mxu0  ;;  %9255 = vmatprep.subr.bf16.mxu0 %v10790_v47  ;;  %v10792_v29 = vld [vmem:[%s12942_s2 + $0x2c0] sm:$0xff]  }
 0x152   : > { %v11297_v60 = vmax.f32 %v1293_v12, %v1561_v55  ;;  %v951_v61 = vadd.f32 %v9135_v58, %v11158_v15  ;;  %v942_v36 = vpop.f32.mrb[41].mxu0  ;;  %v11327_v30 = vsel %vm3023_vm2, %v11260_v19, %v11300_v37  ;;  %9653 = vmatprep.subr.bf16.mxu1 %v10792_v29  ;;  %v10796_v58 = vld [vmem:[%s12942_s2 + $0x28] sm:$0xff]  }
 0x153   : > { %v1567_v41 = vsel %vm1488_vm0, %v1564_v54, %v1566_v56  ;;  %v1563_v62 = vsel %vm1488_vm0, %v1560_v49, %v1562_v57  ;;  %v1565_v63 = vsel %vm1488_vm0, %v1562_v57, %v1564_v54  ;;  %v943_v0 = vadd.f32 %v11158_v15, %v942_v36  ;;  %v9136_v1 = vpop.f32.mrb[42].mxu0 }
 0x154   : > { %v1864_v2 = vmax.f32 %v1296_v43, %v1567_v41  ;;  %v1862_v3 = vmax.f32 %v1294_v44, %v1563_v62  ;;  %v1863_v4 = vmax.f32 %v1295_v51, %v1565_v63  ;;  %v945_v5 = vpop.f32.mrb[43].mxu0  ;;  %9256 = vmatpush3.bf16.msra.mxu0 %v10790_v47  ;;  %v1300_v7 = vmax.f32 %v951_v61, 0.0  ;;  %v10794_v41 = vld [vmem:[%s12942_s2 + $0x2c8] sm:$0xff]  }
 0x155   : > { %v1298_v11 = vmax.f32 %v943_v0, 0.0  ;;  %v11307_v12 = vadd.f32 %v9136_v1, %v11158_v15  ;;  %v946_v13 = vadd.f32 %v11158_v15, %v945_v5  ;;  %v2196_v14 = vld [vmem:[#allocation2 + $0xd0] ss:$2 sm:$0xff]  ;;  %9257 = vmatprep.subr.bf16.mxu0 %v10791_v59 }
 0x156   : > { %v1992_v18 = vmax.f32 %v1860_v38, %v1864_v2  ;;  %v1990_v21 = vmax.f32 %v1858_v39, %v1862_v3  ;;  %v1991_v23 = vmax.f32 %v1859_v40, %v1863_v4  ;;  %v11313_v24 = vpack.c.bf16 %v2196_v14, %v2194_v6 }
 0x157   : > { %v1568_v20 = vrot.slane %v1298_v11, 1  ;;  %v1301_v25 = vmax.f32 %v11307_v12, 0.0  ;;  %v1299_v26 = vmax.f32 %v946_v13, 0.0  ;;  %v1572_v31 = vrot.slane %v1300_v7, 1 }
 0x158   : > { %2104 = vst [vmem:[#allocation2 + $0x110] sm:$0xff] %v1992_v18  ;;  %2102 = vst [vmem:[#allocation2 + $0x100] sm:$0xff] %v1990_v21  ;;  %9630 = vmatmul.mubr.bf16.vlgmr.msra.gmra.mrb[0].mxu1 %v11313_v24  ;;  %v2309_v27 = vshll.u32 %v11313_v24, 16  ;;  %9258 = vmatpush3.bf16.msra.mxu0 %v10791_v59  ;;  %v2313_v19 = vshrl.u32 %v11313_v24, 16 }
 0x159   : > { %2103 = vst [vmem:[#allocation2 + $0x108] sm:$0xff] %v1991_v23  ;;  %v1569_v32 = vsel %vm1488_vm0, %v1566_v56, %v1568_v20  ;;  %v1574_v33 = vrot.slane %v1301_v25, 1  ;;  %v1570_v34 = vrot.slane %v1299_v26, 1  ;;  %v9139_v35 = vpop.f32.mrb[44].mxu0  ;;  %9259 = vmatprep.subr.bf16.mxu0 %v10793_v16  ;;  %9654 = vmatpush3.bf16.msra.mxu1 %v10792_v29 }
 0x15a   : > { %v1865_v28 = vmax.f32 %v1297_v50, %v1569_v32  ;;  %v967_v38 = vadd.f32 %v9139_v35, %v11158_v15  ;;  %v958_v39 = vpop.f32.mrb[45].mxu0  ;;  %v11334_v40 = vrot.slane %v2309_v27, 1  ;;  %v3035_v62 = vrot.slane %v2313_v19, 1  ;;  %9655 = vmatprep.subr.bf16.mxu1 %v10794_v41 }
 0x15b   : > { %v1575_v42 = vsel %vm1488_vm0, %v1572_v31, %v1574_v33  ;;  %v1571_v43 = vsel %vm1488_vm0, %v1568_v20, %v1570_v34  ;;  %v1573_v44 = vsel %vm1488_vm0, %v1570_v34, %v1572_v31  ;;  %v959_v45 = vadd.f32 %v11158_v15, %v958_v39  ;;  %v9140_v46 = vpop.f32.mrb[46].mxu0 }
 0x15c   : > { %v1993_v47 = vmax.f32 %v11297_v60, %v1865_v28  ;;  %v1868_v49 = vmax.f32 %v1300_v7, %v1575_v42  ;;  %v1866_v50 = vmax.f32 %v1298_v11, %v1571_v43  ;;  %v1867_v51 = vmax.f32 %v1299_v26, %v1573_v44  ;;  %v961_v53 = vpop.f32.mrb[47].mxu0  ;;  %9260 = vmatpush3.bf16.msra.mxu0 %v10793_v16  ;;  %v10798_v11 = vld [vmem:[%s12942_s2 + $0x30] sm:$0xff]  }
 0x15d   : > { %v1304_v54 = vmax.f32 %v967_v38, 0.0  ;;  %v1302_v55 = vmax.f32 %v959_v45, 0.0  ;;  %v11343_v56 = vadd.f32 %v9140_v46, %v11158_v15  ;;  %v962_v57 = vadd.f32 %v11158_v15, %v961_v53  ;;  %9261 = vmatprep.subr.bf16.mxu0 %v10795_v17  ;;  %9656 = vmatpush3.bf16.msra.mxu1 %v10794_v41  ;;  %v10800_v38 = vld [vmem:[%s12942_s2 + $0x38] sm:$0xff]   ;;  %v10797_v46 = vld [vmem:[%s12942_s2 + $0x2d0] sm:$0xff]  }
 0x15e   : > { %2105 = vst [vmem:[#allocation2 + $0x118] sm:$0xff] %v1993_v47  ;;  %v11351_v59 = vsel %vm2284_vm1, %v2307_v22, %v11334_v40  ;;  %v3036_v63 = vrot.slane %v2309_v27, 2  ;;  %v2315_v44 = vor.u32 %v2313_v19, %v11334_v40  ;;  %v10799_v47 = vld [vmem:[%s12942_s2 + $0x2d8] sm:$0xff]   ;;  %9657 = vmatprep.subr.bf16.mxu1 %v10797_v46 }
 0x15f   : > { %v1576_v60 = vrot.slane %v1302_v55, 1  ;;  %v1305_v61 = vmax.f32 %v11343_v56, 0.0  ;;  %v1303_v36 = vmax.f32 %v962_v57, 0.0  ;;  %9233 = vmatprep.mubr.bf16.mxu0 %v11351_v59  ;;  %v1580_v0 = vrot.slane %v1304_v54, 1 }
 0x160   : > { %9262 = vmatpush3.bf16.msra.mxu0 %v10795_v17  ;;  %v11367_v12 = vor.u32 %v3036_v63, %v3035_v62  ;;  %v2198_v22 = vld [vmem:[#allocation2 + $0x100] ss:$2 sm:$0xff] }
 0x161   : > { %v1577_v1 = vsel %vm1488_vm0, %v1574_v33, %v1576_v60  ;;  %v1582_v2 = vrot.slane %v1305_v61, 1  ;;  %v1578_v3 = vrot.slane %v1303_v36, 1  ;;  %v9143_v4 = vpop.f32.mrb[48].mxu0  ;;  %9263 = vmatprep.subr.bf16.mxu0 %v10796_v58  ;;  %9658 = vmatpush3.bf16.msra.mxu1 %v10797_v46 }
 0x162   : > { %v11361_v5 = vmax.f32 %v1301_v25, %v1577_v1  ;;  %v983_v6 = vadd.f32 %v9143_v4, %v11158_v15  ;;  %v974_v7 = vpop.f32.mrb[49].mxu0  ;;  %9659 = vmatprep.subr.bf16.mxu1 %v10799_v47 }
 0x163   : > { %v1583_v13 = vsel %vm1488_vm0, %v1580_v0, %v1582_v2  ;;  %v1579_v14 = vsel %vm1488_vm0, %v1576_v60, %v1578_v3  ;;  %v1581_v16 = vsel %vm1488_vm0, %v1578_v3, %v1580_v0  ;;  %v975_v18 = vadd.f32 %v11158_v15, %v974_v7  ;;  %v9144_v21 = vpop.f32.mrb[50].mxu0 }
 0x164   : > { %v1872_v23 = vmax.f32 %v1304_v54, %v1583_v13  ;;  %v1870_v20 = vmax.f32 %v1302_v55, %v1579_v14  ;;  %v1871_v25 = vmax.f32 %v1303_v36, %v1581_v16  ;;  %v977_v26 = vpop.f32.mrb[51].mxu0  ;;  %9264 = vmatpush3.bf16.msra.mxu0 %v10796_v58  ;;  %v1308_v27 = vmax.f32 %v983_v6, 0.0  ;;  %v10801_v16 = vld [vmem:[%s12942_s2 + $0x2e0] sm:$0xff]  }
 0x165   : > { %v1306_v29 = vmax.f32 %v975_v18, 0.0  ;;  %v11374_v31 = vadd.f32 %v9144_v21, %v11158_v15  ;;  %v978_v32 = vadd.f32 %v11158_v15, %v977_v26  ;;  %v2200_v33 = vld [vmem:[#allocation2 + $0x110] ss:$2 sm:$0xff]  ;;  %9265 = vmatprep.subr.bf16.mxu0 %v10798_v11  ;;  %9660 = vmatpush3.bf16.msra.mxu1 %v10799_v47 }
 0x166   : > { %v2000_v34 = vmax.f32 %v1868_v49, %v1872_v23  ;;  %v1998_v35 = vmax.f32 %v1866_v50, %v1870_v20  ;;  %v1999_v17 = vmax.f32 %v1867_v51, %v1871_v25  ;;  %v11377_v28 = vpack.c.bf16 %v2200_v33, %v2198_v22  ;;  %9661 = vmatprep.subr.bf16.mxu1 %v10801_v16 }
 0x167   : > { %v1584_v39 = vrot.slane %v1306_v29, 1  ;;  %v1309_v42 = vmax.f32 %v11374_v31, 0.0  ;;  %v1307_v43 = vmax.f32 %v978_v32, 0.0  ;;  %v11397_v49 = vsel %vm3023_vm2, %v11300_v37, %v11367_v12 }
 0x168   : > { %2112 = vst [vmem:[#allocation2 + $0x150] sm:$0xff] %v2000_v34  ;;  %2110 = vst [vmem:[#allocation2 + $0x140] sm:$0xff] %v1998_v35  ;;  %9633 = vmatprep.mubr.bf16.mxu1 %v11377_v28  ;;  %v2317_v45 = vshll.u32 %v11377_v28, 16  ;;  %9266 = vmatpush3.bf16.msra.mxu0 %v10798_v11  ;;  %v1588_v50 = vrot.slane %v1308_v27, 1  ;;  %v2321_v58 = vshrl.u32 %v11377_v28, 16 }
 0x169   : > { %2111 = vst [vmem:[#allocation2 + $0x148] sm:$0xff] %v1999_v17  ;;  %v1585_v51 = vsel %vm1488_vm0, %v1582_v2, %v1584_v39  ;;  %v1590_v40 = vrot.slane %v1309_v42, 1  ;;  %v1586_v19 = vrot.slane %v1307_v43, 1  ;;  %v9147_v53 = vpop.f32.mrb[52].mxu0  ;;  %9267 = vmatprep.subr.bf16.mxu0 %v10800_v38  ;;  %9662 = vmatpush3.bf16.msra.mxu1 %v10801_v16 }
 0x16a   : > { %v1873_v54 = vmax.f32 %v1305_v61, %v1585_v51  ;;  %v999_v55 = vadd.f32 %v9147_v53, %v11158_v15  ;;  %v990_v56 = vpop.f32.mrb[53].mxu0  ;;  %v11401_v57 = vrot.slane %v2317_v45, 1  ;;  %v3040_v18 = vrot.slane %v2317_v45, 2 }
 0x16b   : > { %v1591_v60 = vsel %vm1488_vm0, %v1588_v50, %v1590_v40  ;;  %v1587_v37 = vsel %vm1488_vm0, %v1584_v39, %v1586_v19  ;;  %v1589_v36 = vsel %vm1488_vm0, %v1586_v19, %v1588_v50  ;;  %v991_v41 = vadd.f32 %v11158_v15, %v990_v56  ;;  %v9148_v62 = vpop.f32.mrb[54].mxu0  ;;  %v10802_v56 = vld [vmem:[%s12942_s2 + $0x2e8] sm:$0xff]  }
 0x16c   : > { %v2001_v61 = vmax.f32 %v11361_v5, %v1873_v54  ;;  %v1876_v63 = vmax.f32 %v1308_v27, %v1591_v60  ;;  %v1874_v0 = vmax.f32 %v1306_v29, %v1587_v37  ;;  %v1875_v1 = vmax.f32 %v1307_v43, %v1589_v36  ;;  %v993_v2 = vpop.f32.mrb[55].mxu0  ;;  %9268 = vmatpush3.bf16.msra.mxu0 %v10800_v38  ;;  %v11430_v27 = vld [vmem:[%s12943_s3] ss:$0 sm:$0xff]  ;;  %v10803_v60 = vld [vmem:[%s12942_s2 + $0x2f0] sm:$0xff]  }
 0x16d   : > { %v1312_v3 = vmax.f32 %v999_v55, 0.0  ;;  %v1310_v4 = vmax.f32 %v991_v41, 0.0  ;;  %v11410_v6 = vadd.f32 %v9148_v62, %v11158_v15  ;;  %v994_v7 = vadd.f32 %v11158_v15, %v993_v2  ;;  %9663 = vmatprep.subr.bf16.mxu1 %v10802_v56 }
 0x16e   : > { %2113 = vst [vmem:[#allocation2 + $0x158] sm:$0xff] %v2001_v61  ;;  %v11415_v11 = vsel %vm2284_vm1, %v2315_v44, %v11401_v57  ;;  %v3039_v15 = vrot.slane %v2321_v58, 1  ;;  %v2323_v62 = vor.u32 %v2321_v58, %v11401_v57  ;;  %9664 = vmatpush3.bf16.msra.mxu1 %v10802_v56 }
 0x16f   : > { %v1592_v13 = vrot.slane %v1310_v4, 1  ;;  %v1313_v5 = vmax.f32 %v11410_v6, 0.0  ;;  %v1311_v14 = vmax.f32 %v994_v7, 0.0  ;;  %9234 = vmatmul.mubr.bf16.gmra.mrb[124].mxu0 %v11415_v11  ;;  %v1596_v21 = vrot.slane %v1312_v3, 1  ;;  %9665 = vmatprep.subr.bf16.mxu1 %v10803_v60 }
 0x170   : > { %v11433_v32 = vor.u32 %v3040_v18, %v3039_v15  ;;  %v2202_v45 = vld [vmem:[#allocation2 + $0x140] ss:$2 sm:$0xff] }
 0x171   : > { %v1593_v23 = vsel %vm1488_vm0, %v1590_v40, %v1592_v13  ;;  %v1598_v20 = vrot.slane %v1313_v5, 1  ;;  %v1594_v25 = vrot.slane %v1311_v14, 1  ;;  %v9151_v26 = vpop.f32.mrb[56].mxu0 }
 0x172   : > { %v11425_v22 = vmax.f32 %v1309_v42, %v1593_v23  ;;  %v1015_v29 = vadd.f32 %v11430_v27, %v9151_v26  ;;  %v1006_v31 = vpop.f32.mrb[57].mxu0  ;;  %9666 = vmatpush3.bf16.msra.mxu1 %v10803_v60 }
 0x173   : > { %v1599_v33 = vsel %vm1488_vm0, %v1596_v21, %v1598_v20  ;;  %v1595_v34 = vsel %vm1488_vm0, %v1592_v13, %v1594_v25  ;;  %v1597_v35 = vsel %vm1488_vm0, %v1594_v25, %v1596_v21  ;;  %v1007_v17 = vadd.f32 %v11430_v27, %v1006_v31  ;;  %v9152_v38 = vpop.f32.mrb[58].mxu0  ;;  %v10805_v21 = vld [vmem:[%s12942_s2 + $0x2f8] sm:$0xff]  }
 0x174   : > { %v1880_v39 = vmax.f32 %v1312_v3, %v1599_v33  ;;  %v1878_v42 = vmax.f32 %v1310_v4, %v1595_v34  ;;  %v1879_v43 = vmax.f32 %v1311_v14, %v1597_v35  ;;  %v1009_v44 = vpop.f32.mrb[59].mxu0  ;;  %v1316_v46 = vmax.f32 %v1015_v29, 0.0  ;;  %9667 = vmatprep.subr.bf16.mxu1 %v10805_v21 }
 0x175   : > { %v1314_v47 = vmax.f32 %v1007_v17, 0.0  ;;  %v11440_v50 = vadd.f32 %v11430_v27, %v9152_v38  ;;  %v1010_v51 = vadd.f32 %v11430_v27, %v1009_v44  ;;  %v2204_v40 = vld [vmem:[#allocation2 + $0x150] ss:$2 sm:$0xff] }
 0x176   : > { %v2008_v19 = vmax.f32 %v1876_v63, %v1880_v39  ;;  %v2006_v53 = vmax.f32 %v1874_v0, %v1878_v42  ;;  %v2007_v54 = vmax.f32 %v1875_v1, %v1879_v43  ;;  %v11443_v55 = vpack.c.bf16 %v2204_v40, %v2202_v45  ;;  %9668 = vmatpush3.bf16.msra.mxu1 %v10805_v21 }
 0x177   : > { %v1600_v37 = vrot.slane %v1314_v47, 1  ;;  %v1317_v36 = vmax.f32 %v11440_v50, 0.0  ;;  %v1315_v41 = vmax.f32 %v1010_v51, 0.0  ;;  %v11460_v63 = vsel %vm3023_vm2, %v11367_v12, %v11433_v32  ;;  %v10804_v12 = vld [vmem:[%s12942_s2 + $0x80] sm:$0xff]  }
 0x178   : > { %12978 = vst [vmem:[#allocation4_spill] sm:$0xff] %v11443_v55  ;;  %2120 = vst [vmem:[#allocation2 + $0x190] sm:$0xff] %v2008_v19  ;;  %9634 = vmatmul.mubr.bf16.gmra.mrb[4].mxu1 %v11443_v55  ;;  %v2325_v61 = vshll.u32 %v11443_v55, 16  ;;  %v1604_v0 = vrot.slane %v1316_v46, 1  ;;  %v2329_v13 = vshrl.u32 %v11443_v55, 16  ;;  %9293 = vmatprep.subr.bf16.mxu0 %v10804_v12 }
 0x179   : > { %2118 = vst [vmem:[#allocation2 + $0x180] sm:$0xff] %v2006_v53  ;;  %2119 = vst [vmem:[#allocation2 + $0x188] sm:$0xff] %v2007_v54  ;;  %v1601_v1 = vsel %vm1488_vm0, %v1598_v20, %v1600_v37  ;;  %v1606_v2 = vrot.slane %v1317_v36, 1  ;;  %v1602_v3 = vrot.slane %v1315_v41, 1  ;;  %v9155_v4 = vpop.f32.mrb[60].mxu0 }
 0x17a   : > { %v1881_v6 = vmax.f32 %v1313_v5, %v1601_v1  ;;  %v1031_v57 = vadd.f32 %v11430_v27, %v9155_v4  ;;  %v1022_v58 = vpop.f32.mrb[61].mxu0  ;;  %v11464_v7 = vrot.slane %v2325_v61, 1  ;;  %v3043_v42 = vrot.slane %v2329_v13, 1 }
 0x17b   : > { %v1607_v14 = vsel %vm1488_vm0, %v1604_v0, %v1606_v2  ;;  %v1603_v16 = vsel %vm1488_vm0, %v1600_v37, %v1602_v3  ;;  %v1605_v15 = vsel %vm1488_vm0, %v1602_v3, %v1604_v0  ;;  %v1023_v5 = vadd.f32 %v11430_v27, %v1022_v58  ;;  %v9156_v18 = vpop.f32.mrb[62].mxu0 }
 0x17c   : > { %v2009_v23 = vmax.f32 %v11425_v22, %v1881_v6  ;;  %v1884_v20 = vmax.f32 %v1316_v46, %v1607_v14  ;;  %v1882_v25 = vmax.f32 %v1314_v47, %v1603_v16  ;;  %v1883_v26 = vmax.f32 %v1315_v41, %v1605_v15  ;;  %v1025_v29 = vpop.f32.mrb[63].mxu0 }
 0x17d   : > { %v1320_v31 = vmax.f32 %v1031_v57, 0.0  ;;  %v1318_v33 = vmax.f32 %v1023_v5, 0.0  ;;  %v1034_v34 = vadd.f32 %v11430_v27, %v9156_v18  ;;  %v1026_v35 = vadd.f32 %v11430_v27, %v1025_v29 }
 0x17e   : > { %2121 = vst [vmem:[#allocation2 + $0x198] sm:$0xff] %v2009_v23  ;;  %v11482_v17 = vsel %vm2284_vm1, %v2323_v62, %v11464_v7  ;;  %v3044_v43 = vrot.slane %v2325_v61, 2  ;;  %v10808_v62 = vld [vmem:[%s12942_s2 + $0x300] sm:$0xff]   ;;  %v2331_v23 = vor.u32 %v2329_v13, %v11464_v7 }
 0x17f   : > { %v1608_v38 = vrot.slane %v1318_v33, 1  ;;  %v1321_v22 = vmax.f32 %v1034_v34, 0.0  ;;  %v1319_v39 = vmax.f32 %v1026_v35, 0.0  ;;  %9237 = vmatprep.mubr.bf16.mxu0 %v11482_v17  ;;  %v1612_v44 = vrot.slane %v1320_v31, 1  ;;  %9693 = vmatprep.subr.bf16.mxu1 %v10808_v62 }
 0x180   : > { %v11489_v53 = vor.u32 %v3044_v43, %v3043_v42 }
 0x181   : > { %v1609_v45 = vsel %vm1488_vm0, %v1606_v2, %v1608_v38  ;;  %v1614_v46 = vrot.slane %v1321_v22, 1  ;;  %v1610_v47 = vrot.slane %v1319_v39, 1  ;;  %v9159_v50 = vpop.f32.mrb[64].mxu0  ;;  %v2206_v2 = vld [vmem:[#allocation2 + $0x180] ss:$2 sm:$0xff] }
 0x182   : > { %v1885_v51 = vmax.f32 %v1317_v36, %v1609_v45  ;;  %v1047_v40 = vadd.f32 %v11430_v27, %v9159_v50  ;;  %v1038_v19 = vpop.f32.mrb[65].mxu0 }
 0x183   : > { %v1615_v54 = vsel %vm1488_vm0, %v1612_v44, %v1614_v46  ;;  %v1611_v56 = vsel %vm1488_vm0, %v1608_v38, %v1610_v47  ;;  %v1613_v60 = vsel %vm1488_vm0, %v1610_v47, %v1612_v44  ;;  %v1039_v37 = vadd.f32 %v11430_v27, %v1038_v19  ;;  %v9160_v41 = vpop.f32.mrb[66].mxu0 }
 0x184   : > { %v1888_v61 = vmax.f32 %v1320_v31, %v1615_v54  ;;  %v1886_v36 = vmax.f32 %v1318_v33, %v1611_v56  ;;  %v1887_v0 = vmax.f32 %v1319_v39, %v1613_v60  ;;  %v1041_v1 = vpop.f32.mrb[67].mxu0  ;;  %v1324_v3 = vmax.f32 %v1047_v40, 0.0 }
 0x185   : > { %v1322_v4 = vmax.f32 %v1039_v37, 0.0  ;;  %v1050_v6 = vadd.f32 %v11430_v27, %v9160_v41  ;;  %v1042_v57 = vadd.f32 %v11430_v27, %v1041_v1  ;;  %v2208_v58 = vld [vmem:[#allocation2 + $0x190] ss:$2 sm:$0xff] }
 0x186   : > { %v2016_v12 = vmax.f32 %v1884_v20, %v1888_v61  ;;  %v2014_v14 = vmax.f32 %v1882_v25, %v1886_v36  ;;  %v2015_v16 = vmax.f32 %v1883_v26, %v1887_v0  ;;  %v11500_v15 = vpack.c.bf16 %v2208_v58, %v2206_v2 }
 0x187   : > { %v1616_v5 = vrot.slane %v1322_v4, 1  ;;  %v1325_v18 = vmax.f32 %v1050_v6, 0.0  ;;  %v1323_v21 = vmax.f32 %v1042_v57, 0.0  ;;  %v11510_v20 = vsel %vm3023_vm2, %v11433_v32, %v11489_v53 }
 0x188   : > { %12979 = vst [vmem:[#allocation5_spill] sm:$0xff] %v11500_v15  ;;  %2128 = vst [vmem:[#allocation2 + $0x1d0] sm:$0xff] %v2016_v12  ;;  %9637 = vmatprep.mubr.bf16.mxu1 %v11500_v15  ;;  %v2333_v29 = vshll.u32 %v11500_v15, 16  ;;  %v1620_v25 = vrot.slane %v1324_v3, 1  ;;  %v2337_v7 = vshrl.u32 %v11500_v15, 16 }
 0x189   : > { %2126 = vst [vmem:[#allocation2 + $0x1c0] sm:$0xff] %v2014_v14  ;;  %2127 = vst [vmem:[#allocation2 + $0x1c8] sm:$0xff] %v2015_v16  ;;  %v1617_v26 = vsel %vm1488_vm0, %v1614_v46, %v1616_v5  ;;  %v1622_v31 = vrot.slane %v1325_v18, 1  ;;  %v1618_v33 = vrot.slane %v1323_v21, 1  ;;  %v9163_v34 = vpop.f32.mrb[68].mxu0 }
 0x18a   : > { %v1889_v35 = vmax.f32 %v1321_v22, %v1617_v26  ;;  %v1063_v38 = vadd.f32 %v11430_v27, %v9163_v34  ;;  %v1054_v39 = vpop.f32.mrb[69].mxu0  ;;  %v2335_v42 = vrot.slane %v2333_v29, 1  ;;  %v3048_v36 = vrot.slane %v2333_v29, 2 }
 0x18b   : > { %v1623_v13 = vsel %vm1488_vm0, %v1620_v25, %v1622_v31  ;;  %v1619_v43 = vsel %vm1488_vm0, %v1616_v5, %v1618_v33  ;;  %v1621_v32 = vsel %vm1488_vm0, %v1618_v33, %v1620_v25  ;;  %v1055_v44 = vadd.f32 %v11430_v27, %v1054_v39  ;;  %v9164_v45 = vpop.f32.mrb[70].mxu0 }
 0x18c   : > { %v2017_v46 = vmax.f32 %v1885_v51, %v1889_v35  ;;  %v1892_v47 = vmax.f32 %v1324_v3, %v1623_v13  ;;  %v1890_v50 = vmax.f32 %v1322_v4, %v1619_v43  ;;  %v1891_v40 = vmax.f32 %v1323_v21, %v1621_v32  ;;  %v1057_v22 = vpop.f32.mrb[71].mxu0 }
 0x18d   : > { %v1328_v19 = vmax.f32 %v1063_v38, 0.0  ;;  %v1326_v54 = vmax.f32 %v1055_v44, 0.0  ;;  %v1066_v56 = vadd.f32 %v11430_v27, %v9164_v45  ;;  %v1058_v60 = vadd.f32 %v11430_v27, %v1057_v22 }
 0x18e   : > { %2129 = vst [vmem:[#allocation2 + $0x1d8] sm:$0xff] %v2017_v46  ;;  %v11522_v37 = vsel %vm2284_vm1, %v2331_v23, %v2335_v42  ;;  %v3047_v51 = vrot.slane %v2337_v7, 1 }
 0x18f   : > { %v1624_v41 = vrot.slane %v1326_v54, 1  ;;  %v1329_v62 = vmax.f32 %v1066_v56, 0.0  ;;  %v1327_v61 = vmax.f32 %v1058_v60, 0.0  ;;  %9238 = vmatmul.mubr.bf16.gmra.mrb[128].mxu0 %v11522_v37  ;;  %v1628_v0 = vrot.slane %v1328_v19, 1 }
 0x190   : > { %v11527_v12 = vor.u32 %v3048_v36, %v3047_v51  ;;  %v2210_v33 = vld [vmem:[#allocation2 + $0x1c0] ss:$2 sm:$0xff] }
 0x191   : > { %v1625_v1 = vsel %vm1488_vm0, %v1622_v31, %v1624_v41  ;;  %v1630_v2 = vrot.slane %v1329_v62, 1  ;;  %v1626_v3 = vrot.slane %v1327_v61, 1  ;;  %v9167_v4 = vpop.f32.mrb[72].mxu0 }
 0x192   : > { %v1893_v6 = vmax.f32 %v1325_v18, %v1625_v1  ;;  %v1079_v57 = vadd.f32 %v11430_v27, %v9167_v4  ;;  %v1070_v58 = vpop.f32.mrb[73].mxu0  ;;  %v11542_v56 = vsel %vm3023_vm2, %v11489_v53, %v11527_v12 }
 0x193   : > { %v1631_v14 = vsel %vm1488_vm0, %v1628_v0, %v1630_v2  ;;  %v1627_v16 = vsel %vm1488_vm0, %v1624_v41, %v1626_v3  ;;  %v1629_v5 = vsel %vm1488_vm0, %v1626_v3, %v1628_v0  ;;  %v1071_v21 = vadd.f32 %v11430_v27, %v1070_v58  ;;  %v9168_v23 = vpop.f32.mrb[74].mxu0 }
 0x194   : > { %v1896_v29 = vmax.f32 %v1328_v19, %v1631_v14  ;;  %v1894_v25 = vmax.f32 %v1326_v54, %v1627_v16  ;;  %v1895_v26 = vmax.f32 %v1327_v61, %v1629_v5  ;;  %v1073_v31 = vpop.f32.mrb[75].mxu0  ;;  %v1332_v18 = vmax.f32 %v1079_v57, 0.0 }
 0x195   : > { %v1330_v34 = vmax.f32 %v1071_v21, 0.0  ;;  %v1082_v35 = vadd.f32 %v11430_v27, %v9168_v23  ;;  %v1074_v38 = vadd.f32 %v11430_v27, %v1073_v31  ;;  %v2212_v39 = vld [vmem:[#allocation2 + $0x1d0] ss:$2 sm:$0xff]  ;;  %v2339_v19 = vor.u32 %v2337_v7, %v2335_v42 }
 0x196   : > { %v2024_v13 = vmax.f32 %v1892_v47, %v1896_v29  ;;  %v2022_v43 = vmax.f32 %v1890_v50, %v1894_v25  ;;  %v2023_v32 = vmax.f32 %v1891_v40, %v1895_v26  ;;  %v11535_v44 = vpack.c.bf16 %v2212_v39, %v2210_v33 }
 0x197   : > { %v1632_v45 = vrot.slane %v1330_v34, 1  ;;  %v1333_v46 = vmax.f32 %v1082_v35, 0.0  ;;  %v1331_v22 = vmax.f32 %v1074_v38, 0.0  ;;  %v1636_v47 = vrot.slane %v1332_v18, 1 }
 0x198   : > { %2136 = vst [vmem:[#allocation2 + $0x210] sm:$0xff] %v2024_v13  ;;  %2134 = vst [vmem:[#allocation2 + $0x200] sm:$0xff] %v2022_v43  ;;  %9638 = vmatmul.mubr.bf16.gmra.mrb[8].mxu1 %v11535_v44  ;;  %v2341_v54 = vshll.u32 %v11535_v44, 16  ;;  %v2345_v42 = vshrl.u32 %v11535_v44, 16 }
 0x199   : > { %2135 = vst [vmem:[#allocation2 + $0x208] sm:$0xff] %v2023_v32  ;;  %v1633_v50 = vsel %vm1488_vm0, %v1630_v2, %v1632_v45  ;;  %v1638_v40 = vrot.slane %v1333_v46, 1  ;;  %v1634_v60 = vrot.slane %v1331_v22, 1  ;;  %v9171_v41 = vpop.f32.mrb[76].mxu0 }
 0x19a   : > { %v1897_v61 = vmax.f32 %v1329_v62, %v1633_v50  ;;  %v1095_v51 = vadd.f32 %v11430_v27, %v9171_v41  ;;  %v1086_v36 = vpop.f32.mrb[77].mxu0  ;;  %v2343_v0 = vrot.slane %v2341_v54, 1  ;;  %v3052_v33 = vrot.slane %v2341_v54, 2 }
 0x19b   : > { %v1639_v7 = vsel %vm1488_vm0, %v1636_v47, %v1638_v40  ;;  %v1635_v1 = vsel %vm1488_vm0, %v1632_v45, %v1634_v60  ;;  %v1637_v53 = vsel %vm1488_vm0, %v1634_v60, %v1636_v47  ;;  %v1087_v3 = vadd.f32 %v11430_v27, %v1086_v36  ;;  %v9172_v4 = vpop.f32.mrb[78].mxu0 }
 0x19c   : > { %v2025_v2 = vmax.f32 %v1893_v6, %v1897_v61  ;;  %v1900_v57 = vmax.f32 %v1332_v18, %v1639_v7  ;;  %v1898_v58 = vmax.f32 %v1330_v34, %v1635_v1  ;;  %v1899_v14 = vmax.f32 %v1331_v22, %v1637_v53  ;;  %v1089_v62 = vpop.f32.mrb[79].mxu0 }
 0x19d   : > { %v1336_v16 = vmax.f32 %v1095_v51, 0.0  ;;  %v1334_v5 = vmax.f32 %v1087_v3, 0.0  ;;  %v1098_v21 = vadd.f32 %v11430_v27, %v9172_v4  ;;  %v1090_v23 = vadd.f32 %v11430_v27, %v1089_v62 }
 0x19e   : > { %2137 = vst [vmem:[#allocation2 + $0x218] sm:$0xff] %v2025_v2  ;;  %v11554_v29 = vsel %vm2284_vm1, %v2339_v19, %v2343_v0  ;;  %v3051_v6 = vrot.slane %v2345_v42, 1 }
 0x19f   : > { %v1640_v25 = vrot.slane %v1334_v5, 1  ;;  %v1337_v26 = vmax.f32 %v1098_v21, 0.0  ;;  %v1335_v31 = vmax.f32 %v1090_v23, 0.0  ;;  %9241 = vmatprep.mubr.bf16.mxu0 %v11554_v29  ;;  %v1644_v18 = vrot.slane %v1336_v16, 1 }
 0x1a0   : > { %v11559_v45 = vor.u32 %v3052_v33, %v3051_v6  ;;  %v2214_v51 = vld [vmem:[#allocation2 + $0x200] ss:$2 sm:$0xff] }
 0x1a1   : > { %v1641_v34 = vsel %vm1488_vm0, %v1638_v40, %v1640_v25  ;;  %v1646_v35 = vrot.slane %v1337_v26, 1  ;;  %v1642_v38 = vrot.slane %v1335_v31, 1  ;;  %v9175_v39 = vpop.f32.mrb[80].mxu0 }
 0x1a2   : > { %v1901_v13 = vmax.f32 %v1333_v46, %v1641_v34  ;;  %v1111_v43 = vadd.f32 %v11430_v27, %v9175_v39  ;;  %v1102_v32 = vpop.f32.mrb[81].mxu0 }
 0x1a3   : > { %v1647_v22 = vsel %vm1488_vm0, %v1644_v18, %v1646_v35  ;;  %v1643_v19 = vsel %vm1488_vm0, %v1640_v25, %v1642_v38  ;;  %v1645_v47 = vsel %vm1488_vm0, %v1642_v38, %v1644_v18  ;;  %v1103_v54 = vadd.f32 %v11430_v27, %v1102_v32  ;;  %v9176_v50 = vpop.f32.mrb[82].mxu0 }
 0x1a4   : > { %v1904_v60 = vmax.f32 %v1336_v16, %v1647_v22  ;;  %v1902_v40 = vmax.f32 %v1334_v5, %v1643_v19  ;;  %v1903_v41 = vmax.f32 %v1335_v31, %v1645_v47  ;;  %v1105_v61 = vpop.f32.mrb[83].mxu0  ;;  %v1340_v46 = vmax.f32 %v1111_v43, 0.0 }
 0x1a5   : > { %v1338_v36 = vmax.f32 %v1103_v54, 0.0  ;;  %v1114_v7 = vadd.f32 %v11430_v27, %v9176_v50  ;;  %v1106_v1 = vadd.f32 %v11430_v27, %v1105_v61  ;;  %v2216_v53 = vld [vmem:[#allocation2 + $0x210] ss:$2 sm:$0xff]  ;;  %v2347_v16 = vor.u32 %v2345_v42, %v2343_v0 }
 0x1a6   : > { %v2032_v3 = vmax.f32 %v1900_v57, %v1904_v60  ;;  %v2030_v4 = vmax.f32 %v1898_v58, %v1902_v40  ;;  %v2031_v2 = vmax.f32 %v1899_v14, %v1903_v41  ;;  %v11567_v62 = vpack.c.bf16 %v2216_v53, %v2214_v51 }
 0x1a7   : > { %v1648_v21 = vrot.slane %v1338_v36, 1  ;;  %v1341_v23 = vmax.f32 %v1114_v7, 0.0  ;;  %v1339_v25 = vmax.f32 %v1106_v1, 0.0  ;;  %v11574_v31 = vsel %vm3023_vm2, %v11527_v12, %v11559_v45 }
 0x1a8   : > { %2144 = vst [vmem:[#allocation2 + $0x250] sm:$0xff] %v2032_v3  ;;  %2142 = vst [vmem:[#allocation2 + $0x240] sm:$0xff] %v2030_v4  ;;  %9641 = vmatprep.mubr.bf16.mxu1 %v11567_v62  ;;  %v2349_v5 = vshll.u32 %v11567_v62, 16  ;;  %v1652_v57 = vrot.slane %v1340_v46, 1  ;;  %v2353_v0 = vshrl.u32 %v11567_v62, 16 }
 0x1a9   : > { %2143 = vst [vmem:[#allocation2 + $0x248] sm:$0xff] %v2031_v2  ;;  %v1649_v58 = vsel %vm1488_vm0, %v1646_v35, %v1648_v21  ;;  %v1654_v14 = vrot.slane %v1341_v23, 1  ;;  %v1650_v6 = vrot.slane %v1339_v25, 1  ;;  %v9179_v33 = vpop.f32.mrb[84].mxu0 }
 0x1aa   : > { %v1905_v18 = vmax.f32 %v1337_v26, %v1649_v58  ;;  %v1127_v34 = vadd.f32 %v11430_v27, %v9179_v33  ;;  %v1118_v38 = vpop.f32.mrb[85].mxu0  ;;  %v2351_v39 = vrot.slane %v2349_v5, 1 }
 0x1ab   : > { %v1655_v42 = vsel %vm1488_vm0, %v1652_v57, %v1654_v14  ;;  %v1651_v43 = vsel %vm1488_vm0, %v1648_v21, %v1650_v6  ;;  %v1653_v12 = vsel %vm1488_vm0, %v1650_v6, %v1652_v57  ;;  %v1119_v32 = vadd.f32 %v11430_v27, %v1118_v38  ;;  %v9180_v22 = vpop.f32.mrb[86].mxu0 }
 0x1ac   : > { %v2033_v35 = vmax.f32 %v1901_v13, %v1905_v18  ;;  %v1908_v19 = vmax.f32 %v1340_v46, %v1655_v42  ;;  %v1906_v47 = vmax.f32 %v1338_v36, %v1651_v43  ;;  %v1907_v54 = vmax.f32 %v1339_v25, %v1653_v12  ;;  %v1121_v26 = vpop.f32.mrb[87].mxu0 }
 0x1ad   : > { %v1344_v50 = vmax.f32 %v1127_v34, 0.0  ;;  %v1342_v60 = vmax.f32 %v1119_v32, 0.0  ;;  %v1130_v40 = vadd.f32 %v11430_v27, %v9180_v22  ;;  %v1122_v41 = vadd.f32 %v11430_v27, %v1121_v26 }
 0x1ae   : > { %2145 = vst [vmem:[#allocation2 + $0x258] sm:$0xff] %v2033_v35  ;;  %v11586_v61 = vsel %vm2284_vm1, %v2347_v16, %v2351_v39  ;;  %v3055_v13 = vrot.slane %v2353_v0, 1  ;;  %v3056_v46 = vrot.slane %v2349_v5, 2 }
 0x1af   : > { %v1656_v51 = vrot.slane %v1342_v60, 1  ;;  %v1345_v7 = vmax.f32 %v1130_v40, 0.0  ;;  %v1343_v1 = vmax.f32 %v1122_v41, 0.0  ;;  %9242 = vmatmul.mubr.bf16.gmra.mrb[132].mxu0 %v11586_v61  ;;  %v1660_v36 = vrot.slane %v1344_v50, 1 }
 0x1b0   : > { %v11591_v58 = vor.u32 %v3056_v46, %v3055_v13  ;;  %v2218_v43 = vld [vmem:[#allocation2 + $0x240] ss:$2 sm:$0xff] }
 0x1b1   : > { %v1657_v53 = vsel %vm1488_vm0, %v1654_v14, %v1656_v51  ;;  %v1662_v3 = vrot.slane %v1345_v7, 1  ;;  %v1658_v4 = vrot.slane %v1343_v1, 1  ;;  %v9183_v2 = vpop.f32.mrb[88].mxu0 }
 0x1b2   : > { %v1909_v21 = vmax.f32 %v1341_v23, %v1657_v53  ;;  %v1143_v25 = vadd.f32 %v11430_v27, %v9183_v2  ;;  %v1134_v57 = vpop.f32.mrb[89].mxu0 }
 0x1b3   : > { %v1663_v16 = vsel %vm1488_vm0, %v1660_v36, %v1662_v3  ;;  %v1659_v6 = vsel %vm1488_vm0, %v1656_v51, %v1658_v4  ;;  %v1661_v33 = vsel %vm1488_vm0, %v1658_v4, %v1660_v36  ;;  %v1135_v5 = vadd.f32 %v11430_v27, %v1134_v57  ;;  %v9184_v18 = vpop.f32.mrb[90].mxu0 }
 0x1b4   : > { %v1912_v34 = vmax.f32 %v1344_v50, %v1663_v16  ;;  %v1910_v14 = vmax.f32 %v1342_v60, %v1659_v6  ;;  %v1911_v38 = vmax.f32 %v1343_v1, %v1661_v33  ;;  %v1137_v42 = vpop.f32.mrb[91].mxu0  ;;  %v1348_v23 = vmax.f32 %v1143_v25, 0.0 }
 0x1b5   : > { %v1346_v12 = vmax.f32 %v1135_v5, 0.0  ;;  %v1146_v32 = vadd.f32 %v11430_v27, %v9184_v18  ;;  %v1138_v22 = vadd.f32 %v11430_v27, %v1137_v42  ;;  %v2220_v35 = vld [vmem:[#allocation2 + $0x250] ss:$2 sm:$0xff]  ;;  %v2355_v50 = vor.u32 %v2353_v0, %v2351_v39 }
 0x1b6   : > { %v2040_v26 = vmax.f32 %v1908_v19, %v1912_v34  ;;  %v2038_v40 = vmax.f32 %v1906_v47, %v1910_v14  ;;  %v2039_v41 = vmax.f32 %v1907_v54, %v1911_v38  ;;  %v11599_v51 = vpack.c.bf16 %v2220_v35, %v2218_v43 }
 0x1b7   : > { %v1664_v13 = vrot.slane %v1346_v12, 1  ;;  %v1349_v46 = vmax.f32 %v1146_v32, 0.0  ;;  %v1347_v36 = vmax.f32 %v1138_v22, 0.0  ;;  %v11606_v1 = vsel %vm3023_vm2, %v11559_v45, %v11591_v58 }
 0x1b8   : > { %2152 = vst [vmem:[#allocation2 + $0x290] sm:$0xff] %v2040_v26  ;;  %2150 = vst [vmem:[#allocation2 + $0x280] sm:$0xff] %v2038_v40  ;;  %9642 = vmatmul.mubr.bf16.gmra.mrb[12].mxu1 %v11599_v51  ;;  %v2357_v60 = vshll.u32 %v11599_v51, 16  ;;  %v1668_v19 = vrot.slane %v1348_v23, 1  ;;  %v2361_v39 = vshrl.u32 %v11599_v51, 16 }
 0x1b9   : > { %2151 = vst [vmem:[#allocation2 + $0x288] sm:$0xff] %v2039_v41  ;;  %v1665_v47 = vsel %vm1488_vm0, %v1662_v3, %v1664_v13  ;;  %v1670_v54 = vrot.slane %v1349_v46, 1  ;;  %v1666_v53 = vrot.slane %v1347_v36, 1  ;;  %v9187_v4 = vpop.f32.mrb[92].mxu0 }
 0x1ba   : > { %v1913_v2 = vmax.f32 %v1345_v7, %v1665_v47  ;;  %v1159_v25 = vadd.f32 %v11430_v27, %v9187_v4  ;;  %v1150_v57 = vpop.f32.mrb[93].mxu0  ;;  %v2359_v16 = vrot.slane %v2357_v60, 1 }
 0x1bb   : > { %v1671_v0 = vsel %vm1488_vm0, %v1668_v19, %v1670_v54  ;;  %v1667_v6 = vsel %vm1488_vm0, %v1664_v13, %v1666_v53  ;;  %v1669_v45 = vsel %vm1488_vm0, %v1666_v53, %v1668_v19  ;;  %v1151_v33 = vadd.f32 %v11430_v27, %v1150_v57  ;;  %v9188_v5 = vpop.f32.mrb[94].mxu0 }
 0x1bc   : > { %v2041_v3 = vmax.f32 %v1909_v21, %v1913_v2  ;;  %v1916_v18 = vmax.f32 %v1348_v23, %v1671_v0  ;;  %v1914_v34 = vmax.f32 %v1346_v12, %v1667_v6  ;;  %v1915_v14 = vmax.f32 %v1347_v36, %v1669_v45  ;;  %v1153_v7 = vpop.f32.mrb[95].mxu0 }
 0x1bd   : > { %v1352_v38 = vmax.f32 %v1159_v25, 0.0  ;;  %v1350_v42 = vmax.f32 %v1151_v33, 0.0  ;;  %v1162_v43 = vadd.f32 %v11430_v27, %v9188_v5  ;;  %v1154_v32 = vadd.f32 %v11430_v27, %v1153_v7 }
 0x1be   : > { %2153 = vst [vmem:[#allocation2 + $0x298] sm:$0xff] %v2041_v3  ;;  %v11618_v22 = vsel %vm2284_vm1, %v2355_v50, %v2359_v16  ;;  %v3059_v21 = vrot.slane %v2361_v39, 1  ;;  %v3060_v23 = vrot.slane %v2357_v60, 2 }
 0x1bf   : > { %v1672_v35 = vrot.slane %v1350_v42, 1  ;;  %v1353_v26 = vmax.f32 %v1162_v43, 0.0  ;;  %v1351_v40 = vmax.f32 %v1154_v32, 0.0  ;;  %9245 = vmatprep.mubr.bf16.mxu0 %v11618_v22  ;;  %v1676_v12 = vrot.slane %v1352_v38, 1 }
 0x1c0   : > { %v11623_v2 = vor.u32 %v3060_v23, %v3059_v21  ;;  %v2222_v5 = vld [vmem:[#allocation2 + $0x280] ss:$2 sm:$0xff] }
 0x1c1   : > { %v1673_v41 = vsel %vm1488_vm0, %v1670_v54, %v1672_v35  ;;  %v1678_v13 = vrot.slane %v1353_v26, 1  ;;  %v1674_v36 = vrot.slane %v1351_v40, 1  ;;  %v9191_v19 = vpop.f32.mrb[96].mxu0 }
 0x1c2   : > { %v1917_v47 = vmax.f32 %v1349_v46, %v1673_v41  ;;  %v1175_v53 = vadd.f32 %v11430_v27, %v9191_v19  ;;  %v1166_v4 = vpop.f32.mrb[97].mxu0 }
 0x1c3   : > { %v1679_v50 = vsel %vm1488_vm0, %v1676_v12, %v1678_v13  ;;  %v1675_v25 = vsel %vm1488_vm0, %v1672_v35, %v1674_v36  ;;  %v1677_v57 = vsel %vm1488_vm0, %v1674_v36, %v1676_v12  ;;  %v1167_v60 = vadd.f32 %v11430_v27, %v1166_v4  ;;  %v9192_v0 = vpop.f32.mrb[98].mxu0 }
 0x1c4   : > { %v1920_v6 = vmax.f32 %v1352_v38, %v1679_v50  ;;  %v1918_v54 = vmax.f32 %v1350_v42, %v1675_v25  ;;  %v1919_v45 = vmax.f32 %v1351_v40, %v1677_v57  ;;  %v1169_v33 = vpop.f32.mrb[99].mxu0  ;;  %v1356_v46 = vmax.f32 %v1175_v53, 0.0 }
 0x1c5   : > { %v1354_v3 = vmax.f32 %v1167_v60, 0.0  ;;  %v1178_v7 = vadd.f32 %v11430_v27, %v9192_v0  ;;  %v1170_v43 = vadd.f32 %v11430_v27, %v1169_v33  ;;  %v2224_v32 = vld [vmem:[#allocation2 + $0x290] ss:$2 sm:$0xff]  ;;  %v2363_v38 = vor.u32 %v2361_v39, %v2359_v16 }
 0x1c6   : > { %v2048_v21 = vmax.f32 %v1916_v18, %v1920_v6  ;;  %v2046_v23 = vmax.f32 %v1914_v34, %v1918_v54  ;;  %v2047_v35 = vmax.f32 %v1915_v14, %v1919_v45  ;;  %v11631_v41 = vpack.c.bf16 %v2224_v32, %v2222_v5 }
 0x1c7   : > { %v1680_v12 = vrot.slane %v1354_v3, 1  ;;  %v1357_v36 = vmax.f32 %v1178_v7, 0.0  ;;  %v1355_v19 = vmax.f32 %v1170_v43, 0.0  ;;  %v11638_v40 = vsel %vm3023_vm2, %v11591_v58, %v11623_v2 }
 0x1c8   : > { %2160 = vst [vmem:[#allocation2 + $0x2d0] sm:$0xff] %v2048_v21  ;;  %2158 = vst [vmem:[#allocation2 + $0x2c0] sm:$0xff] %v2046_v23  ;;  %9645 = vmatprep.mubr.bf16.mxu1 %v11631_v41  ;;  %v2365_v42 = vshll.u32 %v11631_v41, 16  ;;  %v1684_v18 = vrot.slane %v1356_v46, 1  ;;  %v2369_v16 = vshrl.u32 %v11631_v41, 16 }
 0x1c9   : > { %2159 = vst [vmem:[#allocation2 + $0x2c8] sm:$0xff] %v2047_v35  ;;  %12980 = vst [vmem:[#allocation6_spill] sm:$0xff] %v11638_v40  ;;  %v1681_v34 = vsel %vm1488_vm0, %v1678_v13, %v1680_v12  ;;  %v1686_v14 = vrot.slane %v1357_v36, 1  ;;  %v1682_v53 = vrot.slane %v1355_v19, 1  ;;  %v9195_v4 = vpop.f32.mrb[100].mxu0 }
 0x1ca   : > { %v1921_v50 = vmax.f32 %v1353_v26, %v1681_v34  ;;  %v1191_v25 = vadd.f32 %v11430_v27, %v9195_v4  ;;  %v1182_v57 = vpop.f32.mrb[101].mxu0  ;;  %v2367_v60 = vrot.slane %v2365_v42, 1 }
 0x1cb   : > { %v1687_v39 = vsel %vm1488_vm0, %v1684_v18, %v1686_v14  ;;  %v1683_v0 = vsel %vm1488_vm0, %v1680_v12, %v1682_v53  ;;  %v1685_v58 = vsel %vm1488_vm0, %v1682_v53, %v1684_v18  ;;  %v1183_v6 = vadd.f32 %v11430_v27, %v1182_v57  ;;  %v9196_v54 = vpop.f32.mrb[102].mxu0 }
 0x1cc   : > { %v2049_v13 = vmax.f32 %v1917_v47, %v1921_v50  ;;  %v1924_v45 = vmax.f32 %v1356_v46, %v1687_v39  ;;  %v1922_v33 = vmax.f32 %v1354_v3, %v1683_v0  ;;  %v1923_v5 = vmax.f32 %v1355_v19, %v1685_v58  ;;  %v1185_v26 = vpop.f32.mrb[103].mxu0 }
 0x1cd   : > { %v1360_v7 = vmax.f32 %v1191_v25, 0.0  ;;  %v1358_v43 = vmax.f32 %v1183_v6, 0.0  ;;  %v1194_v32 = vadd.f32 %v11430_v27, %v9196_v54  ;;  %v1186_v21 = vadd.f32 %v11430_v27, %v1185_v26 }
 0x1ce   : > { %2161 = vst [vmem:[#allocation2 + $0x2d8] sm:$0xff] %v2049_v13  ;;  %v11650_v23 = vsel %vm2284_vm1, %v2363_v38, %v2367_v60  ;;  %v3063_v47 = vrot.slane %v2369_v16, 1  ;;  %v3064_v46 = vrot.slane %v2365_v42, 2 }
 0x1cf   : > { %v1688_v35 = vrot.slane %v1358_v43, 1  ;;  %v1361_v12 = vmax.f32 %v1194_v32, 0.0  ;;  %v1359_v18 = vmax.f32 %v1186_v21, 0.0  ;;  %9246 = vmatmul.mubr.bf16.gmra.mrb[136].mxu0 %v11650_v23  ;;  %v1692_v3 = vrot.slane %v1360_v7, 1 }
 0x1d0   : > { %v11655_v39 = vor.u32 %v3064_v46, %v3063_v47  ;;  %v2226_v32 = vld [vmem:[#allocation2 + $0x2c0] ss:$2 sm:$0xff] }
 0x1d1   : > { %v1689_v19 = vsel %vm1488_vm0, %v1686_v14, %v1688_v35  ;;  %v1694_v34 = vrot.slane %v1361_v12, 1  ;;  %v1690_v53 = vrot.slane %v1359_v18, 1  ;;  %v9199_v4 = vpop.f32.mrb[104].mxu0 }
 0x1d2   : > { %v1925_v50 = vmax.f32 %v1357_v36, %v1689_v19  ;;  %v1207_v25 = vadd.f32 %v11430_v27, %v9199_v4  ;;  %v1198_v57 = vpop.f32.mrb[105].mxu0 }
 0x1d3   : > { %v1695_v38 = vsel %vm1488_vm0, %v1692_v3, %v1694_v34  ;;  %v1691_v0 = vsel %vm1488_vm0, %v1688_v35, %v1690_v53  ;;  %v1693_v58 = vsel %vm1488_vm0, %v1690_v53, %v1692_v3  ;;  %v1199_v42 = vadd.f32 %v11430_v27, %v1198_v57  ;;  %v9200_v6 = vpop.f32.mrb[106].mxu0 }
 0x1d4   : > { %v1928_v54 = vmax.f32 %v1360_v7, %v1695_v38  ;;  %v1926_v14 = vmax.f32 %v1358_v43, %v1691_v0  ;;  %v1927_v13 = vmax.f32 %v1359_v18, %v1693_v58  ;;  %v1201_v26 = vpop.f32.mrb[107].mxu0  ;;  %v1364_v36 = vmax.f32 %v1207_v25, 0.0 }
 0x1d5   : > { %v1362_v21 = vmax.f32 %v1199_v42, 0.0  ;;  %v1210_v19 = vadd.f32 %v11430_v27, %v9200_v6  ;;  %v1202_v47 = vadd.f32 %v11430_v27, %v1201_v26  ;;  %v2228_v46 = vld [vmem:[#allocation2 + $0x2d0] ss:$2 sm:$0xff]  ;;  %v2371_v7 = vor.u32 %v2369_v16, %v2367_v60  ;;  %v10974_v60 = vld [vmem:[%s12943_s3] ss:$0 sm:$0xff] }
 0x1d6   : > { %v2056_v4 = vmax.f32 %v1924_v45, %v1928_v54  ;;  %v2054_v48 = vmax.f32 %v1922_v33, %v1926_v14  ;;  %v2055_v35 = vmax.f32 %v1923_v5, %v1927_v13  ;;  %v11663_v40 = vpack.c.bf16 %v2228_v46, %v2226_v32 }
 0x1d7   : > { %v1696_v3 = vrot.slane %v1362_v21, 1  ;;  %v1365_v53 = vmax.f32 %v1210_v19, 0.0  ;;  %v1363_v57 = vmax.f32 %v1202_v47, 0.0  ;;  %v11671_v27 = vsel %vm3023_vm2, %v11623_v2, %v11655_v39 }
 0x1d8   : > { %12981 = vst [vmem:[#allocation7_spill] sm:$0xff] %v11663_v40  ;;  %2168 = vst [vmem:[#allocation2 + $0x310] sm:$0xff] %v2056_v4  ;;  %9646 = vmatmul.mubr.bf16.gmra.mrb[16].mxu1 %v11663_v40  ;;  %v2373_v43 = vshll.u32 %v11663_v40, 16  ;;  %v2377_v18 = vshrl.u32 %v11663_v40, 16  ;;  %v1700_v45 = vrot.slane %v1364_v36, 1 }
 0x1d9   : > { %2166 = vst [vmem:[#allocation2 + $0x300] sm:$0xff] %v2054_v48  ;;  %2167 = vst [vmem:[#allocation2 + $0x308] sm:$0xff] %v2055_v35  ;;  %v1697_v33 = vsel %vm1488_vm0, %v1694_v34, %v1696_v3  ;;  %v1702_v5 = vrot.slane %v1365_v53, 1  ;;  %v1698_v25 = vrot.slane %v1363_v57, 1  ;;  %v9203_v38 = vpop.f32.mrb[108].mxu0 }
 0x1da   : > { %12982 = vst [vmem:[#allocation8_spill] sm:$0xff] %v11671_v27  ;;  %v1929_v48 = vmax.f32 %v1361_v12, %v1697_v33  ;;  %v1223_v16 = vadd.f32 %v10974_v60, %v9203_v38  ;;  %v1214_v0 = vpop.f32.mrb[109].mxu0  ;;  %v2375_v58 = vrot.slane %v2373_v43, 1  ;;  %v3067_v42 = vrot.slane %v2377_v18, 1 }
 0x1db   : > { %v1703_v6 = vsel %vm1488_vm0, %v1700_v45, %v1702_v5  ;;  %v1699_v2 = vsel %vm1488_vm0, %v1696_v3, %v1698_v25  ;;  %v1701_v54 = vsel %vm1488_vm0, %v1698_v25, %v1700_v45  ;;  %v1215_v14 = vadd.f32 %v10974_v60, %v1214_v0  ;;  %v9204_v34 = vpop.f32.mrb[110].mxu0 }
 0x1dc   : > { %v2057_v13 = vmax.f32 %v1925_v50, %v1929_v48  ;;  %v1932_v26 = vmax.f32 %v1364_v36, %v1703_v6  ;;  %v1930_v32 = vmax.f32 %v1362_v21, %v1699_v2  ;;  %v1931_v12 = vmax.f32 %v1363_v57, %v1701_v54  ;;  %v1217_v19 = vpop.f32.mrb[111].mxu0 }
 0x1dd   : > { %v1368_v47 = vmax.f32 %v1223_v16, 0.0  ;;  %v1366_v46 = vmax.f32 %v1215_v14, 0.0  ;;  %v1226_v4 = vadd.f32 %v10974_v60, %v9204_v34  ;;  %v1218_v35 = vadd.f32 %v10974_v60, %v1217_v19 }
 0x1de   : > { %2169 = vst [vmem:[#allocation2 + $0x318] sm:$0xff] %v2057_v13  ;;  %v11681_v33 = vsel %vm2284_vm1, %v2371_v7, %v2375_v58  ;;  %v11684_v45 = vor.u32 %v2377_v18, %v2375_v58  ;;  %v3068_v50 = vrot.slane %v2373_v43, 2 }
 0x1df   : > { %v1704_v38 = vrot.slane %v1366_v46, 1  ;;  %v1369_v27 = vmax.f32 %v1226_v4, 0.0  ;;  %v1367_v3 = vmax.f32 %v1218_v35, 0.0  ;;  %9249 = vmatprep.mubr.bf16.mxu0 %v11681_v33  ;;  %v1708_v36 = vrot.slane %v1368_v47, 1 }
 0x1e0   : > { %9250 = vmatmul.mubr.bf16.gmra.mrb[140].mxu0 %v11684_v45  ;;  %v11688_v0 = vor.u32 %v3068_v50, %v3067_v42  ;;  %v2230_v13 = vld [vmem:[#allocation2 + $0x300] ss:$2 sm:$0xff] }
 0x1e1   : > { %v1705_v21 = vsel %vm1488_vm0, %v1702_v5, %v1704_v38  ;;  %v1710_v57 = vrot.slane %v1369_v27, 1  ;;  %v1706_v25 = vrot.slane %v1367_v3, 1  ;;  %v9207_v48 = vpop.f32.mrb[112].mxu0  ;;  %9269 = vmatprep.mubr.bf16.mxu0 %v11200_v10 }
 0x1e2   : > { %v1933_v16 = vmax.f32 %v1365_v53, %v1705_v21  ;;  %v1230_v7 = vpop.f32.mrb[113].mxu0 }
 0x1e3   : > { %v1711_v6 = vsel %vm1488_vm0, %v1708_v36, %v1710_v57  ;;  %v1707_v2 = vsel %vm1488_vm0, %v1704_v38, %v1706_v25  ;;  %v1709_v18 = vsel %vm1488_vm0, %v1706_v25, %v1708_v36  ;;  %v1231_v43 = vadd.f32 %v10974_v60, %v1230_v7  ;;  %v9208_v58 = vpop.f32.mrb[114].mxu0 }
 0x1e4   : > { %v1936_v5 = vmax.f32 %v1368_v47, %v1711_v6  ;;  %v1934_v54 = vmax.f32 %v1366_v46, %v1707_v2  ;;  %v1935_v14 = vmax.f32 %v1367_v3, %v1709_v18  ;;  %v1233_v34 = vpop.f32.mrb[115].mxu0  ;;  %v11701_v47 = vsel %vm3023_vm2, %v11655_v39, %v11688_v0 }
 0x1e5   : > { %v1370_v53 = vmax.f32 %v1231_v43, 0.0  ;;  %v2232_v19 = vld [vmem:[#allocation2 + $0x310] ss:$2 sm:$0xff]  ;;  %v10811_v43 = vld [vmem:[%s12942_s2 + $0xa0] sm:$0xff]  }
 0x1e6   : > { %v2064_v42 = vmax.f32 %v1932_v26, %v1936_v5  ;;  %v2062_v4 = vmax.f32 %v1930_v32, %v1934_v54  ;;  %v2063_v35 = vmax.f32 %v1931_v12, %v1935_v14  ;;  %v11694_v50 = vpack.c.bf16 %v2232_v19, %v2230_v13  ;;  %v10806_v32 = vld [vmem:[%s12942_s2 + $0x88] sm:$0xff]  }
 0x1e7   : > { %v1712_v21 = vrot.slane %v1370_v53, 1  ;;  %v10812_v14 = vld [vmem:[%s12942_s2 + $0xa8] sm:$0xff]  }
 0x1e8   : > { %12983 = vst [vmem:[#allocation9_spill] sm:$0xff] %v11694_v50  ;;  %2176 = vst [vmem:[#allocation2 + $0x350] sm:$0xff] %v2064_v42  ;;  %9649 = vmatprep.mubr.bf16.mxu1 %v11694_v50  ;;  %v3769_v60 = vshrl.u32 %v11694_v50, 16  ;;  %v3765_v12 = vshll.u32 %v11694_v50, 16  ;;  %9270 = vmatmul.mubr.bf16.vlgmr.msra.gmra.mrb[120].mxu0 %v11226_v8  ;;  %v10810_v19 = vld [vmem:[%s12942_s2 + $0x308] sm:$0xff]   ;;  %v10814_v42 = vld [vmem:[%s12942_s2 + $0xb0] sm:$0xff]  }
 0x1e9   : > { %2174 = vst [vmem:[#allocation2 + $0x340] sm:$0xff] %v2062_v4  ;;  %2175 = vst [vmem:[#allocation2 + $0x348] sm:$0xff] %v2063_v35  ;;  %v1713_v46 = vsel %vm1488_vm0, %v1710_v57, %v1712_v21  ;;  %v9211_v26 = vpop.f32.mrb[116].mxu0  ;;  %9273 = vmatprep.mubr.bf16.mxu0 %v11251_v9  ;;  %v10975_v57 = vld [vmem:[%s12942_s2 + $0x80] sm:$0xff]   ;;  %v10816_v35 = vld [vmem:[%s12942_s2 + $0xb8] sm:$0xff]  }
 0x1ea   : > { %v1937_v38 = vmax.f32 %v1369_v27, %v1713_v46  ;;  %v1246_v3 = vpop.f32.mrb[117].mxu0  ;;  %v4209_v36 = vrot.slane %v3769_v60, 1  ;;  %9294 = vmatpush3.bf16.msra.mxu0 %v10975_v57  ;;  %v10807_v27 = vld [vmem:[%s12942_s2 + $0x90] sm:$0xff]   ;;  %v4210_v7 = vrot.slane %v3765_v12, 2  ;;  %v10976_v4 = vld [vmem:[%s12942_s2 + $0x300] sm:$0xff]   ;;  %v10815_v46 = vld [vmem:[%s12942_s2 + $0x318] sm:$0xff]  }
 0x1eb   : > { %v9212_v39 = vpop.f32.mrb[118].mxu0  ;;  %9295 = vmatprep.subr.bf16.mxu0 %v10806_v32  ;;  %v10813_v21 = vld [vmem:[%s12942_s2 + $0x310] sm:$0xff]   ;;  %v10820_v26 = vld [vmem:[%s12942_s2 + $0xc0] sm:$0xff]   ;;  %v10818_v3 = vld [vmem:[%s12942_s2 + $0x328] sm:$0xff]   ;;  %v2776_v57 = vrot.slane %v11251_v9, 1 }
 0x1ec   : > { %v2065_v25 = vmax.f32 %v1933_v16, %v1937_v38  ;;  %v1249_v48 = vpop.f32.mrb[119].mxu0  ;;  %v11720_v6 = vor.u32 %v4210_v7, %v4209_v36  ;;  %v10809_v16 = vld [vmem:[%s12942_s2 + $0x98] sm:$0xff]   ;;  %v2774_v38 = vrot.slane %v11226_v8, 1  ;;  %v2773_v36 = vrot.slane %v11200_v10, 1  ;;  %v10822_v7 = vld [vmem:[%s12942_s2 + $0xc8] sm:$0xff]  }
 0x1ed   : > { %v2778_v48 = vrot.slane %v11313_v24, 1 }
 0x1ee   : > { %2177 = vst [vmem:[#allocation2 + $0x358] sm:$0xff] %v2065_v25  ;;  %12984 = vst [vmem:[#allocation10_spill] sm:$0xff] %v11720_v6  ;;  %9296 = vmatpush3.bf16.msra.mxu0 %v10806_v32  ;;  %v10817_v32 = vld [vmem:[%s12942_s2 + $0x320] sm:$0xff]   ;;  %v2775_v39 = vsel %vm1488_vm0, %v2773_v36, %v2774_v38  ;;  %v10819_v25 = vld [vmem:[%s12942_s2 + $0x330] sm:$0xff]   ;;  %v2788_v36 = vrot.slane %v11567_v62, 1 }
 0x1ef   : > { %9297 = vmatprep.subr.bf16.mxu0 %v10807_v27 }
 0x1f0   : > { %9274 = vmatmul.mubr.bf16.gmra.mrb[124].mxu0 %v11313_v24  ;;  %v2234_v2 = vld [vmem:[#allocation2 + $0x340] ss:$2 sm:$0xff] }
 0x1f1   : > { %9277 = vmatprep.mubr.bf16.mxu0 %v11377_v28 }
 0x1f2   : > { %9298 = vmatpush3.bf16.msra.mxu0 %v10807_v27  ;;  %v10821_v27 = vld [vmem:[%s12942_s2 + $0x338] sm:$0xff]  }
 0x1f3   : > { %9299 = vmatprep.subr.bf16.mxu0 %v10809_v16 }
 0x1f5   : > { %v2236_v18 = vld [vmem:[#allocation2 + $0x350] ss:$2 sm:$0xff] }
 0x1f6   : > { %v11730_v58 = vpack.c.bf16 %v2236_v18, %v2234_v2  ;;  %9300 = vmatpush3.bf16.msra.mxu0 %v10809_v16  ;;  %v11801_v16 = vsel %vm1488_vm0, %v2774_v38, %v2776_v57  ;;  %v11806_v2 = vsel %vm1488_vm0, %v2776_v57, %v2778_v48  ;;  %v3767_v18 = vrot.slane %v3765_v12, 1  ;;  %v10832_v57 = vld [vmem:[%s12942_s2 + $0xf8] sm:$0xff]  }
 0x1f7   : > { %9301 = vmatprep.subr.bf16.mxu0 %v10811_v43  ;;  %v2782_v12 = vrot.slane %v11443_v55, 1 }
 0x1f8   : > { %12985 = vst [vmem:[#allocation11_spill] sm:$0xff] %v11730_v58  ;;  %9650 = vmatmul.mubr.bf16.gmra.mrb[20].mxu1 %v11730_v58  ;;  %v4865_v5 = vshll.u32 %v11730_v58, 16  ;;  %v4869_v54 = vshrl.u32 %v11730_v58, 16  ;;  %9278 = vmatmul.mubr.bf16.gmra.mrb[128].mxu0 %v11443_v55 }
 0x1f9   : > { %9669 = vmatprep.mubr.bf16.mxu1 %v11351_v59  ;;  %9281 = vmatprep.mubr.bf16.mxu0 %v11500_v15 }
 0x1fa   : > { %v5309_v34 = vrot.slane %v4869_v54, 1  ;;  %v5310_v53 = vrot.slane %v4865_v5, 2  ;;  %9302 = vmatpush3.bf16.msra.mxu0 %v10811_v43  ;;  %v10824_v43 = vld [vmem:[%s12942_s2 + $0x340] sm:$0xff]  }
 0x1fb   : > { %9303 = vmatprep.subr.bf16.mxu0 %v10812_v14 }
 0x1fc   : > { %v11745_v13 = vor.u32 %v5310_v53, %v5309_v34  ;;  %v10823_v34 = vld [vmem:[%s12942_s2 + $0xd0] sm:$0xff]   ;;  %v2780_v53 = vrot.slane %v11377_v28, 1 }
 0x1fe   : > { %12986 = vst [vmem:[#allocation12_spill] sm:$0xff] %v11745_v13  ;;  %9304 = vmatpush3.bf16.msra.mxu0 %v10812_v14  ;;  %v4867_v14 = vrot.slane %v4865_v5, 1 }
 0x1ff   : > { %9305 = vmatprep.subr.bf16.mxu0 %v10814_v42 }
 0x200   : > { %9670 = vmatmul.mubr.bf16.vlgmr.msra.gmra.mrb[0].mxu1 %v11415_v11  ;;  %9282 = vmatmul.mubr.bf16.gmra.mrb[132].mxu0 %v11535_v44 }
 0x201   : > { %9694 = vmatpush3.bf16.msra.mxu1 %v10976_v4  ;;  %9673 = vmatprep.mubr.bf16.mxu1 %v11482_v17  ;;  %v10825_v4 = vld [vmem:[%s12942_s2 + $0xd8] sm:$0xff]  }
 0x202   : > { %9695 = vmatprep.subr.bf16.mxu1 %v10810_v19  ;;  %9285 = vmatprep.mubr.bf16.mxu0 %v11567_v62 }
 0x203   : > { %9306 = vmatpush3.bf16.msra.mxu0 %v10814_v42  ;;  %v11827_v42 = vsel %vm2284_vm1, %v11684_v45, %v3767_v18  ;;  %v11843_v45 = vsel %vm1488_vm0, %v2780_v53, %v2782_v12 }
 0x204   : > { %9307 = vmatprep.subr.bf16.mxu0 %v10816_v35 }
 0x205   : > { %9696 = vmatpush3.bf16.msra.mxu1 %v10810_v19  ;;  %v11823_v19 = vor.u32 %v3769_v60, %v3767_v18  ;;  %v11838_v60 = vsel %vm1488_vm0, %v2778_v48, %v2780_v53  ;;  %v10836_v18 = vld [vmem:[%s12942_s2 + $0x100] sm:$0xff]  }
 0x206   : > { %9697 = vmatprep.subr.bf16.mxu1 %v10813_v21 }
 0x207   : > { %9308 = vmatpush3.bf16.msra.mxu0 %v10816_v35  ;;  %v11832_v5 = vsel %vm2284_vm1, %v11823_v19, %v4867_v14  ;;  %v10827_v35 = vld [vmem:[%s12942_s2 + $0xe0] sm:$0xff]  }
 0x208   : > { %9674 = vmatmul.mubr.bf16.gmra.mrb[4].mxu1 %v11522_v37  ;;  %9286 = vmatmul.mubr.bf16.gmra.mrb[136].mxu0 %v11599_v51 }
 0x209   : > { %9677 = vmatprep.mubr.bf16.mxu1 %v11554_v29  ;;  %9698 = vmatpush3.bf16.msra.mxu1 %v10813_v21  ;;  %v2784_v21 = vrot.slane %v11500_v15, 1 }
 0x20a   : > { %9699 = vmatprep.subr.bf16.mxu1 %v10815_v46  ;;  %9289 = vmatprep.mubr.bf16.mxu0 %v11631_v41 }
 0x20b   : > { %9333 = vmatprep.subr.bf16.mxu0 %v10820_v26  ;;  %v11860_v38 = vsel %vm1488_vm0, %v2782_v12, %v2784_v21 }
 0x20d   : > { %9700 = vmatpush3.bf16.msra.mxu1 %v10815_v46  ;;  %v2786_v46 = vrot.slane %v11535_v44, 1 }
 0x20e   : > { %9701 = vmatprep.subr.bf16.mxu1 %v10817_v32 }
 0x20f   : > { %v11881_v48 = vsel %vm1488_vm0, %v2786_v46, %v2788_v36 }
 0x210   : > { %9678 = vmatmul.mubr.bf16.gmra.mrb[8].mxu1 %v11586_v61  ;;  %9290 = vmatmul.mubr.bf16.gmra.mrb[144].mxu0 %v11663_v40 }
 0x211   : > { %9681 = vmatprep.mubr.bf16.mxu1 %v11618_v22  ;;  %9702 = vmatpush3.bf16.msra.mxu1 %v10817_v32  ;;  %v10828_v32 = vld [vmem:[%s12942_s2 + $0xe8] sm:$0xff]  }
 0x212   : > { %9703 = vmatprep.subr.bf16.mxu1 %v10818_v3  ;;  %9309 = vmatprep.mubr.bf16.mxu0 %v2775_v39  ;;  %v2790_v39 = vrot.slane %v11599_v51, 1 }
 0x215   : > { %9704 = vmatpush3.bf16.msra.mxu1 %v10818_v3  ;;  %v11865_v3 = vsel %vm1488_vm0, %v2784_v21, %v2786_v46  ;;  %v10835_v21 = vld [vmem:[%s12942_s2 + $0x370] sm:$0xff]   ;;  %v10837_v46 = vld [vmem:[%s12942_s2 + $0x378] sm:$0xff]  }
 0x216   : > { %9705 = vmatprep.subr.bf16.mxu1 %v10819_v25 }
 0x218   : > { %9682 = vmatmul.mubr.bf16.gmra.mrb[12].mxu1 %v11650_v23  ;;  %9310 = vmatmul.mubr.bf16.vlgmr.msra.gmra.mrb[120].mxu0 %v11801_v16 }
 0x219   : > { %9685 = vmatprep.mubr.bf16.mxu1 %v11681_v33  ;;  %9706 = vmatpush3.bf16.msra.mxu1 %v10819_v25  ;;  %v10826_v25 = vld [vmem:[%s12942_s2 + $0x348] sm:$0xff]  }
 0x21a   : > { %9707 = vmatprep.subr.bf16.mxu1 %v10821_v27  ;;  %9313 = vmatprep.mubr.bf16.mxu0 %v11806_v2 }
 0x21b   : > { %9334 = vmatpush3.bf16.msra.mxu0 %v10820_v26  ;;  %v11853_v26 = vor.u32 %v4869_v54, %v4867_v14  ;;  %v10830_v54 = vld [vmem:[%s12942_s2 + $0xf0] sm:$0xff]   ;;  %v2794_v14 = vrot.slane %v11663_v40, 1 }
 0x21c   : > { %9335 = vmatprep.subr.bf16.mxu0 %v10822_v7 }
 0x21d   : > { %9708 = vmatpush3.bf16.msra.mxu1 %v10821_v27  ;;  %v11886_v27 = vsel %vm1488_vm0, %v2788_v36, %v2790_v39  ;;  %v11939_v36 = vrot.slane %v11730_v58, 1 }
 0x21e   : > { %9733 = vmatprep.subr.bf16.mxu1 %v10824_v43 }
 0x21f   : > { %9336 = vmatpush3.bf16.msra.mxu0 %v10822_v7  ;;  %v10829_v7 = vld [vmem:[%s12942_s2 + $0x350] sm:$0xff]  }
 0x220   : > { %9686 = vmatmul.mubr.bf16.gmra.mrb[16].mxu1 %v11827_v42  ;;  %9337 = vmatprep.subr.bf16.mxu0 %v10823_v34 }
 0x221   : > { %9689 = vmatprep.mubr.bf16.mxu1 %v11832_v5  ;;  %9314 = vmatmul.mubr.bf16.gmra.mrb[124].mxu0 %v11838_v60 }
 0x222   : > { %9317 = vmatprep.mubr.bf16.mxu0 %v11843_v45 }
 0x223   : > { %9338 = vmatpush3.bf16.msra.mxu0 %v10823_v34  ;;  %v10831_v34 = vld [vmem:[%s12942_s2 + $0x358] sm:$0xff]  }
 0x224   : > { %9339 = vmatprep.subr.bf16.mxu0 %v10825_v4 }
 0x227   : > { %9340 = vmatpush3.bf16.msra.mxu0 %v10825_v4  ;;  %v10833_v4 = vld [vmem:[%s12942_s2 + $0x360] sm:$0xff]  }
 0x228   : > { %9690 = vmatmul.mubr.bf16.gmra.mrb[24].mxu1 %v11853_v26  ;;  %9341 = vmatprep.subr.bf16.mxu0 %v10827_v35 }
 0x229   : > { %9709 = vmatprep.mubr.bf16.mxu1 %v11806_v2  ;;  %9318 = vmatmul.mubr.bf16.gmra.mrb[128].mxu0 %v11860_v38 }
 0x22a   : > { %9321 = vmatprep.mubr.bf16.mxu0 %v11865_v3 }
 0x22b   : > { %9342 = vmatpush3.bf16.msra.mxu0 %v10827_v35  ;;  %v10834_v35 = vld [vmem:[%s12942_s2 + $0x368] sm:$0xff]  }
 0x22c   : > { %9343 = vmatprep.subr.bf16.mxu0 %v10828_v32 }
 0x22f   : > { %9344 = vmatpush3.bf16.msra.mxu0 %v10828_v32  ;;  %v10838_v32 = vld [vmem:[%s12942_s2 + $0x108] sm:$0xff]  }
 0x230   : > { %9710 = vmatmul.mubr.bf16.vlgmr.msra.gmra.mrb[0].mxu1 %v11838_v60  ;;  %9345 = vmatprep.subr.bf16.mxu0 %v10830_v54 }
 0x231   : > { %9734 = vmatpush3.bf16.msra.mxu1 %v10824_v43  ;;  %9713 = vmatprep.mubr.bf16.mxu1 %v11843_v45  ;;  %v2792_v43 = vrot.slane %v11631_v41, 1 }
 0x232   : > { %9322 = vmatmul.mubr.bf16.gmra.mrb[132].mxu0 %v11881_v48  ;;  %9735 = vmatprep.subr.bf16.mxu1 %v10826_v25 }
 0x233   : > { %9325 = vmatprep.mubr.bf16.mxu0 %v11886_v27  ;;  %9346 = vmatpush3.bf16.msra.mxu0 %v10830_v54  ;;  %v11902_v53 = vsel %vm1488_vm0, %v2790_v39, %v2792_v43  ;;  %v11907_v12 = vsel %vm1488_vm0, %v2792_v43, %v2794_v14  ;;  %v11936_v54 = vrot.slane %v11694_v50, 1  ;;  %v10839_v39 = vld [vmem:[%s12942_s2 + $0x110] sm:$0xff]   ;;  %v10844_v43 = vld [vmem:[%s12942_s2 + $0x128] sm:$0xff]  }
 0x234   : > { %9347 = vmatprep.subr.bf16.mxu0 %v10832_v57 }
 0x235   : > { %9736 = vmatpush3.bf16.msra.mxu1 %v10826_v25  ;;  %v11946_v25 = vsel %vm1488_vm0, %v2794_v14, %v11936_v54 }
 0x236   : > { %9737 = vmatprep.subr.bf16.mxu1 %v10829_v7 }
 0x237   : > { %9348 = vmatpush3.bf16.msra.mxu0 %v10832_v57  ;;  %v11952_v57 = vsel %vm1488_vm0, %v11936_v54, %v11939_v36 }
 0x238   : > { %9714 = vmatmul.mubr.bf16.gmra.mrb[4].mxu1 %v11860_v38  ;;  %9373 = vmatprep.subr.bf16.mxu0 %v10836_v18 }
 0x239   : > { %9717 = vmatprep.mubr.bf16.mxu1 %v11865_v3  ;;  %9738 = vmatpush3.bf16.msra.mxu1 %v10829_v7  ;;  %v10841_v7 = vld [vmem:[%s12942_s2 + $0x118] sm:$0xff]  }
 0x23a   : > { %9326 = vmatmul.mubr.bf16.gmra.mrb[136].mxu0 %v11902_v53  ;;  %9739 = vmatprep.subr.bf16.mxu1 %v10831_v34 }
 0x23b   : > { %9329 = vmatprep.mubr.bf16.mxu0 %v11907_v12 }
 0x23d   : > { %9740 = vmatpush3.bf16.msra.mxu1 %v10831_v34  ;;  %v10842_v34 = vld [vmem:[%s12942_s2 + $0x388] sm:$0xff]  }
 0x23e   : > { %9741 = vmatprep.subr.bf16.mxu1 %v10833_v4 }
 0x240   : > { %9718 = vmatmul.mubr.bf16.gmra.mrb[8].mxu1 %v11881_v48 }
 0x241   : > { %9721 = vmatprep.mubr.bf16.mxu1 %v11886_v27  ;;  %9742 = vmatpush3.bf16.msra.mxu1 %v10833_v4  ;;  %v10848_v4 = vld [vmem:[%s12942_s2 + $0x138] sm:$0xff]  }
 0x242   : > { %9330 = vmatmul.mubr.bf16.gmra.mrb[148].mxu0 %v2794_v14  ;;  %9743 = vmatprep.subr.bf16.mxu1 %v10834_v35  ;;  %v10846_v14 = vld [vmem:[%s12942_s2 + $0x130] sm:$0xff]  }
 0x243   : > { %9349 = vmatprep.mubr.bf16.mxu0 %v11291_v52  ;;  %v10840_v52 = vld [vmem:[%s12942_s2 + $0x380] sm:$0xff]  }
 0x245   : > { %9744 = vmatpush3.bf16.msra.mxu1 %v10834_v35  ;;  %v10845_v35 = vld [vmem:[%s12942_s2 + $0x390] sm:$0xff]  }
 0x246   : > { %9745 = vmatprep.subr.bf16.mxu1 %v10835_v21 }
 0x248   : > { %9722 = vmatmul.mubr.bf16.gmra.mrb[12].mxu1 %v11902_v53 }
 0x249   : > { %9725 = vmatprep.mubr.bf16.mxu1 %v11907_v12  ;;  %9746 = vmatpush3.bf16.msra.mxu1 %v10835_v21  ;;  %v12987_v21 = vld [vmem:[#allocation6_spill] sm:$0xff] }
 0x24a   : > { %9350 = vmatmul.mubr.bf16.vlgmr.msra.gmra.mrb[120].mxu0 %v11327_v30  ;;  %9747 = vmatprep.subr.bf16.mxu1 %v10837_v46 }
 0x24b   : > { %9353 = vmatprep.mubr.bf16.mxu0 %v11397_v49  ;;  %9374 = vmatpush3.bf16.msra.mxu0 %v10836_v18  ;;  %v10843_v18 = vld [vmem:[%s12942_s2 + $0x120] sm:$0xff]  }
 0x24c   : > { %9375 = vmatprep.subr.bf16.mxu0 %v10838_v32 }
 0x24d   : > { %9748 = vmatpush3.bf16.msra.mxu1 %v10837_v46  ;;  %v10852_v46 = vld [vmem:[%s12942_s2 + $0x140] sm:$0xff]  }
 0x24e   : > { %9773 = vmatprep.subr.bf16.mxu1 %v10840_v52 }
 0x24f   : > { %9376 = vmatpush3.bf16.msra.mxu0 %v10838_v32  ;;  %v10847_v32 = vld [vmem:[%s12942_s2 + $0x398] sm:$0xff]  }
 0x250   : > { %9726 = vmatmul.mubr.bf16.gmra.mrb[16].mxu1 %v11946_v25  ;;  %9377 = vmatprep.subr.bf16.mxu0 %v10839_v39 }
 0x251   : > { %9729 = vmatprep.mubr.bf16.mxu1 %v11952_v57 }
 0x252   : > { %9354 = vmatmul.mubr.bf16.gmra.mrb[124].mxu0 %v11460_v63 }
 0x253   : > { %9357 = vmatprep.mubr.bf16.mxu0 %v11510_v20  ;;  %9378 = vmatpush3.bf16.msra.mxu0 %v10839_v39  ;;  %v10849_v39 = vld [vmem:[%s12942_s2 + $0x3a0] sm:$0xff]  }
 0x254   : > { %9379 = vmatprep.subr.bf16.mxu0 %v10841_v7 }
 0x257   : > { %9380 = vmatpush3.bf16.msra.mxu0 %v10841_v7  ;;  %v3300_v7 = vrot.slane %v11226_v8, 2 }
 0x258   : > { %9730 = vmatmul.mubr.bf16.gmra.mrb[28].mxu1 %v11939_v36  ;;  %9381 = vmatprep.subr.bf16.mxu0 %v10843_v18 }
 0x259   : > { %9749 = vmatprep.mubr.bf16.mxu1 %v11397_v49 }
 0x25a   : > { %9358 = vmatmul.mubr.bf16.gmra.mrb[128].mxu0 %v11542_v56 }
 0x25b   : > { %9361 = vmatprep.mubr.bf16.mxu0 %v11574_v31  ;;  %9382 = vmatpush3.bf16.msra.mxu0 %v10843_v18  ;;  %v10850_v18 = vld [vmem:[%s12942_s2 + $0x3a8] sm:$0xff]  }
 0x25c   : > { %9383 = vmatprep.subr.bf16.mxu0 %v10844_v43 }
 0x25f   : > { %9384 = vmatpush3.bf16.msra.mxu0 %v10844_v43  ;;  %v3299_v43 = vrot.slane %v11200_v10, 2  ;;  %v3304_v10 = vrot.slane %v11313_v24, 2 }
 0x260   : > { %9750 = vmatmul.mubr.bf16.vlgmr.msra.gmra.mrb[0].mxu1 %v11460_v63  ;;  %9385 = vmatprep.subr.bf16.mxu0 %v10846_v14 }
 0x261   : > { %9774 = vmatpush3.bf16.msra.mxu1 %v10840_v52  ;;  %9753 = vmatprep.mubr.bf16.mxu1 %v11510_v20  ;;  %v12988_v52 = vld [vmem:[#allocation8_spill] sm:$0xff] }
 0x262   : > { %9362 = vmatmul.mubr.bf16.gmra.mrb[132].mxu0 %v11606_v1  ;;  %9775 = vmatprep.subr.bf16.mxu1 %v10842_v34 }
 0x263   : > { %9365 = vmatprep.mubr.bf16.mxu0 %v12987_v21  ;;  %9386 = vmatpush3.bf16.msra.mxu0 %v10846_v14  ;;  %v3301_v14 = vsel %vm3298_vm3, %v3299_v43, %v3300_v7  ;;  %v10856_v43 = vld [vmem:[%s12942_s2 + $0x3c0] sm:$0xff]  }
 0x264   : > { %9387 = vmatprep.subr.bf16.mxu0 %v10848_v4 }
 0x265   : > { %9776 = vmatpush3.bf16.msra.mxu1 %v10842_v34  ;;  %v10851_v34 = vld [vmem:[%s12942_s2 + $0x3b0] sm:$0xff]  }
 0x266   : > { %9777 = vmatprep.subr.bf16.mxu1 %v10845_v35 }
 0x267   : > { %9388 = vmatpush3.bf16.msra.mxu0 %v10848_v4  ;;  %v3302_v4 = vrot.slane %v11251_v9, 2 }
 0x268   : > { %9754 = vmatmul.mubr.bf16.gmra.mrb[4].mxu1 %v11542_v56  ;;  %9413 = vmatprep.subr.bf16.mxu0 %v10852_v46 }
 0x269   : > { %9757 = vmatprep.mubr.bf16.mxu1 %v11574_v31  ;;  %9778 = vmatpush3.bf16.msra.mxu1 %v10845_v35  ;;  %v10853_v35 = vld [vmem:[%s12942_s2 + $0x3b8] sm:$0xff]  }
 0x26a   : > { %9366 = vmatmul.mubr.bf16.gmra.mrb[136].mxu0 %v12988_v52  ;;  %9779 = vmatprep.subr.bf16.mxu1 %v10847_v32 }
 0x26b   : > { %9369 = vmatprep.mubr.bf16.mxu0 %v11701_v47 }
 0x26d   : > { %9780 = vmatpush3.bf16.msra.mxu1 %v10847_v32  ;;  %v10854_v32 = vld [vmem:[%s12942_s2 + $0x148] sm:$0xff]  }
 0x26e   : > { %9781 = vmatprep.subr.bf16.mxu1 %v10849_v39 }
 0x270   : > { %9758 = vmatmul.mubr.bf16.gmra.mrb[8].mxu1 %v11606_v1 }
 0x271   : > { %9761 = vmatprep.mubr.bf16.mxu1 %v12987_v21  ;;  %9782 = vmatpush3.bf16.msra.mxu1 %v10849_v39  ;;  %v12021_v39 = vsel %vm3298_vm3, %v3300_v7, %v3302_v4  ;;  %v10855_v7 = vld [vmem:[%s12942_s2 + $0x150] sm:$0xff]  }
 0x272   : > { %9370 = vmatmul.mubr.bf16.gmra.mrb[152].mxu0 %v11688_v0  ;;  %9783 = vmatprep.subr.bf16.mxu1 %v10850_v18  ;;  %12989 = vst [vmem:[#allocation6_spill] sm:$0xff] %v12021_v39 }
 0x273   : > { %9389 = vmatprep.mubr.bf16.mxu0 %v3301_v14  ;;  %v3306_v14 = vrot.slane %v11377_v28, 2 }
 0x275   : > { %9784 = vmatpush3.bf16.msra.mxu1 %v10850_v18  ;;  %v12026_v18 = vsel %vm3298_vm3, %v3302_v4, %v3304_v10  ;;  %v12040_v4 = vsel %vm3023_vm2, %v11688_v0, %v11720_v6 }
 0x276   : > { %9785 = vmatprep.subr.bf16.mxu1 %v10851_v34  ;;  %12990 = vst [vmem:[#allocation8_spill] sm:$0xff] %v12026_v18  ;;  %12991 = vst [vmem:[#allocation13_spill] sm:$0xff] %v12040_v4 }
 0x278   : > { %9762 = vmatmul.mubr.bf16.gmra.mrb[12].mxu1 %v12988_v52 }
 0x279   : > { %9765 = vmatprep.mubr.bf16.mxu1 %v11701_v47  ;;  %9786 = vmatpush3.bf16.msra.mxu1 %v10851_v34  ;;  %v3308_v34 = vrot.slane %v11443_v55, 2 }
 0x27a   : > { %9390 = vmatmul.mubr.bf16.vlgmr.msra.gmra.mrb[120].mxu0 %v12021_v39  ;;  %9787 = vmatprep.subr.bf16.mxu1 %v10853_v35  ;;  %v12052_v39 = vsel %vm3298_vm3, %v3304_v10, %v3306_v14  ;;  %v3312_v10 = vrot.slane %v11535_v44, 2 }
 0x27b   : > { %9393 = vmatprep.mubr.bf16.mxu0 %v12026_v18  ;;  %9414 = vmatpush3.bf16.msra.mxu0 %v10852_v46  ;;  %v12046_v46 = vsel %vm3023_vm2, %v11720_v6, %v11745_v13  ;;  %12993 = vst [vmem:[#allocation15_spill] sm:$0xff] %v12052_v39  ;;  %v12057_v0 = vsel %vm3298_vm3, %v3306_v14, %v3308_v34  ;;  %v3310_v6 = vrot.slane %v11500_v15, 2  ;;  %v10860_v14 = vld [vmem:[%s12942_s2 + $0x168] sm:$0xff]  }
 0x27c   : > { %9415 = vmatprep.subr.bf16.mxu0 %v10854_v32  ;;  %12992 = vst [vmem:[#allocation14_spill] sm:$0xff] %v12046_v46  ;;  %12994 = vst [vmem:[#allocation16_spill] sm:$0xff] %v12057_v0 }
 0x27d   : > { %9788 = vmatpush3.bf16.msra.mxu1 %v10853_v35  ;;  %v10857_v35 = vld [vmem:[%s12942_s2 + $0x158] sm:$0xff]  }
 0x27e   : > { %9813 = vmatprep.subr.bf16.mxu1 %v10856_v43 }
 0x27f   : > { %9416 = vmatpush3.bf16.msra.mxu0 %v10854_v32  ;;  %v10859_v32 = vld [vmem:[%s12942_s2 + $0x160] sm:$0xff]  }
 0x280   : > { %9766 = vmatmul.mubr.bf16.gmra.mrb[16].mxu1 %v12040_v4  ;;  %9417 = vmatprep.subr.bf16.mxu0 %v10855_v7 }
 0x281   : > { %9769 = vmatprep.mubr.bf16.mxu1 %v12046_v46  ;;  %v12070_v46 = vsel %vm3298_vm3, %v3308_v34, %v3310_v6  ;;  %v3316_v34 = vrot.slane %v11599_v51, 2 }
 0x282   : > { %9394 = vmatmul.mubr.bf16.gmra.mrb[124].mxu0 %v12052_v39 }
 0x283   : > { %9397 = vmatprep.mubr.bf16.mxu0 %v12057_v0  ;;  %9418 = vmatpush3.bf16.msra.mxu0 %v10855_v7  ;;  %v12075_v7 = vsel %vm3298_vm3, %v3310_v6, %v3312_v10  ;;  %v10864_v6 = vld [vmem:[%s12942_s2 + $0x178] sm:$0xff]  }
 0x284   : > { %9419 = vmatprep.subr.bf16.mxu0 %v10857_v35 }
 0x287   : > { %9420 = vmatpush3.bf16.msra.mxu0 %v10857_v35  ;;  %v10862_v35 = vld [vmem:[%s12942_s2 + $0x170] sm:$0xff]  }
 0x288   : > { %9770 = vmatmul.mubr.bf16.gmra.mrb[32].mxu1 %v11745_v13  ;;  %9421 = vmatprep.subr.bf16.mxu0 %v10859_v32  ;;  %v3314_v13 = vrot.slane %v11567_v62, 2 }
 0x289   : > { %9789 = vmatprep.mubr.bf16.mxu1 %v12026_v18  ;;  %v10858_v18 = vld [vmem:[%s12942_s2 + $0x3c8] sm:$0xff]  }
 0x28a   : > { %9398 = vmatmul.mubr.bf16.gmra.mrb[128].mxu0 %v12070_v46  ;;  %v12096_v4 = vsel %vm3298_vm3, %v3314_v13, %v3316_v34 }
 0x28b   : > { %9401 = vmatprep.mubr.bf16.mxu0 %v12075_v7  ;;  %9422 = vmatpush3.bf16.msra.mxu0 %v10859_v32  ;;  %v12091_v32 = vsel %vm3298_vm3, %v3312_v10, %v3314_v13  ;;  %12996 = vst [vmem:[#allocation18_spill] sm:$0xff] %v12096_v4  ;;  %v3318_v10 = vrot.slane %v11631_v41, 2  ;;  %v10863_v13 = vld [vmem:[%s12942_s2 + $0x3d8] sm:$0xff]  }
 0x28c   : > { %9423 = vmatprep.subr.bf16.mxu0 %v10860_v14  ;;  %12995 = vst [vmem:[#allocation17_spill] sm:$0xff] %v12091_v32 }
 0x28f   : > { %9424 = vmatpush3.bf16.msra.mxu0 %v10860_v14  ;;  %v10861_v14 = vld [vmem:[%s12942_s2 + $0x3d0] sm:$0xff]  }
 0x290   : > { %9790 = vmatmul.mubr.bf16.vlgmr.msra.gmra.mrb[0].mxu1 %v12052_v39  ;;  %9425 = vmatprep.subr.bf16.mxu0 %v10862_v35  ;;  %v10865_v39 = vld [vmem:[%s12942_s2 + $0x3e0] sm:$0xff]  }
 0x291   : > { %9814 = vmatpush3.bf16.msra.mxu1 %v10856_v43  ;;  %9793 = vmatprep.mubr.bf16.mxu1 %v12057_v0  ;;  %v10868_v43 = vld [vmem:[%s12942_s2 + $0x180] sm:$0xff]   ;;  %v3320_v0 = vrot.slane %v11663_v40, 2 }
 0x292   : > { %9402 = vmatmul.mubr.bf16.gmra.mrb[132].mxu0 %v12091_v32  ;;  %9815 = vmatprep.subr.bf16.mxu1 %v10858_v18 }
 0x293   : > { %9405 = vmatprep.mubr.bf16.mxu0 %v12096_v4  ;;  %9426 = vmatpush3.bf16.msra.mxu0 %v10862_v35  ;;  %v12112_v35 = vsel %vm3298_vm3, %v3316_v34, %v3318_v10  ;;  %v10866_v34 = vld [vmem:[%s12942_s2 + $0x3e8] sm:$0xff]  }
 0x294   : > { %9427 = vmatprep.subr.bf16.mxu0 %v10864_v6  ;;  %12997 = vst [vmem:[#allocation19_spill] sm:$0xff] %v12112_v35 }
 0x295   : > { %9816 = vmatpush3.bf16.msra.mxu1 %v10858_v18  ;;  %v12117_v18 = vsel %vm3298_vm3, %v3318_v10, %v3320_v0  ;;  %v12146_v10 = vrot.slane %v11694_v50, 2 }
 0x296   : > { %9817 = vmatprep.subr.bf16.mxu1 %v10861_v14  ;;  %12998 = vst [vmem:[#allocation20_spill] sm:$0xff] %v12117_v18 }
 0x297   : > { %9428 = vmatpush3.bf16.msra.mxu0 %v10864_v6  ;;  %v10867_v6 = vld [vmem:[%s12942_s2 + $0x3f0] sm:$0xff]   ;;  %12999 = vst [vmem:[#allocation21_spill] sm:$0xff] %v12146_v10 }
 0x298   : > { %9794 = vmatmul.mubr.bf16.gmra.mrb[4].mxu1 %v12070_v46  ;;  %9453 = vmatprep.subr.bf16.mxu0 %v10868_v43 }
 0x299   : > { %9797 = vmatprep.mubr.bf16.mxu1 %v12075_v7  ;;  %9818 = vmatpush3.bf16.msra.mxu1 %v10861_v14  ;;  %v10869_v14 = vld [vmem:[%s12942_s2 + $0x3f8] sm:$0xff]  }
 0x29a   : > { %9406 = vmatmul.mubr.bf16.gmra.mrb[136].mxu0 %v12112_v35  ;;  %9819 = vmatprep.subr.bf16.mxu1 %v10863_v13 }
 0x29b   : > { %9409 = vmatprep.mubr.bf16.mxu0 %v12117_v18 }
 0x29d   : > { %9820 = vmatpush3.bf16.msra.mxu1 %v10863_v13  ;;  %v12149_v13 = vrot.slane %v11730_v58, 2 }
 0x29e   : > { %9821 = vmatprep.subr.bf16.mxu1 %v10865_v39 }
 0x2a0   : > { %9798 = vmatmul.mubr.bf16.gmra.mrb[8].mxu1 %v12091_v32 }
 0x2a1   : > { %9801 = vmatprep.mubr.bf16.mxu1 %v12096_v4  ;;  %9822 = vmatpush3.bf16.msra.mxu1 %v10865_v39  ;;  %v10870_v39 = vld [vmem:[%s12942_s2 + $0x188] sm:$0xff]  }
 0x2a2   : > { %9410 = vmatmul.mubr.bf16.gmra.mrb[156].mxu0 %v3320_v0  ;;  %9823 = vmatprep.subr.bf16.mxu1 %v10866_v34 }
 0x2a3   : > { %9429 = vmatprep.mubr.bf16.mxu0 %v11226_v8  ;;  %v10872_v8 = vld [vmem:[%s12942_s2 + $0x400] sm:$0xff]  }
 0x2a5   : > { %9824 = vmatpush3.bf16.msra.mxu1 %v10866_v34  ;;  %v10871_v34 = vld [vmem:[%s12942_s2 + $0x190] sm:$0xff]  }
 0x2a6   : > { %9825 = vmatprep.subr.bf16.mxu1 %v10867_v6 }
 0x2a8   : > { %9802 = vmatmul.mubr.bf16.gmra.mrb[12].mxu1 %v12112_v35 }
 0x2a9   : > { %9805 = vmatprep.mubr.bf16.mxu1 %v12117_v18  ;;  %9826 = vmatpush3.bf16.msra.mxu1 %v10867_v6  ;;  %v10873_v6 = vld [vmem:[%s12942_s2 + $0x198] sm:$0xff]  }
 0x2aa   : > { %9430 = vmatmul.mubr.bf16.vlgmr.msra.gmra.mrb[120].mxu0 %v11251_v9  ;;  %9827 = vmatprep.subr.bf16.mxu1 %v10869_v14  ;;  %v12156_v9 = vsel %vm3298_vm3, %v3320_v0, %v12146_v10  ;;  %v10875_v0 = vld [vmem:[%s12942_s2 + $0x1a0] sm:$0xff]  }
 0x2ab   : > { %9433 = vmatprep.mubr.bf16.mxu0 %v11313_v24  ;;  %9454 = vmatpush3.bf16.msra.mxu0 %v10868_v43  ;;  %13000 = vst [vmem:[#allocation22_spill] sm:$0xff] %v12156_v9  ;;  %v12162_v43 = vsel %vm3298_vm3, %v12146_v10, %v12149_v13 }
 0x2ac   : > { %9455 = vmatprep.subr.bf16.mxu0 %v10870_v39  ;;  %13001 = vst [vmem:[#allocation23_spill] sm:$0xff] %v12162_v43 }
 0x2ad   : > { %9828 = vmatpush3.bf16.msra.mxu1 %v10869_v14 }
 0x2ae   : > { %9853 = vmatprep.subr.bf16.mxu1 %v10872_v8 }
 0x2af   : > { %9456 = vmatpush3.bf16.msra.mxu0 %v10870_v39 }
 0x2b0   : > { %9806 = vmatmul.mubr.bf16.gmra.mrb[16].mxu1 %v12156_v9  ;;  %9457 = vmatprep.subr.bf16.mxu0 %v10871_v34 }
 0x2b1   : > { %9809 = vmatprep.mubr.bf16.mxu1 %v12162_v43 }
 0x2b2   : > { %9434 = vmatmul.mubr.bf16.gmra.mrb[124].mxu0 %v11377_v28 }
 0x2b3   : > { %9437 = vmatprep.mubr.bf16.mxu0 %v11443_v55  ;;  %9458 = vmatpush3.bf16.msra.mxu0 %v10871_v34  ;;  %v12173_v14 = vpop.f32.mrb[140].mxu0  ;;  %v10876_v34 = vld [vmem:[%s12942_s2 + $0x1a8] sm:$0xff]  }
 0x2b4   : > { %9459 = vmatprep.subr.bf16.mxu0 %v10873_v6  ;;  %v12175_v39 = vpop.f32.mrb[141].mxu0 }
 0x2b5   : > { %v9252_v10 = vpop.f32.mrb[142].mxu0 }
 0x2b6   : > { %v12177_v9 = vpop.f32.mrb[143].mxu0  ;;  %v10878_v10 = vld [vmem:[%s12942_s2 + $0x1b0] sm:$0xff]  }
 0x2b7   : > { %9460 = vmatpush3.bf16.msra.mxu0 %v10873_v6  ;;  %v10874_v6 = vld [vmem:[%s12942_s2 + $0x408] sm:$0xff]  }
 0x2b8   : > { %9810 = vmatmul.mubr.bf16.gmra.mrb[36].mxu1 %v12149_v13  ;;  %9461 = vmatprep.subr.bf16.mxu0 %v10875_v0 }
 0x2b9   : > { %9829 = vmatprep.mubr.bf16.mxu1 %v11313_v24  ;;  %v10880_v24 = vld [vmem:[%s12942_s2 + $0x1b8] sm:$0xff]  }
 0x2ba   : > { %9438 = vmatmul.mubr.bf16.gmra.mrb[128].mxu0 %v11500_v15 }
 0x2bb   : > { %9441 = vmatprep.mubr.bf16.mxu0 %v11535_v44  ;;  %9462 = vmatpush3.bf16.msra.mxu0 %v10875_v0  ;;  %v10877_v0 = vld [vmem:[%s12942_s2 + $0x410] sm:$0xff]  }
 0x2bc   : > { %9463 = vmatprep.subr.bf16.mxu0 %v10876_v34 }
 0x2bf   : > { %9464 = vmatpush3.bf16.msra.mxu0 %v10876_v34  ;;  %v10884_v34 = vld [vmem:[%s12942_s2 + $0x1c0] sm:$0xff]  }
 0x2c0   : > { %9830 = vmatmul.mubr.bf16.vlgmr.msra.gmra.mrb[0].mxu1 %v11377_v28  ;;  %9465 = vmatprep.subr.bf16.mxu0 %v10878_v10 }
 0x2c1   : > { %9854 = vmatpush3.bf16.msra.mxu1 %v10872_v8  ;;  %9833 = vmatprep.mubr.bf16.mxu1 %v11443_v55  ;;  %v10879_v8 = vld [vmem:[%s12942_s2 + $0x418] sm:$0xff]  }
 0x2c2   : > { %9442 = vmatmul.mubr.bf16.gmra.mrb[132].mxu0 %v11567_v62  ;;  %9855 = vmatprep.subr.bf16.mxu1 %v10874_v6 }
 0x2c3   : > { %9445 = vmatprep.mubr.bf16.mxu0 %v11599_v51  ;;  %9466 = vmatpush3.bf16.msra.mxu0 %v10878_v10  ;;  %v10881_v10 = vld [vmem:[%s12942_s2 + $0x420] sm:$0xff]  }
 0x2c4   : > { %9467 = vmatprep.subr.bf16.mxu0 %v10880_v24 }
 0x2c5   : > { %9856 = vmatpush3.bf16.msra.mxu1 %v10874_v6 }
 0x2c6   : > { %9857 = vmatprep.subr.bf16.mxu1 %v10877_v0 }
 0x2c7   : > { %9468 = vmatpush3.bf16.msra.mxu0 %v10880_v24 }
 0x2c8   : > { %9834 = vmatmul.mubr.bf16.gmra.mrb[4].mxu1 %v11500_v15  ;;  %9493 = vmatprep.subr.bf16.mxu0 %v10884_v34 }
 0x2c9   : > { %9837 = vmatprep.mubr.bf16.mxu1 %v11535_v44  ;;  %9858 = vmatpush3.bf16.msra.mxu1 %v10877_v0  ;;  %v10882_v0 = vld [vmem:[%s12942_s2 + $0x428] sm:$0xff]  }
 0x2ca   : > { %9446 = vmatmul.mubr.bf16.gmra.mrb[136].mxu0 %v11631_v41  ;;  %9859 = vmatprep.subr.bf16.mxu1 %v10879_v8 }
 0x2cb   : > { %9449 = vmatprep.mubr.bf16.mxu0 %v11663_v40  ;;  %v12215_v6 = vpop.f32.mrb[20].mxu1 }
 0x2cc   : > { %13002 = vst [vmem:[#allocation24_spill] sm:$0xff] %v12215_v6  ;;  %v12217_v55 = vpop.f32.mrb[21].mxu1 }
 0x2cd   : > { %13003 = vst [vmem:[#allocation25_spill] sm:$0xff] %v12217_v55  ;;  %v9652_v24 = vpop.f32.mrb[22].mxu1  ;;  %9860 = vmatpush3.bf16.msra.mxu1 %v10879_v8  ;;  %v13005_v8 = vld [vmem:[#allocation3_spill] sm:$0xff] }
 0x2ce   : > { %v12219_v15 = vpop.f32.mrb[23].mxu1  ;;  %9861 = vmatprep.subr.bf16.mxu1 %v10881_v10  ;;  %v10883_v24 = vld [vmem:[%s12942_s2 + $0x430] sm:$0xff]  }
 0x2cf   : > { %13004 = vst [vmem:[#allocation26_spill] sm:$0xff] %v12219_v15  ;;  %v10885_v15 = vld [vmem:[%s12942_s2 + $0x438] sm:$0xff]  }
 0x2d0   : > { %9838 = vmatmul.mubr.bf16.gmra.mrb[8].mxu1 %v11567_v62 }
 0x2d1   : > { %9841 = vmatprep.mubr.bf16.mxu1 %v11599_v51  ;;  %9862 = vmatpush3.bf16.msra.mxu1 %v10881_v10  ;;  %v10886_v10 = vld [vmem:[%s12942_s2 + $0x1c8] sm:$0xff]  }
 0x2d2   : > { %9450 = vmatmul.mubr.bf16.gmra.mrb[160].mxu0 %v11694_v50  ;;  %9863 = vmatprep.subr.bf16.mxu1 %v10882_v0 }
 0x2d3   : > { %9469 = vmatprep.mubr.bf16.mxu0 %v13005_v8  ;;  %v10887_v8 = vld [vmem:[%s12942_s2 + $0x1d0] sm:$0xff]  }
 0x2d5   : > { %9864 = vmatpush3.bf16.msra.mxu1 %v10882_v0  ;;  %v10888_v0 = vld [vmem:[%s12942_s2 + $0x440] sm:$0xff]  }
 0x2d6   : > { %9865 = vmatprep.subr.bf16.mxu1 %v10883_v24 }
 0x2d8   : > { %9842 = vmatmul.mubr.bf16.gmra.mrb[12].mxu1 %v11631_v41 }
 0x2d9   : > { %9845 = vmatprep.mubr.bf16.mxu1 %v11663_v40  ;;  %9866 = vmatpush3.bf16.msra.mxu1 %v10883_v24 }
 0x2da   : > { %9470 = vmatmul.mubr.bf16.vlgmr.msra.gmra.mrb[120].mxu0 %v11351_v59  ;;  %9867 = vmatprep.subr.bf16.mxu1 %v10885_v15  ;;  %v10889_v59 = vld [vmem:[%s12942_s2 + $0x1d8] sm:$0xff]  }
 0x2db   : > { %9473 = vmatprep.mubr.bf16.mxu0 %v11415_v11  ;;  %9494 = vmatpush3.bf16.msra.mxu0 %v10884_v34 }
 0x2dc   : > { %9495 = vmatprep.subr.bf16.mxu0 %v10886_v10 }
 0x2dd   : > { %9868 = vmatpush3.bf16.msra.mxu1 %v10885_v15  ;;  %v10891_v15 = vld [vmem:[%s12942_s2 + $0x1e0] sm:$0xff]  }
 0x2de   : > { %9893 = vmatprep.subr.bf16.mxu1 %v10888_v0 }
 0x2df   : > { %9496 = vmatpush3.bf16.msra.mxu0 %v10886_v10 }
 0x2e0   : > { %9846 = vmatmul.mubr.bf16.gmra.mrb[16].mxu1 %v11694_v50  ;;  %9497 = vmatprep.subr.bf16.mxu0 %v10887_v8  ;;  %v12969_v50 = vmov 0.0|0.0  }
 0x2e1   : > { %9849 = vmatprep.mubr.bf16.mxu1 %v11730_v58 }
 0x2e2   : > { %9474 = vmatmul.mubr.bf16.gmra.mrb[124].mxu0 %v11482_v17 }
 0x2e3   : > { %9477 = vmatprep.mubr.bf16.mxu0 %v11522_v37  ;;  %9498 = vmatpush3.bf16.msra.mxu0 %v10887_v8  ;;  %v9291_v34 = vpop.f32.mrb[144].mxu0  ;;  %v10892_v8 = vld [vmem:[%s12942_s2 + $0x1e8] sm:$0xff]  }
 0x2e4   : > { %9499 = vmatprep.subr.bf16.mxu0 %v10889_v59  ;;  %v12258_v24 = vadd.f32 %v9291_v34, %v12173_v14  ;;  %v2730_v10 = vpop.f32.mrb[145].mxu0  ;;  %v10894_v14 = vld [vmem:[%s12942_s2 + $0x1f0] sm:$0xff]  }
 0x2e5   : > { %v12261_v55 = vadd.f32 %v2730_v10, %v12175_v39  ;;  %v9292_v6 = vpop.f32.mrb[146].mxu0  ;;  %v10890_v39 = vld [vmem:[%s12942_s2 + $0x448] sm:$0xff]  }
 0x2e6   : > { %v2733_v58 = vpop.f32.mrb[147].mxu0  ;;  %v10895_v6 = vld [vmem:[%s12942_s2 + $0x458] sm:$0xff]  }
 0x2e7   : > { %9500 = vmatpush3.bf16.msra.mxu0 %v10889_v59  ;;  %v12268_v40 = vadd.f32 %v2733_v58, %v12177_v9  ;;  %v10893_v58 = vld [vmem:[%s12942_s2 + $0x450] sm:$0xff]   ;;  %v10900_v9 = vld [vmem:[%s12942_s2 + $0x200] sm:$0xff]  }
 0x2e8   : > { %9850 = vmatmul.mubr.bf16.gmra.mrb[40].mxu1 %v12969_v50  ;;  %9501 = vmatprep.subr.bf16.mxu0 %v10891_v15 }
 0x2e9   : > { %9869 = vmatprep.mubr.bf16.mxu1 %v11415_v11  ;;  %v10896_v11 = vld [vmem:[%s12942_s2 + $0x1f8] sm:$0xff]  }
 0x2ea   : > { %9478 = vmatmul.mubr.bf16.gmra.mrb[128].mxu0 %v11554_v29 }
 0x2eb   : > { %9481 = vmatprep.mubr.bf16.mxu0 %v11586_v61  ;;  %9502 = vmatpush3.bf16.msra.mxu0 %v10891_v15 }
 0x2ec   : > { %9503 = vmatprep.subr.bf16.mxu0 %v10892_v8 }
 0x2ef   : > { %9504 = vmatpush3.bf16.msra.mxu0 %v10892_v8  ;;  %v10898_v8 = vld [vmem:[%s12942_s2 + $0x468] sm:$0xff]  }
 0x2f0   : > { %9870 = vmatmul.mubr.bf16.vlgmr.msra.gmra.mrb[0].mxu1 %v11482_v17  ;;  %9505 = vmatprep.subr.bf16.mxu0 %v10894_v14 }
 0x2f1   : > { %9894 = vmatpush3.bf16.msra.mxu1 %v10888_v0  ;;  %9873 = vmatprep.mubr.bf16.mxu1 %v11522_v37  ;;  %v10897_v0 = vld [vmem:[%s12942_s2 + $0x460] sm:$0xff]  }
 0x2f2   : > { %9482 = vmatmul.mubr.bf16.gmra.mrb[132].mxu0 %v11618_v22  ;;  %9895 = vmatprep.subr.bf16.mxu1 %v10890_v39 }
 0x2f3   : > { %9485 = vmatprep.mubr.bf16.mxu0 %v11650_v23  ;;  %9506 = vmatpush3.bf16.msra.mxu0 %v10894_v14  ;;  %v10899_v14 = vld [vmem:[%s12942_s2 + $0x470] sm:$0xff]  }
 0x2f4   : > { %9507 = vmatprep.subr.bf16.mxu0 %v10896_v11 }
 0x2f5   : > { %9896 = vmatpush3.bf16.msra.mxu1 %v10890_v39  ;;  %v10901_v39 = vld [vmem:[%s12942_s2 + $0x478] sm:$0xff]  }
 0x2f6   : > { %9897 = vmatprep.subr.bf16.mxu1 %v10893_v58 }
 0x2f7   : > { %9508 = vmatpush3.bf16.msra.mxu0 %v10896_v11  ;;  %v10902_v11 = vld [vmem:[%s12942_s2 + $0x208] sm:$0xff]  }
 0x2f8   : > { %9874 = vmatmul.mubr.bf16.gmra.mrb[4].mxu1 %v11554_v29  ;;  %9533 = vmatprep.subr.bf16.mxu0 %v10900_v9 }
 0x2f9   : > { %9877 = vmatprep.mubr.bf16.mxu1 %v11586_v61  ;;  %9898 = vmatpush3.bf16.msra.mxu1 %v10893_v58  ;;  %v12968_v58 = vmov 0  }
 0x2fa   : > { %9486 = vmatmul.mubr.bf16.gmra.mrb[136].mxu0 %v11681_v33  ;;  %9899 = vmatprep.subr.bf16.mxu1 %v10895_v6 }
 0x2fb   : > { %9489 = vmatprep.mubr.bf16.mxu0 %v11827_v42  ;;  %v12302_v59 = vpop.f32.mrb[24].mxu1 }
 0x2fc   : > { %v12304_v15 = vpop.f32.mrb[25].mxu1 }
 0x2fd   : > { %v9692_v34 = vpop.f32.mrb[26].mxu1  ;;  %9900 = vmatpush3.bf16.msra.mxu1 %v10895_v6  ;;  %v12335_v6 = vrot.slane %v12968_v58, 1 }
 0x2fe   : > { %v12306_v10 = vpop.f32.mrb[27].mxu1  ;;  %9901 = vmatprep.subr.bf16.mxu1 %v10897_v0 }
 0x2ff   : > { %13006 = vst [vmem:[#allocation3_spill] sm:$0xff] %v12306_v10 }
 0x300   : > { %9878 = vmatmul.mubr.bf16.gmra.mrb[8].mxu1 %v11618_v22 }
 0x301   : > { %9881 = vmatprep.mubr.bf16.mxu1 %v11650_v23  ;;  %9902 = vmatpush3.bf16.msra.mxu1 %v10897_v0  ;;  %v10907_v0 = vld [vmem:[%s12942_s2 + $0x220] sm:$0xff]  }
 0x302   : > { %9490 = vmatmul.mubr.bf16.gmra.mrb[164].mxu0 %v11823_v19  ;;  %9903 = vmatprep.subr.bf16.mxu1 %v10898_v8  ;;  %v10903_v19 = vld [vmem:[%s12942_s2 + $0x210] sm:$0xff]  }
 0x303   : > { %9509 = vmatprep.mubr.bf16.mxu0 %v11801_v16  ;;  %v10904_v16 = vld [vmem:[%s12942_s2 + $0x480] sm:$0xff]  }
 0x305   : > { %9904 = vmatpush3.bf16.msra.mxu1 %v10898_v8 }
 0x306   : > { %9905 = vmatprep.subr.bf16.mxu1 %v10899_v14 }
 0x308   : > { %9882 = vmatmul.mubr.bf16.gmra.mrb[12].mxu1 %v11681_v33 }
 0x309   : > { %9885 = vmatprep.mubr.bf16.mxu1 %v11827_v42  ;;  %9906 = vmatpush3.bf16.msra.mxu1 %v10899_v14 }
 0x30a   : > { %9510 = vmatmul.mubr.bf16.vlgmr.msra.gmra.mrb[120].mxu0 %v11806_v2  ;;  %9907 = vmatprep.subr.bf16.mxu1 %v10901_v39  ;;  %v12341_v2 = vsel %vm2284_vm1, %v11853_v26, %v12335_v6 }
 0x30b   : > { %9513 = vmatprep.mubr.bf16.mxu0 %v11838_v60  ;;  %9534 = vmatpush3.bf16.msra.mxu0 %v10900_v9  ;;  %v10905_v9 = vld [vmem:[%s12942_s2 + $0x218] sm:$0xff]  }
 0x30c   : > { %9535 = vmatprep.subr.bf16.mxu0 %v10902_v11 }
 0x30d   : > { %9908 = vmatpush3.bf16.msra.mxu1 %v10901_v39 }
 0x30e   : > { %9933 = vmatprep.subr.bf16.mxu1 %v10904_v16 }
 0x30f   : > { %9536 = vmatpush3.bf16.msra.mxu0 %v10902_v11 }
 0x310   : > { %9886 = vmatmul.mubr.bf16.gmra.mrb[16].mxu1 %v11832_v5  ;;  %9537 = vmatprep.subr.bf16.mxu0 %v10903_v19 }
 0x311   : > { %9889 = vmatprep.mubr.bf16.mxu1 %v12341_v2 }
 0x312   : > { %9514 = vmatmul.mubr.bf16.gmra.mrb[124].mxu0 %v11843_v45 }
 0x313   : > { %9517 = vmatprep.mubr.bf16.mxu0 %v11860_v38  ;;  %9538 = vmatpush3.bf16.msra.mxu0 %v10903_v19  ;;  %v10908_v19 = vld [vmem:[%s12942_s2 + $0x228] sm:$0xff]  }
 0x314   : > { %9539 = vmatprep.subr.bf16.mxu0 %v10905_v9 }
 0x315   : > { %v9331_v34 = vpop.f32.mrb[148].mxu0 }
 0x316   : > { %v12353_v26 = vadd.f32 %v9331_v34, %v12258_v24  ;;  %v2970_v8 = vpop.f32.mrb[149].mxu0  ;;  %v10906_v24 = vld [vmem:[%s12942_s2 + $0x488] sm:$0xff]  }
 0x317   : > { %v12356_v14 = vadd.f32 %v2970_v8, %v12261_v55  ;;  %v9332_v39 = vpop.f32.mrb[150].mxu0  ;;  %9540 = vmatpush3.bf16.msra.mxu0 %v10905_v9  ;;  %v10910_v55 = vld [vmem:[%s12942_s2 + $0x230] sm:$0xff]   ;;  %v10916_v9 = vld [vmem:[%s12942_s2 + $0x240] sm:$0xff]  }
 0x318   : > { %v2973_v11 = vpop.f32.mrb[151].mxu0  ;;  %9890 = vmatmul.mubr.bf16.gmra.mrb[44].mxu1 %v12335_v6  ;;  %9541 = vmatprep.subr.bf16.mxu0 %v10907_v0 }
 0x319   : > { %v12363_v58 = vadd.f32 %v2973_v11, %v12268_v40  ;;  %9909 = vmatprep.mubr.bf16.mxu1 %v11838_v60  ;;  %v10912_v40 = vld [vmem:[%s12942_s2 + $0x238] sm:$0xff]   ;;  %v10909_v60 = vld [vmem:[%s12942_s2 + $0x490] sm:$0xff]  }
 0x31a   : > { %9518 = vmatmul.mubr.bf16.gmra.mrb[128].mxu0 %v11865_v3 }
 0x31b   : > { %9521 = vmatprep.mubr.bf16.mxu0 %v11881_v48  ;;  %9542 = vmatpush3.bf16.msra.mxu0 %v10907_v0  ;;  %v10913_v0 = vld [vmem:[%s12942_s2 + $0x4a0] sm:$0xff]  }
 0x31c   : > { %9543 = vmatprep.subr.bf16.mxu0 %v10908_v19 }
 0x31f   : > { %9544 = vmatpush3.bf16.msra.mxu0 %v10908_v19  ;;  %v10914_v19 = vld [vmem:[%s12942_s2 + $0x4a8] sm:$0xff]  }
 0x320   : > { %9910 = vmatmul.mubr.bf16.vlgmr.msra.gmra.mrb[0].mxu1 %v11843_v45  ;;  %9545 = vmatprep.subr.bf16.mxu0 %v10910_v55 }
 0x321   : > { %9934 = vmatpush3.bf16.msra.mxu1 %v10904_v16  ;;  %9913 = vmatprep.mubr.bf16.mxu1 %v11860_v38  ;;  %v10911_v16 = vld [vmem:[%s12942_s2 + $0x498] sm:$0xff]  }
 0x322   : > { %9522 = vmatmul.mubr.bf16.gmra.mrb[132].mxu0 %v11886_v27  ;;  %9935 = vmatprep.subr.bf16.mxu1 %v10906_v24 }
 0x323   : > { %9525 = vmatprep.mubr.bf16.mxu0 %v11902_v53  ;;  %9546 = vmatpush3.bf16.msra.mxu0 %v10910_v55  ;;  %v10915_v55 = vld [vmem:[%s12942_s2 + $0x4b0] sm:$0xff]  }
 0x324   : > { %9547 = vmatprep.subr.bf16.mxu0 %v10912_v40 }
 0x325   : > { %9936 = vmatpush3.bf16.msra.mxu1 %v10906_v24  ;;  %v10917_v24 = vld [vmem:[%s12942_s2 + $0x4b8] sm:$0xff]  }
 0x326   : > { %9937 = vmatprep.subr.bf16.mxu1 %v10909_v60 }
 0x327   : > { %9548 = vmatpush3.bf16.msra.mxu0 %v10912_v40  ;;  %v10918_v40 = vld [vmem:[%s12942_s2 + $0x248] sm:$0xff]  }
 0x328   : > { %9914 = vmatmul.mubr.bf16.gmra.mrb[4].mxu1 %v11865_v3  ;;  %9573 = vmatprep.subr.bf16.mxu0 %v10916_v9 }
 0x329   : > { %9917 = vmatprep.mubr.bf16.mxu1 %v11881_v48  ;;  %9938 = vmatpush3.bf16.msra.mxu1 %v10909_v60  ;;  %v10919_v60 = vld [vmem:[%s12942_s2 + $0x250] sm:$0xff]  }
 0x32a   : > { %9526 = vmatmul.mubr.bf16.gmra.mrb[136].mxu0 %v11907_v12  ;;  %9939 = vmatprep.subr.bf16.mxu1 %v10911_v16 }
 0x32b   : > { %9529 = vmatprep.mubr.bf16.mxu0 %v11946_v25  ;;  %v12397_v34 = vpop.f32.mrb[28].mxu1 }
 0x32c   : > { %v12399_v8 = vpop.f32.mrb[29].mxu1 }
 0x32d   : > { %v9732_v39 = vpop.f32.mrb[30].mxu1  ;;  %9940 = vmatpush3.bf16.msra.mxu1 %v10911_v16  ;;  %v10923_v16 = vld [vmem:[%s12942_s2 + $0x260] sm:$0xff]  }
 0x32e   : > { %v12401_v11 = vpop.f32.mrb[31].mxu1  ;;  %9941 = vmatprep.subr.bf16.mxu1 %v10913_v0 }
 0x32f   : > { %13007 = vst [vmem:[#allocation27_spill] sm:$0xff] %v12401_v11 }
 0x330   : > { %9918 = vmatmul.mubr.bf16.gmra.mrb[8].mxu1 %v11886_v27 }
 0x331   : > { %9921 = vmatprep.mubr.bf16.mxu1 %v11902_v53  ;;  %9942 = vmatpush3.bf16.msra.mxu1 %v10913_v0 }
 0x332   : > { %9530 = vmatmul.mubr.bf16.gmra.mrb[168].mxu0 %v11936_v54  ;;  %9943 = vmatprep.subr.bf16.mxu1 %v10914_v19  ;;  %v12427_v54 = vrot.slane %v12969_v50, 1  ;;  %v13017_v50 = vld [vmem:[#allocation14_spill] sm:$0xff] }
 0x333   : > { %9549 = vmatprep.mubr.bf16.mxu0 %v11327_v30  ;;  %v10920_v30 = vld [vmem:[%s12942_s2 + $0x4c0] sm:$0xff]  }
 0x335   : > { %9944 = vmatpush3.bf16.msra.mxu1 %v10914_v19 }
 0x336   : > { %9945 = vmatprep.subr.bf16.mxu1 %v10915_v55 }
 0x338   : > { %9922 = vmatmul.mubr.bf16.gmra.mrb[12].mxu1 %v11907_v12 }
 0x339   : > { %9925 = vmatprep.mubr.bf16.mxu1 %v11946_v25  ;;  %9946 = vmatpush3.bf16.msra.mxu1 %v10915_v55 }
 0x33a   : > { %9550 = vmatmul.mubr.bf16.vlgmr.msra.gmra.mrb[120].mxu0 %v11397_v49  ;;  %9947 = vmatprep.subr.bf16.mxu1 %v10917_v24  ;;  %v12436_v49 = vsel %vm1488_vm0, %v11939_v36, %v12427_v54 }
 0x33b   : > { %9553 = vmatprep.mubr.bf16.mxu0 %v11460_v63  ;;  %9574 = vmatpush3.bf16.msra.mxu0 %v10916_v9  ;;  %v10921_v9 = vld [vmem:[%s12942_s2 + $0x258] sm:$0xff]  }
 0x33c   : > { %9575 = vmatprep.subr.bf16.mxu0 %v10918_v40 }
 0x33d   : > { %9948 = vmatpush3.bf16.msra.mxu1 %v10917_v24 }
 0x33e   : > { %9973 = vmatprep.subr.bf16.mxu1 %v10920_v30 }
 0x33f   : > { %9576 = vmatpush3.bf16.msra.mxu0 %v10918_v40  ;;  %v10924_v40 = vld [vmem:[%s12942_s2 + $0x268] sm:$0xff]  }
 0x340   : > { %9926 = vmatmul.mubr.bf16.gmra.mrb[16].mxu1 %v11952_v57  ;;  %9577 = vmatprep.subr.bf16.mxu0 %v10919_v60 }
 0x341   : > { %9929 = vmatprep.mubr.bf16.mxu1 %v12436_v49 }
 0x342   : > { %9554 = vmatmul.mubr.bf16.gmra.mrb[124].mxu0 %v11510_v20 }
 0x343   : > { %9557 = vmatprep.mubr.bf16.mxu0 %v11542_v56  ;;  %9578 = vmatpush3.bf16.msra.mxu0 %v10919_v60 }
 0x344   : > { %9579 = vmatprep.subr.bf16.mxu0 %v10921_v9 }
 0x345   : > { %v9371_v0 = vpop.f32.mrb[152].mxu0 }
 0x346   : > { %v12448_v36 = vadd.f32 %v9371_v0, %v12353_v26  ;;  %v3245_v39 = vpop.f32.mrb[153].mxu0  ;;  %v10926_v26 = vld [vmem:[%s12942_s2 + $0x270] sm:$0xff]  }
 0x347   : > { %v12451_v19 = vadd.f32 %v3245_v39, %v12356_v14  ;;  %v9372_v55 = vpop.f32.mrb[154].mxu0  ;;  %9580 = vmatpush3.bf16.msra.mxu0 %v10921_v9  ;;  %v10922_v14 = vld [vmem:[%s12942_s2 + $0x4c8] sm:$0xff]   ;;  %v10927_v9 = vld [vmem:[%s12942_s2 + $0x4d8] sm:$0xff]  }
 0x348   : > { %v3248_v24 = vpop.f32.mrb[155].mxu0  ;;  %9930 = vmatmul.mubr.bf16.gmra.mrb[48].mxu1 %v12427_v54  ;;  %9581 = vmatprep.subr.bf16.mxu0 %v10923_v16 }
 0x349   : > { %v12458_v60 = vadd.f32 %v3248_v24, %v12363_v58  ;;  %9949 = vmatprep.mubr.bf16.mxu1 %v11460_v63  ;;  %v10928_v63 = vld [vmem:[%s12942_s2 + $0x278] sm:$0xff]   ;;  %v10925_v58 = vld [vmem:[%s12942_s2 + $0x4d0] sm:$0xff]  }
 0x34a   : > { %9558 = vmatmul.mubr.bf16.gmra.mrb[128].mxu0 %v11574_v31 }
 0x34b   : > { %9561 = vmatprep.mubr.bf16.mxu0 %v11606_v1  ;;  %9582 = vmatpush3.bf16.msra.mxu0 %v10923_v16  ;;  %v13008_v16 = vld [vmem:[#allocation13_spill] sm:$0xff] }
 0x34c   : > { %9583 = vmatprep.subr.bf16.mxu0 %v10924_v40 }
 0x34f   : > { %9584 = vmatpush3.bf16.msra.mxu0 %v10924_v40  ;;  %v10930_v40 = vld [vmem:[%s12942_s2 + $0x4e8] sm:$0xff]  }
 0x350   : > { %9950 = vmatmul.mubr.bf16.vlgmr.msra.gmra.mrb[0].mxu1 %v11510_v20  ;;  %9585 = vmatprep.subr.bf16.mxu0 %v10926_v26 }
 0x351   : > { %9974 = vmatpush3.bf16.msra.mxu1 %v10920_v30  ;;  %9953 = vmatprep.mubr.bf16.mxu1 %v11542_v56  ;;  %v10929_v30 = vld [vmem:[%s12942_s2 + $0x4e0] sm:$0xff]  }
 0x352   : > { %9562 = vmatmul.mubr.bf16.gmra.mrb[132].mxu0 %v12987_v21  ;;  %9975 = vmatprep.subr.bf16.mxu1 %v10922_v14 }
 0x353   : > { %9565 = vmatprep.mubr.bf16.mxu0 %v12988_v52  ;;  %9586 = vmatpush3.bf16.msra.mxu0 %v10926_v26  ;;  %v13012_v26 = vld [vmem:[#allocation10_spill] sm:$0xff] }
 0x354   : > { %9587 = vmatprep.subr.bf16.mxu0 %v10928_v63 }
 0x355   : > { %9976 = vmatpush3.bf16.msra.mxu1 %v10922_v14  ;;  %v10931_v14 = vld [vmem:[%s12942_s2 + $0x4f0] sm:$0xff]  }
 0x356   : > { %9977 = vmatprep.subr.bf16.mxu1 %v10925_v58 }
 0x357   : > { %9588 = vmatpush3.bf16.msra.mxu0 %v10928_v63  ;;  %v13013_v63 = vld [vmem:[#allocation6_spill] sm:$0xff] }
 0x358   : > { %9954 = vmatmul.mubr.bf16.gmra.mrb[4].mxu1 %v11574_v31 }
 0x359   : > { %9957 = vmatprep.mubr.bf16.mxu1 %v11606_v1  ;;  %9978 = vmatpush3.bf16.msra.mxu1 %v10925_v58  ;;  %v10932_v58 = vld [vmem:[%s12942_s2 + $0x4f8] sm:$0xff]  }
 0x35a   : > { %9566 = vmatmul.mubr.bf16.gmra.mrb[136].mxu0 %v11701_v47  ;;  %9979 = vmatprep.subr.bf16.mxu1 %v10927_v9 }
 0x35b   : > { %9569 = vmatprep.mubr.bf16.mxu0 %v13008_v16  ;;  %v12489_v0 = vpop.f32.mrb[32].mxu1 }
 0x35c   : > { %13009 = vst [vmem:[#allocation13_spill] sm:$0xff] %v12489_v0  ;;  %v12491_v39 = vpop.f32.mrb[33].mxu1 }
 0x35d   : > { %13010 = vst [vmem:[#allocation28_spill] sm:$0xff] %v12491_v39  ;;  %v9772_v55 = vpop.f32.mrb[34].mxu1  ;;  %9980 = vmatpush3.bf16.msra.mxu1 %v10927_v9  ;;  %v13014_v9 = vmov 0  }
 0x35e   : > { %v12493_v24 = vpop.f32.mrb[35].mxu1  ;;  %9981 = vmatprep.subr.bf16.mxu1 %v10929_v30  ;;  %v6410_v55 = vrot.slane %v13014_v9, 2  ;;  %v13018_v9 = vld [vmem:[#allocation12_spill] sm:$0xff] }
 0x35f   : > { %13011 = vst [vmem:[#allocation29_spill] sm:$0xff] %v12493_v24 }
 0x360   : > { %9958 = vmatmul.mubr.bf16.gmra.mrb[8].mxu1 %v12987_v21 }
 0x361   : > { %9961 = vmatprep.mubr.bf16.mxu1 %v12988_v52  ;;  %9982 = vmatpush3.bf16.msra.mxu1 %v10929_v30  ;;  %v13015_v30 = vld [vmem:[#allocation8_spill] sm:$0xff] }
 0x362   : > { %9570 = vmatmul.mubr.bf16.gmra.mrb[172].mxu0 %v13012_v26  ;;  %9983 = vmatprep.subr.bf16.mxu1 %v10930_v40  ;;  %v10933_v26 = vld [vmem:[%s12942_s2 + $0x500] sm:$0xff]  }
 0x363   : > { %9589 = vmatprep.mubr.bf16.mxu0 %v13013_v63  ;;  %v12517_v63 = vor.u32 %v6410_v55, %v12335_v6 }
 0x365   : > { %9984 = vmatpush3.bf16.msra.mxu1 %v10930_v40  ;;  %v13016_v40 = vld [vmem:[#allocation15_spill] sm:$0xff] }
 0x366   : > { %9985 = vmatprep.subr.bf16.mxu1 %v10931_v14 }
 0x368   : > { %9962 = vmatmul.mubr.bf16.gmra.mrb[12].mxu1 %v11701_v47 }
 0x369   : > { %9965 = vmatprep.mubr.bf16.mxu1 %v13008_v16  ;;  %9986 = vmatpush3.bf16.msra.mxu1 %v10931_v14  ;;  %v12523_v14 = vsel %vm3023_vm2, %v13018_v9, %v12517_v63  ;;  %v10934_v9 = vld [vmem:[%s12942_s2 + $0x508] sm:$0xff]  }
 0x36a   : > { %9590 = vmatmul.mubr.bf16.vlgmr.msra.gmra.mrb[120].mxu0 %v13015_v30  ;;  %9987 = vmatprep.subr.bf16.mxu1 %v10932_v58  ;;  %v13019_v30 = vld [vmem:[#allocation16_spill] sm:$0xff] }
 0x36b   : > { %9593 = vmatprep.mubr.bf16.mxu0 %v13016_v40 }
 0x36d   : > { %9988 = vmatpush3.bf16.msra.mxu1 %v10932_v58 }
 0x36e   : > { %10013 = vmatprep.subr.bf16.mxu1 %v10933_v26 }
 0x370   : > { %9966 = vmatmul.mubr.bf16.gmra.mrb[16].mxu1 %v13017_v50 }
 0x371   : > { %9969 = vmatprep.mubr.bf16.mxu1 %v12523_v14 }
 0x372   : > { %9594 = vmatmul.mubr.bf16.gmra.mrb[124].mxu0 %v13019_v30 }
 0x373   : > { %9597 = vmatprep.mubr.bf16.mxu0 %v12070_v46 }
 0x375   : > { %v9411_v24 = vpop.f32.mrb[156].mxu0 }
 0x376   : > { %v3532_v11 = vadd.f32 %v9411_v24, %v12448_v36  ;;  %v3496_v55 = vpop.f32.mrb[157].mxu0  ;;  %v10935_v36 = vld [vmem:[%s12942_s2 + $0x510] sm:$0xff]  }
 0x377   : > { %v3530_v58 = vadd.f32 %v3496_v55, %v12451_v19  ;;  %v9412_v39 = vpop.f32.mrb[158].mxu0  ;;  %v10936_v19 = vld [vmem:[%s12942_s2 + $0x518] sm:$0xff]   ;;  %v10938_v55 = vld [vmem:[%s12942_s2 + $0x528] sm:$0xff]  }
 0x378   : > { %v3499_v0 = vpop.f32.mrb[159].mxu0  ;;  %9970 = vmatmul.mubr.bf16.gmra.mrb[52].mxu1 %v12517_v63 }
 0x379   : > { %v3531_v10 = vadd.f32 %v3499_v0, %v12458_v60  ;;  %9989 = vmatprep.mubr.bf16.mxu1 %v13016_v40  ;;  %v10937_v60 = vld [vmem:[%s12942_s2 + $0x520] sm:$0xff]   ;;  %v13020_v0 = vld [vmem:[#allocation22_spill] sm:$0xff] }
 0x37a   : > { %9598 = vmatmul.mubr.bf16.gmra.mrb[128].mxu0 %v12075_v7 }
 0x37b   : > { %9601 = vmatprep.mubr.bf16.mxu0 %v12091_v32 }
 0x380   : > { %9990 = vmatmul.mubr.bf16.vlgmr.msra.gmra.mrb[0].mxu1 %v13019_v30 }
 0x381   : > { %10014 = vmatpush3.bf16.msra.mxu1 %v10933_v26  ;;  %9993 = vmatprep.mubr.bf16.mxu1 %v12070_v46 }
 0x382   : > { %9602 = vmatmul.mubr.bf16.gmra.mrb[132].mxu0 %v12096_v4  ;;  %10015 = vmatprep.subr.bf16.mxu1 %v10934_v9 }
 0x383   : > { %9605 = vmatprep.mubr.bf16.mxu0 %v12112_v35 }
 0x385   : > { %10016 = vmatpush3.bf16.msra.mxu1 %v10934_v9  ;;  %v13022_v9 = vld [vmem:[#allocation21_spill] sm:$0xff] }
 0x386   : > { %10017 = vmatprep.subr.bf16.mxu1 %v10935_v36 }
 0x388   : > { %9994 = vmatmul.mubr.bf16.gmra.mrb[4].mxu1 %v12075_v7 }
 0x389   : > { %9997 = vmatprep.mubr.bf16.mxu1 %v12091_v32  ;;  %10018 = vmatpush3.bf16.msra.mxu1 %v10935_v36  ;;  %v10939_v36 = vld [vmem:[%s12942_s2 + $0x530] sm:$0xff]  }
 0x38a   : > { %9606 = vmatmul.mubr.bf16.gmra.mrb[136].mxu0 %v12117_v18  ;;  %10019 = vmatprep.subr.bf16.mxu1 %v10936_v19 }
 0x38b   : > { %9609 = vmatprep.mubr.bf16.mxu0 %v13020_v0  ;;  %v12555_v39 = vpop.f32.mrb[36].mxu1 }
 0x38c   : > { %v12557_v24 = vpop.f32.mrb[37].mxu1 }
 0x38d   : > { %v9812_v26 = vpop.f32.mrb[38].mxu1  ;;  %10020 = vmatpush3.bf16.msra.mxu1 %v10936_v19  ;;  %v10940_v19 = vld [vmem:[%s12942_s2 + $0x538] sm:$0xff]  }
 0x38e   : > { %v12559_v40 = vpop.f32.mrb[39].mxu1  ;;  %10021 = vmatprep.subr.bf16.mxu1 %v10937_v60  ;;  %v13023_v26 = vmov 0.0|0.0  }
 0x38f   : > { %13021 = vst [vmem:[#allocation10_spill] sm:$0xff] %v12559_v40 }
 0x390   : > { %9998 = vmatmul.mubr.bf16.gmra.mrb[8].mxu1 %v12096_v4 }
 0x391   : > { %10001 = vmatprep.mubr.bf16.mxu1 %v12112_v35  ;;  %10022 = vmatpush3.bf16.msra.mxu1 %v10937_v60  ;;  %v10941_v60 = vld [vmem:[%s12942_s2 + $0x540] sm:$0xff]  }
 0x392   : > { %9610 = vmatmul.mubr.bf16.gmra.mrb[176].mxu0 %v13022_v9  ;;  %10023 = vmatprep.subr.bf16.mxu1 %v10938_v55  ;;  %v12579_v9 = vrot.slane %v13023_v26, 2 }
 0x395   : > { %10024 = vmatpush3.bf16.msra.mxu1 %v10938_v55  ;;  %v12585_v55 = vsel %vm3298_vm3, %v12149_v13, %v12579_v9  ;;  %v13025_v13 = vld [vmem:[#allocation5_spill] sm:$0xff] }
 0x396   : > { %10025 = vmatprep.subr.bf16.mxu1 %v10939_v36 }
 0x398   : > { %10002 = vmatmul.mubr.bf16.gmra.mrb[12].mxu1 %v12117_v18 }
 0x399   : > { %10005 = vmatprep.mubr.bf16.mxu1 %v13020_v0  ;;  %10026 = vmatpush3.bf16.msra.mxu1 %v10939_v36 }
 0x39a   : > { %10027 = vmatprep.subr.bf16.mxu1 %v10940_v19 }
 0x39d   : > { %10028 = vmatpush3.bf16.msra.mxu1 %v10940_v19  ;;  %v10942_v19 = vld [vmem:[%s12942_s2 + $0x548] sm:$0xff]  }
 0x39e   : > { %10053 = vmatprep.subr.bf16.mxu1 %v10941_v60 }
 0x3a0   : > { %10006 = vmatmul.mubr.bf16.gmra.mrb[16].mxu1 %v12162_v43  ;;  %v13024_v43 = vld [vmem:[#allocation4_spill] sm:$0xff] }
 0x3a1   : > { %10009 = vmatprep.mubr.bf16.mxu1 %v12585_v55 }
 0x3a5   : > { %v9451_v36 = vpop.f32.mrb[160].mxu0 }
 0x3a6   : > { %v3747_v0 = vadd.f32 %v9451_v36, %v3532_v11  ;;  %v3711_v18 = vpop.f32.mrb[161].mxu0  ;;  %v13027_v36 = vld [vmem:[#allocation9_spill] sm:$0xff] }
 0x3a7   : > { %v3745_v35 = vadd.f32 %v3711_v18, %v3530_v58  ;;  %v9452_v4 = vpop.f32.mrb[162].mxu0  ;;  %v10948_v58 = vld [vmem:[%s12942_s2 + $0x578] sm:$0xff]  }
 0x3a8   : > { %v3714_v32 = vpop.f32.mrb[163].mxu0  ;;  %10010 = vmatmul.mubr.bf16.gmra.mrb[56].mxu1 %v12579_v9  ;;  %v10943_v4 = vld [vmem:[%s12942_s2 + $0x550] sm:$0xff]  }
 0x3a9   : > { %v3746_v40 = vadd.f32 %v3714_v32, %v3531_v10  ;;  %10029 = vmatprep.mubr.bf16.mxu1 %v11377_v28  ;;  %v10944_v28 = vld [vmem:[%s12942_s2 + $0x558] sm:$0xff]   ;;  %v10945_v32 = vld [vmem:[%s12942_s2 + $0x560] sm:$0xff]  }
 0x3b0   : > { %10030 = vmatmul.mubr.bf16.vlgmr.msra.gmra.mrb[0].mxu1 %v13024_v43 }
 0x3b1   : > { %10054 = vmatpush3.bf16.msra.mxu1 %v10941_v60  ;;  %10033 = vmatprep.mubr.bf16.mxu1 %v13025_v13  ;;  %v13026_v60 = vld [vmem:[#allocation7_spill] sm:$0xff] }
 0x3b2   : > { %10055 = vmatprep.subr.bf16.mxu1 %v10942_v19 }
 0x3b5   : > { %10056 = vmatpush3.bf16.msra.mxu1 %v10942_v19 }
 0x3b6   : > { %10057 = vmatprep.subr.bf16.mxu1 %v10943_v4 }
 0x3b8   : > { %10034 = vmatmul.mubr.bf16.gmra.mrb[4].mxu1 %v11535_v44  ;;  %v10946_v44 = vld [vmem:[%s12942_s2 + $0x568] sm:$0xff]  }
 0x3b9   : > { %10037 = vmatprep.mubr.bf16.mxu1 %v11567_v62  ;;  %10058 = vmatpush3.bf16.msra.mxu1 %v10943_v4  ;;  %v10947_v62 = vld [vmem:[%s12942_s2 + $0x570] sm:$0xff]  }
 0x3ba   : > { %10059 = vmatprep.subr.bf16.mxu1 %v10944_v28 }
 0x3bb   : > { %v12606_v18 = vpop.f32.mrb[40].mxu1 }
 0x3bc   : > { %v12608_v43 = vpop.f32.mrb[41].mxu1 }
 0x3bd   : > { %v9852_v10 = vpop.f32.mrb[42].mxu1  ;;  %10060 = vmatpush3.bf16.msra.mxu1 %v10944_v28 }
 0x3be   : > { %v12610_v11 = vpop.f32.mrb[43].mxu1  ;;  %10061 = vmatprep.subr.bf16.mxu1 %v10945_v32 }
 0x3c0   : > { %10038 = vmatmul.mubr.bf16.gmra.mrb[8].mxu1 %v11599_v51  ;;  %v10949_v51 = vld [vmem:[%s12942_s2 + $0x580] sm:$0xff]  }
 0x3c1   : > { %10041 = vmatprep.mubr.bf16.mxu1 %v11631_v41  ;;  %10062 = vmatpush3.bf16.msra.mxu1 %v10945_v32  ;;  %v13028_v41 = vld [vmem:[#allocation11_spill] sm:$0xff] }
 0x3c2   : > { %10063 = vmatprep.subr.bf16.mxu1 %v10946_v44 }
 0x3c5   : > { %10064 = vmatpush3.bf16.msra.mxu1 %v10946_v44 }
 0x3c6   : > { %10065 = vmatprep.subr.bf16.mxu1 %v10947_v62 }
 0x3c8   : > { %10042 = vmatmul.mubr.bf16.gmra.mrb[12].mxu1 %v13026_v60 }
 0x3c9   : > { %10045 = vmatprep.mubr.bf16.mxu1 %v13027_v36  ;;  %10066 = vmatpush3.bf16.msra.mxu1 %v10947_v62  ;;  %v10950_v62 = vld [vmem:[%s12942_s2 + $0x588] sm:$0xff]  }
 0x3ca   : > { %10067 = vmatprep.subr.bf16.mxu1 %v10948_v58 }
 0x3cd   : > { %10068 = vmatpush3.bf16.msra.mxu1 %v10948_v58  ;;  %v10956_v58 = vld [vmem:[%s12942_s2 + $0x5b8] sm:$0xff]  }
 0x3ce   : > { %10093 = vmatprep.subr.bf16.mxu1 %v10949_v51 }
 0x3d0   : > { %10046 = vmatmul.mubr.bf16.gmra.mrb[16].mxu1 %v13028_v41 }
 0x3d1   : > { %10049 = vmatprep.mubr.bf16.mxu1 %v13023_v26 }
 0x3d5   : > { %v9491_v19 = vpop.f32.mrb[164].mxu0 }
 0x3d6   : > { %v3972_v13 = vadd.f32 %v9491_v19, %v3747_v0  ;;  %v3936_v4 = vpop.f32.mrb[165].mxu0  ;;  %v10958_v19 = vld [vmem:[%s12942_s2 + $0x5c8] sm:$0xff]  }
 0x3d7   : > { %v3970_v28 = vadd.f32 %v3936_v4, %v3745_v35  ;;  %v9492_v32 = vpop.f32.mrb[166].mxu0  ;;  %v10951_v35 = vld [vmem:[%s12942_s2 + $0x590] sm:$0xff]  }
 0x3d8   : > { %v3939_v10 = vpop.f32.mrb[167].mxu0  ;;  %10050 = vmatmul.mubr.bf16.gmra.mrb[60].mxu1 %v13023_v26 }
 0x3d9   : > { %v3971_v44 = vadd.f32 %v3939_v10, %v3746_v40  ;;  %10069 = vmatprep.mubr.bf16.mxu1 %v11482_v17  ;;  %v10952_v17 = vld [vmem:[%s12942_s2 + $0x598] sm:$0xff]  }
 0x3e0   : > { %10070 = vmatmul.mubr.bf16.vlgmr.msra.gmra.mrb[0].mxu1 %v11522_v37  ;;  %v10953_v37 = vld [vmem:[%s12942_s2 + $0x5a0] sm:$0xff]  }
 0x3e1   : > { %10094 = vmatpush3.bf16.msra.mxu1 %v10949_v51  ;;  %10073 = vmatprep.mubr.bf16.mxu1 %v11554_v29 }
 0x3e2   : > { %10095 = vmatprep.subr.bf16.mxu1 %v10950_v62 }
 0x3e5   : > { %10096 = vmatpush3.bf16.msra.mxu1 %v10950_v62 }
 0x3e6   : > { %10097 = vmatprep.subr.bf16.mxu1 %v10951_v35 }
 0x3e8   : > { %10074 = vmatmul.mubr.bf16.gmra.mrb[4].mxu1 %v11586_v61  ;;  %v10954_v61 = vld [vmem:[%s12942_s2 + $0x5a8] sm:$0xff]  }
 0x3e9   : > { %10077 = vmatprep.mubr.bf16.mxu1 %v11618_v22  ;;  %10098 = vmatpush3.bf16.msra.mxu1 %v10951_v35  ;;  %v10955_v22 = vld [vmem:[%s12942_s2 + $0x5b0] sm:$0xff]  }
 0x3ea   : > { %10099 = vmatprep.subr.bf16.mxu1 %v10952_v17 }
 0x3eb   : > { %v12648_v29 = vpop.f32.mrb[44].mxu1 }
 0x3ec   : > { %v12650_v0 = vpop.f32.mrb[45].mxu1 }
 0x3ed   : > { %v9892_v40 = vpop.f32.mrb[46].mxu1  ;;  %10100 = vmatpush3.bf16.msra.mxu1 %v10952_v17 }
 0x3ee   : > { %v12652_v26 = vpop.f32.mrb[47].mxu1  ;;  %10101 = vmatprep.subr.bf16.mxu1 %v10953_v37 }
 0x3f0   : > { %10078 = vmatmul.mubr.bf16.gmra.mrb[8].mxu1 %v11650_v23  ;;  %v10957_v23 = vld [vmem:[%s12942_s2 + $0x5c0] sm:$0xff]  }
 0x3f1   : > { %10081 = vmatprep.mubr.bf16.mxu1 %v11681_v33  ;;  %10102 = vmatpush3.bf16.msra.mxu1 %v10953_v37 }
 0x3f2   : > { %10103 = vmatprep.subr.bf16.mxu1 %v10954_v61 }
 0x3f5   : > { %10104 = vmatpush3.bf16.msra.mxu1 %v10954_v61 }
 0x3f6   : > { %10105 = vmatprep.subr.bf16.mxu1 %v10955_v22 }
 0x3f8   : > { %10082 = vmatmul.mubr.bf16.gmra.mrb[12].mxu1 %v11827_v42 }
 0x3f9   : > { %10085 = vmatprep.mubr.bf16.mxu1 %v11832_v5  ;;  %10106 = vmatpush3.bf16.msra.mxu1 %v10955_v22  ;;  %v10968_v22 = vld [vmem:[%s12942_s2 + $0x618] sm:$0xff]  }
 0x3fa   : > { %10107 = vmatprep.subr.bf16.mxu1 %v10956_v58 }
 0x3fd   : > { %10108 = vmatpush3.bf16.msra.mxu1 %v10956_v58 }
 0x3fe   : > { %10133 = vmatprep.subr.bf16.mxu1 %v10957_v23 }
 0x400   : > { %10086 = vmatmul.mubr.bf16.gmra.mrb[16].mxu1 %v12341_v2  ;;  %v10959_v2 = vld [vmem:[%s12942_s2 + $0x5d0] sm:$0xff]  }
 0x401   : > { %10089 = vmatprep.mubr.bf16.mxu1 %v12335_v6 }
 0x405   : > { %v9531_v33 = vpop.f32.mrb[168].mxu0 }
 0x406   : > { %v4192_v60 = vadd.f32 %v9531_v33, %v3972_v13  ;;  %v4156_v36 = vpop.f32.mrb[169].mxu0 }
 0x407   : > { %v4190_v51 = vadd.f32 %v4156_v36, %v3970_v28  ;;  %v9532_v41 = vpop.f32.mrb[170].mxu0  ;;  %v10964_v28 = vld [vmem:[%s12942_s2 + $0x5f8] sm:$0xff]  }
 0x408   : > { %v4159_v42 = vpop.f32.mrb[171].mxu0  ;;  %10090 = vmatmul.mubr.bf16.gmra.mrb[64].mxu1 %v12335_v6 }
 0x409   : > { %v4191_v5 = vadd.f32 %v4159_v42, %v3971_v44  ;;  %10109 = vmatprep.mubr.bf16.mxu1 %v11843_v45  ;;  %v10960_v45 = vld [vmem:[%s12942_s2 + $0x5d8] sm:$0xff]  }
 0x410   : > { %10110 = vmatmul.mubr.bf16.vlgmr.msra.gmra.mrb[0].mxu1 %v11860_v38  ;;  %v10961_v38 = vld [vmem:[%s12942_s2 + $0x5e0] sm:$0xff]  }
 0x411   : > { %10134 = vmatpush3.bf16.msra.mxu1 %v10957_v23  ;;  %10113 = vmatprep.mubr.bf16.mxu1 %v11865_v3 }
 0x412   : > { %10135 = vmatprep.subr.bf16.mxu1 %v10958_v19 }
 0x415   : > { %10136 = vmatpush3.bf16.msra.mxu1 %v10958_v19 }
 0x416   : > { %10137 = vmatprep.subr.bf16.mxu1 %v10959_v2 }
 0x418   : > { %10114 = vmatmul.mubr.bf16.gmra.mrb[4].mxu1 %v11881_v48  ;;  %v10962_v48 = vld [vmem:[%s12942_s2 + $0x5e8] sm:$0xff]  }
 0x419   : > { %10117 = vmatprep.mubr.bf16.mxu1 %v11886_v27  ;;  %10138 = vmatpush3.bf16.msra.mxu1 %v10959_v2  ;;  %v10963_v27 = vld [vmem:[%s12942_s2 + $0x5f0] sm:$0xff]  }
 0x41a   : > { %10139 = vmatprep.subr.bf16.mxu1 %v10960_v45 }
 0x41b   : > { %v12690_v3 = vpop.f32.mrb[48].mxu1 }
 0x41c   : > { %v12692_v6 = vpop.f32.mrb[49].mxu1 }
 0x41d   : > { %v9932_v13 = vpop.f32.mrb[50].mxu1  ;;  %10140 = vmatpush3.bf16.msra.mxu1 %v10960_v45  ;;  %v10972_v45 = vld [vmem:[%s12942_s2 + $0x638] sm:$0xff]  }
 0x41e   : > { %v12694_v4 = vpop.f32.mrb[51].mxu1  ;;  %10141 = vmatprep.subr.bf16.mxu1 %v10961_v38 }
 0x420   : > { %10118 = vmatmul.mubr.bf16.gmra.mrb[8].mxu1 %v11902_v53  ;;  %v10965_v53 = vld [vmem:[%s12942_s2 + $0x600] sm:$0xff]  }
 0x421   : > { %10121 = vmatprep.mubr.bf16.mxu1 %v11907_v12  ;;  %10142 = vmatpush3.bf16.msra.mxu1 %v10961_v38 }
 0x422   : > { %10143 = vmatprep.subr.bf16.mxu1 %v10962_v48 }
 0x425   : > { %10144 = vmatpush3.bf16.msra.mxu1 %v10962_v48 }
 0x426   : > { %10145 = vmatprep.subr.bf16.mxu1 %v10963_v27 }
 0x428   : > { %10122 = vmatmul.mubr.bf16.gmra.mrb[12].mxu1 %v11946_v25 }
 0x429   : > { %10125 = vmatprep.mubr.bf16.mxu1 %v11952_v57  ;;  %10146 = vmatpush3.bf16.msra.mxu1 %v10963_v27 }
 0x42a   : > { %10147 = vmatprep.subr.bf16.mxu1 %v10964_v28 }
 0x42d   : > { %10148 = vmatpush3.bf16.msra.mxu1 %v10964_v28 }
 0x42e   : > { %10173 = vmatprep.subr.bf16.mxu1 %v10965_v53 }
 0x430   : > { %10126 = vmatmul.mubr.bf16.gmra.mrb[16].mxu1 %v12436_v49  ;;  %v10966_v49 = vld [vmem:[%s12942_s2 + $0x608] sm:$0xff]  }
 0x431   : > { %10129 = vmatprep.mubr.bf16.mxu1 %v12427_v54 }
 0x435   : > { %v9571_v12 = vpop.f32.mrb[172].mxu0 }
 0x436   : > { %v12714_v32 = vadd.f32 %v9571_v12, %v4192_v60  ;;  %v4377_v10 = vpop.f32.mrb[173].mxu0 }
 0x437   : > { %v12716_v44 = vadd.f32 %v4377_v10, %v4190_v51  ;;  %v9572_v25 = vpop.f32.mrb[174].mxu0  ;;  %v13029_v10 = vld [vmem:[#allocation24_spill] sm:$0xff] }
 0x438   : > { %v4380_v57 = vpop.f32.mrb[175].mxu0  ;;  %10130 = vmatmul.mubr.bf16.gmra.mrb[68].mxu1 %v12427_v54 }
 0x439   : > { %v12719_v62 = vadd.f32 %v4380_v57, %v4191_v5  ;;  %10149 = vmatprep.mubr.bf16.mxu1 %v11510_v20  ;;  %v10967_v20 = vld [vmem:[%s12942_s2 + $0x610] sm:$0xff]  }
 0x43a   : > { %v10971_v5 = vld [vmem:[%s12942_s2 + $0x630] sm:$0xff]  }
 0x43d   : > { %v12722_v35 = vpop.f32.mrb[120].mxu0 }
 0x43e   : > { %v12724_v17 = vpop.f32.mrb[121].mxu0 }
 0x43f   : > { %v12729_v37 = vpop.f32.mrb[122].mxu0 }
 0x440   : > { %v12731_v40 = vpop.f32.mrb[123].mxu0  ;;  %10150 = vmatmul.mubr.bf16.vlgmr.msra.gmra.mrb[0].mxu1 %v11542_v56 }
 0x441   : > { %10174 = vmatpush3.bf16.msra.mxu1 %v10965_v53  ;;  %10153 = vmatprep.mubr.bf16.mxu1 %v11574_v31  ;;  %v10969_v31 = vld [vmem:[%s12942_s2 + $0x620] sm:$0xff]  }
 0x442   : > { %10175 = vmatprep.subr.bf16.mxu1 %v10966_v49 }
 0x445   : > { %v12738_v54 = vpop.f32.mrb[124].mxu0  ;;  %10176 = vmatpush3.bf16.msra.mxu1 %v10966_v49  ;;  %v13030_v49 = vld [vmem:[#allocation25_spill] sm:$0xff] }
 0x446   : > { %v12740_v61 = vpop.f32.mrb[125].mxu0  ;;  %10177 = vmatprep.subr.bf16.mxu1 %v10967_v20 }
 0x447   : > { %v12745_v58 = vpop.f32.mrb[126].mxu0 }
 0x448   : > { %v12747_v56 = vpop.f32.mrb[127].mxu0  ;;  %10154 = vmatmul.mubr.bf16.gmra.mrb[4].mxu1 %v11606_v1  ;;  %v10970_v1 = vld [vmem:[%s12942_s2 + $0x628] sm:$0xff]  }
 0x449   : > { %10157 = vmatprep.mubr.bf16.mxu1 %v12987_v21  ;;  %10178 = vmatpush3.bf16.msra.mxu1 %v10967_v20 }
 0x44a   : > { %10179 = vmatprep.subr.bf16.mxu1 %v10968_v22 }
 0x44b   : > { %v12754_v23 = vpop.f32.mrb[52].mxu1 }
 0x44c   : > { %v12756_v33 = vpop.f32.mrb[53].mxu1 }
 0x44d   : > { %v12758_v60 = vpop.f32.mrb[128].mxu0  ;;  %v9972_v36 = vpop.f32.mrb[54].mxu1  ;;  %10180 = vmatpush3.bf16.msra.mxu1 %v10968_v22 }
 0x44e   : > { %v12760_v51 = vpop.f32.mrb[129].mxu0  ;;  %v12762_v41 = vpop.f32.mrb[55].mxu1  ;;  %10181 = vmatprep.subr.bf16.mxu1 %v10969_v31 }
 0x44f   : > { %v12767_v21 = vpop.f32.mrb[130].mxu0 }
 0x450   : > { %v12769_v42 = vpop.f32.mrb[131].mxu0  ;;  %10158 = vmatmul.mubr.bf16.gmra.mrb[8].mxu1 %v12988_v52 }
 0x451   : > { %10161 = vmatprep.mubr.bf16.mxu1 %v11701_v47  ;;  %10182 = vmatpush3.bf16.msra.mxu1 %v10969_v31 }
 0x452   : > { %10183 = vmatprep.subr.bf16.mxu1 %v10970_v1 }
 0x455   : > { %v12776_v19 = vpop.f32.mrb[132].mxu0  ;;  %10184 = vmatpush3.bf16.msra.mxu1 %v10970_v1 }
 0x456   : > { %v12778_v2 = vpop.f32.mrb[133].mxu0  ;;  %10185 = vmatprep.subr.bf16.mxu1 %v10971_v5 }
 0x457   : > { %v12783_v38 = vpop.f32.mrb[134].mxu0 }
 0x458   : > { %v12785_v52 = vpop.f32.mrb[135].mxu0  ;;  %10162 = vmatmul.mubr.bf16.gmra.mrb[12].mxu1 %v13008_v16 }
 0x459   : > { %10165 = vmatprep.mubr.bf16.mxu1 %v13017_v50  ;;  %10186 = vmatpush3.bf16.msra.mxu1 %v10971_v5  ;;  %v13032_v5 = vld [vmem:[#allocation3_spill] sm:$0xff] }
 0x45a   : > { %10187 = vmatprep.subr.bf16.mxu1 %v10972_v45 }
 0x45d   : > { %v12789_v47 = vpop.f32.mrb[136].mxu0  ;;  %10188 = vmatpush3.bf16.msra.mxu1 %v10972_v45 }
 0x45e   : > { %v12791_v13 = vpop.f32.mrb[137].mxu0 }
 0x45f   : > { %v12793_v48 = vpop.f32.mrb[138].mxu0 }
 0x460   : > { %v12795_v27 = vpop.f32.mrb[139].mxu0  ;;  %10166 = vmatmul.mubr.bf16.gmra.mrb[16].mxu1 %v12523_v14 }
 0x461   : > { %10169 = vmatprep.mubr.bf16.mxu1 %v12517_v63 }
 0x465   : > { %v9611_v28 = vpop.f32.mrb[176].mxu0 }
 0x466   : > { %v4632_v16 = vadd.f32 %v9611_v28, %v12714_v32  ;;  %v4596_v53 = vpop.f32.mrb[177].mxu0  ;;  %v13031_v32 = vld [vmem:[#allocation26_spill] sm:$0xff]  ;;  %v13033_v28 = vld [vmem:[#allocation13_spill] sm:$0xff] }
 0x467   : > { %v4630_v50 = vadd.f32 %v4596_v53, %v12716_v44  ;;  %v9612_v12 = vpop.f32.mrb[178].mxu0 }
 0x468   : > { %v4847_v25 = vadd.f32 %v13029_v10, %v4632_v16  ;;  %v4599_v57 = vpop.f32.mrb[179].mxu0  ;;  %10170 = vmatmul.mubr.bf16.gmra.mrb[72].mxu1 %v12517_v63  ;;  %v13034_v16 = vld [vmem:[#allocation28_spill] sm:$0xff]  ;;  %v13037_v10 = vld [vmem:[#allocation10_spill] sm:$0xff] }
 0x469   : > { %v4845_v20 = vadd.f32 %v13030_v49, %v4630_v50  ;;  %v4631_v22 = vadd.f32 %v4599_v57, %v12719_v62  ;;  %10189 = vmatprep.mubr.bf16.mxu1 %v13019_v30  ;;  %v13035_v50 = vld [vmem:[#allocation27_spill] sm:$0xff]  ;;  %v13036_v30 = vld [vmem:[#allocation29_spill] sm:$0xff] }
 0x46a   : > { %v5072_v14 = vadd.f32 %v12302_v59, %v4847_v25 }
 0x46b   : > { %v5070_v31 = vadd.f32 %v12304_v15, %v4845_v20  ;;  %v4846_v36 = vadd.f32 %v13031_v32, %v4631_v22  ;;  %v13038_v22 = vld [vmem:[#allocation17_spill] sm:$0xff] }
 0x46c   : > { %v5292_v44 = vadd.f32 %v12397_v34, %v5072_v14 }
 0x46d   : > { %v5290_v1 = vadd.f32 %v12399_v8, %v5070_v31  ;;  %v5071_v45 = vadd.f32 %v13032_v5, %v4846_v36 }
 0x46e   : > { %v5513_v63 = vadd.f32 %v13033_v28, %v5292_v44  ;;  %v13041_v44 = vld [vmem:[#allocation20_spill] sm:$0xff] }
 0x46f   : > { %v5511_v53 = vadd.f32 %v13034_v16, %v5290_v1  ;;  %v5291_v62 = vadd.f32 %v13035_v50, %v5071_v45  ;;  %v13043_v1 = vld [vmem:[#allocation23_spill] sm:$0xff] }
 0x470   : > { %10190 = vmatmul.mubr.bf16.vlgmr.msra.gmra.mrb[0].mxu1 %v12070_v46  ;;  %v5732_v59 = vadd.f32 %v12555_v39, %v5513_v63 }
 0x471   : > { %v5512_v15 = vadd.f32 %v13036_v30, %v5291_v62  ;;  %10193 = vmatprep.mubr.bf16.mxu1 %v12075_v7  ;;  %v5730_v34 = vadd.f32 %v12557_v24, %v5511_v53 }
 0x472   : > { %v5947_v8 = vadd.f32 %v12606_v18, %v5732_v59  ;;  %v13039_v18 = vld [vmem:[#allocation18_spill] sm:$0xff] }
 0x473   : > { %v5945_v12 = vadd.f32 %v12608_v43, %v5730_v34  ;;  %v5731_v25 = vadd.f32 %v13037_v10, %v5512_v15 }
 0x474   : > { %v6172_v57 = vadd.f32 %v12648_v29, %v5947_v8 }
 0x475   : > { %v6170_v49 = vadd.f32 %v12650_v0, %v5945_v12  ;;  %v5946_v46 = vadd.f32 %v12610_v11, %v5731_v25 }
 0x476   : > { %v6392_v39 = vadd.f32 %v12690_v3, %v6172_v57 }
 0x477   : > { %v6390_v20 = vadd.f32 %v12692_v6, %v6170_v49  ;;  %v6171_v7 = vadd.f32 %v12652_v26, %v5946_v46  ;;  %v13040_v26 = vld [vmem:[#allocation19_spill] sm:$0xff] }
 0x478   : > { %10194 = vmatmul.mubr.bf16.gmra.mrb[4].mxu1 %v13038_v22  ;;  %v6613_v24 = vadd.f32 %v12754_v23, %v6392_v39  ;;  %v13042_v23 = vld [vmem:[#allocation22_spill] sm:$0xff] }
 0x479   : > { %10197 = vmatprep.mubr.bf16.mxu1 %v13039_v18  ;;  %v6611_v43 = vadd.f32 %v12756_v33, %v6390_v20  ;;  %v6391_v29 = vadd.f32 %v12694_v4, %v6171_v7  ;;  %v12851_v18 = vld [vmem:[%s12943_s3 + $0x1] ss:$0 sm:$0xff] }
 0x47b   : > { %v10011_v14 = vpop.f32.mrb[56].mxu1  ;;  %v6612_v0 = vadd.f32 %v12762_v41, %v6391_v29 }
 0x47c   : > { %v6832_v11 = vadd.f32 %v10011_v14, %v6613_v24  ;;  %v6796_v31 = vpop.f32.mrb[57].mxu1 }
 0x47d   : > { %v6830_v3 = vadd.f32 %v6796_v31, %v6611_v43  ;;  %v10012_v32 = vpop.f32.mrb[58].mxu1 }
 0x47e   : > { %v6799_v6 = vpop.f32.mrb[59].mxu1 }
 0x47f   : > { %v6831_v36 = vadd.f32 %v6799_v6, %v6612_v0 }
 0x480   : > { %10198 = vmatmul.mubr.bf16.gmra.mrb[8].mxu1 %v13040_v26 }
 0x481   : > { %10201 = vmatprep.mubr.bf16.mxu1 %v13041_v44 }
 0x488   : > { %10202 = vmatmul.mubr.bf16.gmra.mrb[12].mxu1 %v13042_v23 }
 0x489   : > { %10205 = vmatprep.mubr.bf16.mxu1 %v13043_v1 }
 0x490   : > { %10206 = vmatmul.mubr.bf16.gmra.mrb[16].mxu1 %v12585_v55 }
 0x491   : > { %10209 = vmatprep.mubr.bf16.mxu1 %v12579_v9 }
 0x498   : > { %10210 = vmatmul.mubr.bf16.gmra.mrb[76].mxu1 %v12579_v9 }
 0x4ab   : > { %v10051_v4 = vpop.f32.mrb[60].mxu1 }
 0x4ac   : > { %v7047_v33 = vadd.f32 %v10051_v4, %v6832_v11  ;;  %v7011_v41 = vpop.f32.mrb[61].mxu1 }
 0x4ad   : > { %v7045_v5 = vadd.f32 %v7011_v41, %v6830_v3  ;;  %v10052_v45 = vpop.f32.mrb[62].mxu1 }
 0x4ae   : > { %v7014_v28 = vpop.f32.mrb[63].mxu1 }
 0x4af   : > { %v7046_v63 = vadd.f32 %v7014_v28, %v6831_v36 }
 0x4db   : > { %v10091_v16 = vpop.f32.mrb[64].mxu1 }
 0x4dc   : > { %v7264_v53 = vadd.f32 %v10091_v16, %v7047_v33  ;;  %v7228_v50 = vpop.f32.mrb[65].mxu1 }
 0x4dd   : > { %v7262_v62 = vadd.f32 %v7228_v50, %v7045_v5  ;;  %v10092_v59 = vpop.f32.mrb[66].mxu1 }
 0x4de   : > { %v7231_v30 = vpop.f32.mrb[67].mxu1 }
 0x4df   : > { %v7263_v15 = vadd.f32 %v7231_v30, %v7046_v63 }
 0x50b   : > { %v10131_v34 = vpop.f32.mrb[68].mxu1 }
 0x50c   : > { %v7481_v55 = vadd.f32 %v10131_v34, %v7264_v53  ;;  %v7445_v8 = vpop.f32.mrb[69].mxu1 }
 0x50d   : > { %v7479_v12 = vadd.f32 %v7445_v8, %v7262_v62  ;;  %v10132_v10 = vpop.f32.mrb[70].mxu1 }
 0x50e   : > { %v7448_v9 = vpop.f32.mrb[71].mxu1 }
 0x50f   : > { %v7480_v25 = vadd.f32 %v7448_v9, %v7263_v15 }
 0x53b   : > { %v10171_v57 = vpop.f32.mrb[72].mxu1 }
 0x53c   : > { %v12842_v49 = vadd.f32 %v10171_v57, %v7481_v55  ;;  %v7662_v46 = vpop.f32.mrb[73].mxu1 }
 0x53d   : > { %v12844_v39 = vadd.f32 %v7662_v46, %v7479_v12  ;;  %v10172_v20 = vpop.f32.mrb[74].mxu1 }
 0x53e   : > { %v7665_v7 = vpop.f32.mrb[75].mxu1 }
 0x53f   : > { %v12846_v22 = vadd.f32 %v7665_v7, %v7480_v25 }
 0x543   : > { %v10191_v24 = vpop.f32.mrb[0].mxu1 }
 0x544   : > { %v10213_v43 = vadd.f32 %v10191_v24, %v12722_v35  ;;  %v7799_v29 = vpop.f32.mrb[1].mxu1 }
 0x545   : > { %v10214_v14 = vadd.f32 %v7799_v29, %v12724_v17  ;;  %v10192_v0 = vpop.f32.mrb[2].mxu1 }
 0x546   : > { %v7923_v11 = vadd.f32 %v10213_v43, %v12851_v18  ;;  %v10215_v31 = vadd.f32 %v10192_v0, %v12729_v37  ;;  %v7802_v3 = vpop.f32.mrb[3].mxu1 }
 0x547   : > { %v7921_v32 = vadd.f32 %v10214_v14, %v12851_v18  ;;  %v10216_v6 = vadd.f32 %v7802_v3, %v12731_v40 }
 0x548   : > { %v7946_v36 = vmax.f32 %v7923_v11, 0.0  ;;  %v7924_v26 = vadd.f32 %v10215_v31, %v12851_v18 }
 0x549   : > { %v7944_v44 = vmax.f32 %v7921_v32, 0.0  ;;  %v7922_v23 = vadd.f32 %v10216_v6, %v12851_v18 }
 0x54a   : > { %v7947_v35 = vmax.f32 %v7924_v26, 0.0  ;;  %v7991_v17 = vrot.slane %v7946_v36, 1 }
 0x54b   : > { %v7945_v1 = vmax.f32 %v7922_v23, 0.0  ;;  %v10195_v4 = vpop.f32.mrb[4].mxu1  ;;  %v7988_v37 = vrot.slane %v7944_v44, 1 }
 0x54c   : > { %v7993_v33 = vrot.slane %v7947_v35, 1  ;;  %v10217_v41 = vadd.f32 %v10195_v4, %v12738_v54  ;;  %v7815_v5 = vpop.f32.mrb[5].mxu1 }
 0x54d   : > { %v7989_v45 = vrot.slane %v7945_v1, 1  ;;  %v10218_v28 = vadd.f32 %v7815_v5, %v12740_v61  ;;  %v10196_v63 = vpop.f32.mrb[6].mxu1 }
 0x54e   : > { %v7994_v40 = vsel %vm1488_vm0, %v7991_v17, %v7993_v33  ;;  %v7927_v16 = vadd.f32 %v10217_v41, %v12851_v18  ;;  %v10219_v53 = vadd.f32 %v10196_v63, %v12745_v58  ;;  %v7818_v50 = vpop.f32.mrb[7].mxu1 }
 0x54f   : > { %v8051_v62 = vmax.f32 %v7946_v36, %v7994_v40  ;;  %v7990_v59 = vsel %vm1488_vm0, %v7988_v37, %v7989_v45  ;;  %v7992_v30 = vsel %vm1488_vm0, %v7989_v45, %v7991_v17  ;;  %v7925_v54 = vadd.f32 %v10218_v28, %v12851_v18 }
 0x550   : > { %v8049_v15 = vmax.f32 %v7944_v44, %v7990_v59  ;;  %v8050_v34 = vmax.f32 %v7945_v1, %v7992_v30  ;;  %v7950_v55 = vmax.f32 %v7927_v16, 0.0  ;;  %v7928_v61 = vadd.f32 %v10219_v53, %v12851_v18 }
 0x551   : > { %v7948_v8 = vmax.f32 %v7925_v54, 0.0  ;;  %v10220_v12 = vadd.f32 %v7818_v50, %v12747_v56 }
 0x552   : > { %v8079_v10 = vmax.f32 %v8049_v15, %v8051_v62  ;;  %v7951_v9 = vmax.f32 %v7928_v61, 0.0  ;;  %v7999_v46 = vrot.slane %v7950_v55, 1 }
 0x553   : > { %v7995_v25 = vrot.slane %v7948_v8, 1  ;;  %v7926_v58 = vadd.f32 %v10220_v12, %v12851_v18  ;;  %v10199_v57 = vpop.f32.mrb[8].mxu1 }
 0x554   : > { %8099 = vst [vmem:[#allocation2] sm:$0xff] %v8079_v10  ;;  %v8001_v20 = vrot.slane %v7951_v9, 1  ;;  %v10221_v7 = vadd.f32 %v10199_v57, %v12758_v60  ;;  %v7831_v24 = vpop.f32.mrb[9].mxu1 }
 0x555   : > { %v7996_v43 = vsel %vm1488_vm0, %v7993_v33, %v7995_v25  ;;  %v7949_v29 = vmax.f32 %v7926_v58, 0.0  ;;  %v10222_v14 = vadd.f32 %v7831_v24, %v12760_v51  ;;  %v10200_v0 = vpop.f32.mrb[10].mxu1 }
 0x556   : > { %v8002_v56 = vsel %vm1488_vm0, %v7999_v46, %v8001_v20  ;;  %v8052_v11 = vmax.f32 %v7947_v35, %v7996_v43  ;;  %v7931_v31 = vadd.f32 %v10221_v7, %v12851_v18  ;;  %v10223_v3 = vadd.f32 %v10200_v0, %v12767_v21  ;;  %v7834_v32 = vpop.f32.mrb[11].mxu1 }
 0x557   : > { %v8055_v6 = vmax.f32 %v7950_v55, %v8002_v56  ;;  %v7997_v36 = vrot.slane %v7949_v29, 1  ;;  %v7929_v26 = vadd.f32 %v10222_v14, %v12851_v18  ;;  %v10224_v60 = vadd.f32 %v7834_v32, %v12769_v42 }
 0x558   : > { %v8080_v44 = vmax.f32 %v8050_v34, %v8052_v11  ;;  %v7954_v23 = vmax.f32 %v7931_v31, 0.0  ;;  %v12881_v1 = vadd.f32 %v10223_v3, %v12851_v18 }
 0x559   : > { %v7998_v51 = vsel %vm1488_vm0, %v7995_v25, %v7997_v36  ;;  %v8000_v35 = vsel %vm1488_vm0, %v7997_v36, %v7999_v46  ;;  %v7952_v4 = vmax.f32 %v7929_v26, 0.0  ;;  %v7930_v17 = vadd.f32 %v10224_v60, %v12851_v18 }
 0x55a   : > { %v8053_v21 = vmax.f32 %v7948_v8, %v7998_v51  ;;  %v8054_v33 = vmax.f32 %v7949_v29, %v8000_v35  ;;  %8100 = vst [vmem:[#allocation2 + $0x8] sm:$0xff] %v8080_v44  ;;  %v7955_v41 = vmax.f32 %v12881_v1, 0.0  ;;  %v8007_v5 = vrot.slane %v7954_v23, 1 }
 0x55b   : > { %v8003_v37 = vrot.slane %v7952_v4, 1  ;;  %v7953_v42 = vmax.f32 %v7930_v17, 0.0  ;;  %v10203_v45 = vpop.f32.mrb[12].mxu1 }
 0x55c   : > { %v8081_v28 = vmax.f32 %v8051_v62, %v8053_v21  ;;  %v8082_v63 = vmax.f32 %v8052_v11, %v8054_v33  ;;  %v8083_v40 = vmax.f32 %v8053_v21, %v8055_v6  ;;  %v8009_v16 = vrot.slane %v7955_v41, 1  ;;  %v7847_v53 = vpop.f32.mrb[13].mxu1 }
 0x55d   : > { %v8004_v50 = vsel %vm1488_vm0, %v8001_v20, %v8003_v37  ;;  %v8005_v59 = vrot.slane %v7953_v42, 1  ;;  %v10225_v30 = vadd.f32 %v10203_v45, %v12776_v19  ;;  %v10226_v54 = vadd.f32 %v7847_v53, %v12778_v2  ;;  %v10204_v15 = vpop.f32.mrb[14].mxu1 }
 0x55e   : > { %8101 = vst [vmem:[#allocation2 + $0x10] sm:$0xff] %v8081_v28  ;;  %8102 = vst [vmem:[#allocation2 + $0x18] sm:$0xff] %v8082_v63  ;;  %v8010_v34 = vsel %vm1488_vm0, %v8007_v5, %v8009_v16  ;;  %v8056_v55 = vmax.f32 %v7951_v9, %v8004_v50  ;;  %v10227_v62 = vadd.f32 %v10204_v15, %v12783_v38  ;;  %v7850_v61 = vpop.f32.mrb[15].mxu1 }
 0x55f   : > { %8103 = vst [vmem:[#allocation2 + $0x20] sm:$0xff] %v8083_v40  ;;  %v12892_v8 = vmax.f32 %v7954_v23, %v8010_v34  ;;  %v8006_v12 = vsel %vm1488_vm0, %v8003_v37, %v8005_v59  ;;  %v8008_v10 = vsel %vm1488_vm0, %v8005_v59, %v8007_v5  ;;  %v7935_v19 = vadd.f32 %v10225_v30, %v12851_v18 }
 0x560   : > { %v8057_v25 = vmax.f32 %v7952_v4, %v8006_v12  ;;  %v8058_v2 = vmax.f32 %v7953_v42, %v8008_v10  ;;  %v8084_v58 = vmax.f32 %v8054_v33, %v8056_v55  ;;  %v7933_v57 = vadd.f32 %v10226_v54, %v12851_v18 }
 0x561   : > { %v7958_v46 = vmax.f32 %v7935_v19, 0.0  ;;  %v7936_v9 = vadd.f32 %v10227_v62, %v12851_v18  ;;  %v10228_v38 = vadd.f32 %v7850_v61, %v12785_v52 }
 0x562   : > { %v8087_v20 = vmax.f32 %v8057_v25, %v12892_v8  ;;  %8104 = vst [vmem:[#allocation2 + $0x28] sm:$0xff] %v8084_v58  ;;  %v7956_v7 = vmax.f32 %v7933_v57, 0.0 }
 0x563   : > { %v7959_v24 = vmax.f32 %v7936_v9, 0.0  ;;  %v7934_v43 = vadd.f32 %v10228_v38, %v12851_v18  ;;  %v10207_v29 = vpop.f32.mrb[16].mxu1  ;;  %v8015_v11 = vrot.slane %v7958_v46, 1 }
 0x564   : > { %8107 = vst [vmem:[#allocation2 + $0x40] sm:$0xff] %v8087_v20  ;;  %v8011_v14 = vrot.slane %v7956_v7, 1  ;;  %v10229_v0 = vadd.f32 %v10207_v29, %v12789_v47  ;;  %v7863_v56 = vpop.f32.mrb[17].mxu1 }
 0x565   : > { %v8017_v31 = vrot.slane %v7959_v24, 1  ;;  %v7957_v3 = vmax.f32 %v7934_v43, 0.0  ;;  %v10230_v32 = vadd.f32 %v7863_v56, %v12791_v13  ;;  %v10208_v52 = vpop.f32.mrb[18].mxu1 }
 0x566   : > { %v8012_v6 = vsel %vm1488_vm0, %v8009_v16, %v8011_v14  ;;  %v7939_v36 = vadd.f32 %v10229_v0, %v12851_v18  ;;  %v10231_v26 = vadd.f32 %v10208_v52, %v12793_v48  ;;  %v7866_v60 = vpop.f32.mrb[19].mxu1  ;;  %v8119_v48 = vld [vmem:[#allocation2] ss:$2 sm:$0xff] }
 0x567   : > { %v8018_v44 = vsel %vm1488_vm0, %v8015_v11, %v8017_v31  ;;  %v8013_v23 = vrot.slane %v7957_v3, 1  ;;  %v8060_v1 = vmax.f32 %v7955_v41, %v8012_v6  ;;  %v7937_v47 = vadd.f32 %v10230_v32, %v12851_v18 }
 0x568   : > { %v8063_v51 = vmax.f32 %v7958_v46, %v8018_v44  ;;  %v7962_v35 = vmax.f32 %v7939_v36, 0.0  ;;  %v7940_v4 = vadd.f32 %v10231_v26, %v12851_v18  ;;  %v10232_v13 = vadd.f32 %v7866_v60, %v12795_v27 }
 0x569   : > { %v8121_v17 = vld [vmem:[#allocation2 + $0x20] ss:$2 sm:$0xff]  ;;  %v8014_v21 = vsel %vm1488_vm0, %v8011_v14, %v8013_v23  ;;  %v8016_v33 = vsel %vm1488_vm0, %v8013_v23, %v8015_v11  ;;  %v8088_v41 = vmax.f32 %v8058_v2, %v8060_v1  ;;  %v7960_v5 = vmax.f32 %v7937_v47, 0.0 }
 0x56a   : > { %v8501_v37 = vpack.c.bf16 %v8121_v17, %v8119_v48  ;;  %v8061_v42 = vmax.f32 %v7956_v7, %v8014_v21  ;;  %v8062_v45 = vmax.f32 %v7957_v3, %v8016_v33  ;;  %v8023_v28 = vrot.slane %v7962_v35, 1 }
 0x56b   : > { %8108 = vst [vmem:[#allocation2 + $0x48] sm:$0xff] %v8088_v41  ;;  %v8019_v27 = vrot.slane %v7960_v5, 1  ;;  %v7963_v63 = vmax.f32 %v7940_v4, 0.0  ;;  %v7938_v40 = vadd.f32 %v10232_v13, %v12851_v18  ;;  %v10211_v16 = vpop.f32.mrb[76].mxu1 }
 0x56c   : > { %8502 = vst [vmem:[%s12915_s20] sm:$0xff] %v8501_v37   ;;  %v8089_v53 = vmax.f32 %v12892_v8, %v8061_v42  ;;  %v8090_v50 = vmax.f32 %v8060_v1, %v8062_v45  ;;  %v8091_v59 = vmax.f32 %v8061_v42, %v8063_v51  ;;  %v7915_v30 = vadd.f32 %v10211_v16, %v12842_v49  ;;  %v7879_v54 = vpop.f32.mrb[77].mxu1 }
 0x56d   : > { %v8020_v15 = vsel %vm1488_vm0, %v8017_v31, %v8019_v27  ;;  %v8025_v34 = vrot.slane %v7963_v63, 1  ;;  %v7961_v55 = vmax.f32 %v7938_v40, 0.0  ;;  %v7913_v62 = vadd.f32 %v7879_v54, %v12844_v39  ;;  %v10212_v61 = vpop.f32.mrb[78].mxu1 }
 0x56e   : > { %8109 = vst [vmem:[#allocation2 + $0x50] sm:$0xff] %v8089_v53  ;;  %8110 = vst [vmem:[#allocation2 + $0x58] sm:$0xff] %v8090_v50  ;;  %v8064_v12 = vmax.f32 %v7959_v24, %v8020_v15  ;;  %v7943_v10 = vadd.f32 %v12851_v18, %v7915_v30  ;;  %v7882_v19 = vpop.f32.mrb[79].mxu1 }
 0x56f   : > { %8111 = vst [vmem:[#allocation2 + $0x60] sm:$0xff] %v8091_v59  ;;  %v8026_v8 = vsel %vm1488_vm0, %v8023_v28, %v8025_v34  ;;  %v8021_v25 = vrot.slane %v7961_v55, 1  ;;  %v7941_v49 = vadd.f32 %v12851_v18, %v7913_v62  ;;  %v7914_v2 = vadd.f32 %v7882_v19, %v12846_v22 }
 0x570   : > { %v8067_v58 = vmax.f32 %v7962_v35, %v8026_v8  ;;  %v8092_v57 = vmax.f32 %v8062_v45, %v8064_v12  ;;  %v7966_v46 = vmax.f32 %v7943_v10, 0.0 }
 0x571   : > { %v8022_v39 = vsel %vm1488_vm0, %v8019_v27, %v8021_v25  ;;  %v8024_v9 = vsel %vm1488_vm0, %v8021_v25, %v8023_v28  ;;  %v7964_v38 = vmax.f32 %v7941_v49, 0.0  ;;  %v7942_v20 = vadd.f32 %v12851_v18, %v7914_v2 }
 0x572   : > { %v8065_v7 = vmax.f32 %v7960_v5, %v8022_v39  ;;  %v8066_v24 = vmax.f32 %v7961_v55, %v8024_v9  ;;  %8112 = vst [vmem:[#allocation2 + $0x68] sm:$0xff] %v8092_v57  ;;  %v8073_v0 = vrot.slane %v7966_v46, 1  ;;  %v8123_v6 = vld [vmem:[#allocation2 + $0x40] ss:$2 sm:$0xff] }
 0x573   : > { %v8027_v43 = vrot.slane %v7964_v38, 1  ;;  %v7965_v29 = vmax.f32 %v7942_v20, 0.0 }
 0x574   : > { %v8095_v14 = vmax.f32 %v8065_v7, %v8067_v58 }
 0x575   : > { %v8028_v22 = vsel %vm1488_vm0, %v8025_v34, %v8027_v43  ;;  %v8071_v56 = vrot.slane %v7965_v29, 1 }
 0x576   : > { %8115 = vst [vmem:[#allocation2 + $0x80] sm:$0xff] %v8095_v14  ;;  %v8068_v11 = vmax.f32 %v7963_v63, %v8028_v22 }
 0x577   : > { %v8072_v31 = vsel %vm1488_vm0, %v8027_v43, %v8071_v56  ;;  %v8074_v3 = vsel %vm1488_vm0, %v8071_v56, %v8073_v0 }
 0x578   : > { %v8077_v32 = vmax.f32 %v7964_v38, %v8072_v31  ;;  %v8078_v18 = vmax.f32 %v7965_v29, %v8074_v3  ;;  %v8096_v52 = vmax.f32 %v8066_v24, %v8068_v11 }
 0x579   : > { %v8125_v36 = vld [vmem:[#allocation2 + $0x60] ss:$2 sm:$0xff] }
 0x57a   : > { %v8506_v26 = vpack.c.bf16 %v8125_v36, %v8123_v6  ;;  %v8097_v60 = vmax.f32 %v8067_v58, %v8077_v32  ;;  %v8098_v44 = vmax.f32 %v8068_v11, %v8078_v18  ;;  %8116 = vst [vmem:[#allocation2 + $0x88] sm:$0xff] %v8096_v52 }
 0x57c   : > { %8508 = vst [vmem:[%s12915_s20 + $0x8] sm:$0xff] %v8506_v26   ;;  %8117 = vst [vmem:[#allocation2 + $0x90] sm:$0xff] %v8097_v60 }
 0x57d   : > { %8118 = vst [vmem:[#allocation2 + $0x98] sm:$0xff] %v8098_v44 }
 0x581   : > { %v8127_v23 = vld [vmem:[#allocation2 + $0x80] ss:$2 sm:$0xff] }
 0x582   : > { %v8497_v1 = vpack.c.bf16 %v8127_v23, %v8127_v23 }
 0x584   : > { %8153 = vst [vmem:[%s12915_s20 + $0x10] sm:$0xf] %v8497_v1 }
 0x585 PF: > { %s14_s15 = sadd.s32 1, %s10983_s15  }
 0x586   : > { %p11_p4 = scmp.ge.s32.totalorder %s14_s15, 4  }
 0x588   :  { %13 = sbr.rel (!%p11_p4) target bundleno = 1 (0x1), region = 97 }

// kernel: mylenet_forward.3
= control target key start
LH: loop header
LB: loop body
LE: loop exit
PB: predicated region body
PF: predicated region fallthrough
CT: control target
= control target key end

     0   :  { %v681_v28 = vlaneseq  ;;  %v5125_v36 = vmov 1966171168   ;;  %s6284_s0 = inlined_call_operand.vmem [shape: bf16[2,5120], index: 0, kind: input, shape index: {}]   ;;  %s6285_s1 = inlined_call_operand.vmem [shape: bf16[5120,128], index: 1, kind: input, shape index: {}]   ;;  %s6286_s2 = inlined_call_operand.vmem [shape: bf16[128,128], index: 2, kind: input, shape index: {}]   ;;  %s6287_s3 = inlined_call_operand.vmem [shape: bf16[128,128], index: 3, kind: input, shape index: {}]   ;;  %s6288_s4 = inlined_call_operand.vmem [shape: f32[8,128], index: 4, kind: input, shape index: {}]   ;;  %s6289_s5 = inlined_call_operand.hbm [shape: f32[2,128], index: 5, kind: output, shape index: {}]  }
   0x1   :  { %v4760_v0 = vld [vmem:[%s6285_s1 + $0x40] sm:$0xff]   ;;  %v4764_v4 = vld [vmem:[%s6285_s1 + $0x48] sm:$0xff]   ;;  %v4768_v8 = vld [vmem:[%s6285_s1 + $0x50] sm:$0xff]   ;;  %v679_v37 = vunpack.c.l.s4 %v5125_v36 }
   0x2   :  { %v4761_v1 = vld [vmem:[%s6285_s1 + $0xc0] sm:$0xff]   ;;  %4258 = vmatprep.subr.bf16.mxu0 %v4760_v0  ;;  %v4765_v5 = vld [vmem:[%s6285_s1 + $0xc8] sm:$0xff]   ;;  %v4769_v9 = vld [vmem:[%s6285_s1 + $0xd0] sm:$0xff]   ;;  %v682_v33 = vshrl.u32 %v681_v28, 7 }
   0x3   :  { %v4762_v2 = vld [vmem:[%s6285_s1] sm:$0xff]   ;;  %4280 = vmatprep.subr.bf16.mxu1 %v4761_v1  ;;  %v4766_v6 = vld [vmem:[%s6285_s1 + $0x8] sm:$0xff]   ;;  %v4770_v10 = vld [vmem:[%s6285_s1 + $0x10] sm:$0xff]   ;;  %v680_v40 = vunpack.c.0.s8 %v679_v37 }
   0x4   :  { %v4763_v3 = vld [vmem:[%s6285_s1 + $0x80] sm:$0xff]   ;;  %4259 = vmatpush3.bf16.msra.mxu0 %v4762_v2  ;;  %v4767_v7 = vld [vmem:[%s6285_s1 + $0x88] sm:$0xff]   ;;  %v4771_v11 = vld [vmem:[%s6285_s1 + $0x90] sm:$0xff]  }
   0x5   :  { %4281 = vmatpush3.bf16.msra.mxu1 %v4763_v3  ;;  %4260 = vmatprep.subr.bf16.mxu0 %v4764_v4  ;;  %v4772_v12 = vld [vmem:[%s6285_s1 + $0x58] sm:$0xff]   ;;  %v4776_v16 = vld [vmem:[%s6285_s1 + $0x60] sm:$0xff]   ;;  %v4780_v20 = vld [vmem:[%s6285_s1 + $0x68] sm:$0xff]   ;;  %v5264_v41 = vsub.s32 %v680_v40, %v682_v33 }
   0x6   :  { %4282 = vmatprep.subr.bf16.mxu1 %v4765_v5  ;;  %v4773_v13 = vld [vmem:[%s6285_s1 + $0xd8] sm:$0xff]   ;;  %v4777_v17 = vld [vmem:[%s6285_s1 + $0xe0] sm:$0xff]   ;;  %v4781_v21 = vld [vmem:[%s6285_s1 + $0xe8] sm:$0xff]  }
   0x7   :  { %v4774_v14 = vld [vmem:[%s6285_s1 + $0x18] sm:$0xff]   ;;  %v4778_v18 = vld [vmem:[%s6285_s1 + $0x20] sm:$0xff]   ;;  %v4782_v22 = vld [vmem:[%s6285_s1 + $0x28] sm:$0xff]  }
   0x8   :  { %4261 = vmatpush3.bf16.msra.mxu0 %v4766_v6  ;;  %v4775_v15 = vld [vmem:[%s6285_s1 + $0x98] sm:$0xff]   ;;  %v4779_v19 = vld [vmem:[%s6285_s1 + $0xa0] sm:$0xff]   ;;  %v4783_v23 = vld [vmem:[%s6285_s1 + $0xa8] sm:$0xff]  }
   0x9   :  { %4283 = vmatpush3.bf16.msra.mxu1 %v4767_v7  ;;  %4262 = vmatprep.subr.bf16.mxu0 %v4768_v8  ;;  %v4784_v24 = vld [vmem:[%s6285_s1 + $0x70] sm:$0xff]   ;;  %v4788_v29 = vld [vmem:[%s6285_s1 + $0x78] sm:$0xff]   ;;  %v22_v34 = vld [vmem:[%s6284_s0] sm:$0xff] }
   0xa   :  { %4284 = vmatprep.subr.bf16.mxu1 %v4769_v9  ;;  %v4785_v25 = vld [vmem:[%s6285_s1 + $0xf0] sm:$0xff]   ;;  %v4789_v30 = vld [vmem:[%s6285_s1 + $0xf8] sm:$0xff]   ;;  %v4793_v35 = vld [vmem:[%s6285_s1 + $0x140] sm:$0xff]   ;;  %v677_v39 = vcombine.high %v22_v34, %v22_v34  ;;  %v684_v42 = vrot.slane %v22_v34, %v5264_v41 }
   0xb   :  { %v4786_v26 = vld [vmem:[%s6285_s1 + $0x30] sm:$0xff]   ;;  %v4790_v31 = vld [vmem:[%s6285_s1 + $0x38] sm:$0xff]   ;;  %v4794_v38 = vld [vmem:[%s6285_s1 + $0x1c0] sm:$0xff]  }
   0xc   :  { %4263 = vmatpush3.bf16.msra.mxu0 %v4770_v10  ;;  %v4787_v27 = vld [vmem:[%s6285_s1 + $0xb0] sm:$0xff]   ;;  %v4791_v32 = vld [vmem:[%s6285_s1 + $0xb8] sm:$0xff]   ;;  %v5268_v43 = vrot.slane %v677_v39, %v5264_v41  ;;  %v692_v44 = vcombine.high %v684_v42, %v684_v42  ;;  %v700_v45 = vrot.slane %v684_v42, %v5264_v41  ;;  %v4795_v47 = vld [vmem:[%s6285_s1 + $0x100] sm:$0xff]  }
   0xd   :  { %4285 = vmatpush3.bf16.msra.mxu1 %v4771_v11  ;;  %4264 = vmatprep.subr.bf16.mxu0 %v4772_v12  ;;  %v4796_v49 = vld [vmem:[%s6285_s1 + $0x180] sm:$0xff]   ;;  %v4797_v52 = vld [vmem:[%s6285_s1 + $0x148] sm:$0xff]   ;;  %v4801_v58 = vld [vmem:[%s6285_s1 + $0x150] sm:$0xff]  }
   0xe   :  { %4286 = vmatprep.subr.bf16.mxu1 %v4773_v13  ;;  %v693_v46 = vcombine.high %v5268_v43, %v5268_v43  ;;  %v714_v48 = vrot.slane %v692_v44, %v5264_v41  ;;  %v722_v51 = vcombine.high %v700_v45, %v700_v45  ;;  %v4798_v54 = vld [vmem:[%s6285_s1 + $0x1c8] sm:$0xff]   ;;  %v4802_v59 = vld [vmem:[%s6285_s1 + $0x1d0] sm:$0xff]   ;;  %v4805_v62 = vld [vmem:[%s6285_s1 + $0x158] sm:$0xff]  }
   0xf   :  { %v4799_v55 = vld [vmem:[%s6285_s1 + $0x108] sm:$0xff]   ;;  %v4803_v60 = vld [vmem:[%s6285_s1 + $0x110] sm:$0xff]   ;;  %v4806_v63 = vld [vmem:[%s6285_s1 + $0x1d8] sm:$0xff]  }
  0x10   :  { %4265 = vmatpush3.bf16.msra.mxu0 %v4774_v14  ;;  %v721_v50 = vrot.slane %v693_v46, %v5264_v41  ;;  %2914 = vmatprep.mubr.bf16.mxu0 %v714_v48  ;;  %v724_v53 = vcombine.high %v714_v48, %v714_v48  ;;  %v4800_v57 = vld [vmem:[%s6285_s1 + $0x188] sm:$0xff]   ;;  %v4804_v61 = vld [vmem:[%s6285_s1 + $0x190] sm:$0xff]   ;;  %v4807_v0 = vld [vmem:[%s6285_s1 + $0x118] sm:$0xff]  }
  0x11   :  { %4287 = vmatpush3.bf16.msra.mxu1 %v4775_v15  ;;  %4266 = vmatprep.subr.bf16.mxu0 %v4776_v16  ;;  %v4808_v1 = vld [vmem:[%s6285_s1 + $0x198] sm:$0xff]   ;;  %v4809_v2 = vld [vmem:[%s6285_s1 + $0x160] sm:$0xff]   ;;  %v4813_v6 = vld [vmem:[%s6285_s1 + $0x168] sm:$0xff]  }
  0x12   :  { %4288 = vmatprep.subr.bf16.mxu1 %v4777_v17  ;;  %v725_v56 = vcombine.high %v721_v50, %v721_v50  ;;  %2954 = vmatprep.mubr.bf16.mxu1 %v724_v53  ;;  %v4810_v3 = vld [vmem:[%s6285_s1 + $0x1e0] sm:$0xff]   ;;  %v4814_v7 = vld [vmem:[%s6285_s1 + $0x1e8] sm:$0xff]   ;;  %v4817_v10 = vld [vmem:[%s6285_s1 + $0x170] sm:$0xff]  }
  0x13   :  { %v4811_v4 = vld [vmem:[%s6285_s1 + $0x120] sm:$0xff]   ;;  %v4815_v8 = vld [vmem:[%s6285_s1 + $0x128] sm:$0xff]   ;;  %v4818_v11 = vld [vmem:[%s6285_s1 + $0x1f0] sm:$0xff]  }
  0x14   :  { %4267 = vmatpush3.bf16.msra.mxu0 %v4778_v18  ;;  %v4812_v5 = vld [vmem:[%s6285_s1 + $0x1a0] sm:$0xff]   ;;  %v4816_v9 = vld [vmem:[%s6285_s1 + $0x1a8] sm:$0xff]   ;;  %v4819_v12 = vld [vmem:[%s6285_s1 + $0x130] sm:$0xff]   ;;  %v707_v18 = vrot.slane %v5268_v43, %v5264_v41 }
  0x15   :  { %4289 = vmatpush3.bf16.msra.mxu1 %v4779_v19  ;;  %4268 = vmatprep.subr.bf16.mxu0 %v4780_v20  ;;  %v4820_v13 = vld [vmem:[%s6285_s1 + $0x1b0] sm:$0xff]   ;;  %v4821_v14 = vld [vmem:[%s6285_s1 + $0x178] sm:$0xff]   ;;  %v4825_v19 = vld [vmem:[%s6285_s1 + $0x240] sm:$0xff]  }
  0x16   :  { %4290 = vmatprep.subr.bf16.mxu1 %v4781_v21  ;;  %v4822_v15 = vld [vmem:[%s6285_s1 + $0x1f8] sm:$0xff]   ;;  %v4826_v20 = vld [vmem:[%s6285_s1 + $0x2c0] sm:$0xff]   ;;  %v4833_v28 = vld [vmem:[%s6285_s1 + $0x250] sm:$0xff]  }
  0x17   :  { %v4823_v16 = vld [vmem:[%s6285_s1 + $0x138] sm:$0xff]   ;;  %v4827_v21 = vld [vmem:[%s6285_s1 + $0x200] sm:$0xff]   ;;  %v4845_v40 = vld [vmem:[%s6285_s1 + $0x268] sm:$0xff]  }
  0x18   :  { %4269 = vmatpush3.bf16.msra.mxu0 %v4782_v22  ;;  %v4824_v17 = vld [vmem:[%s6285_s1 + $0x1b8] sm:$0xff]   ;;  %v4828_v22 = vld [vmem:[%s6285_s1 + $0x280] sm:$0xff]   ;;  %v4846_v42 = vld [vmem:[%s6285_s1 + $0x2e8] sm:$0xff]  }
  0x19   :  { %4291 = vmatpush3.bf16.msra.mxu1 %v4783_v23  ;;  %4270 = vmatprep.subr.bf16.mxu0 %v4784_v24  ;;  %v723_v23 = vcombine.high %v707_v18, %v707_v18  ;;  %v4829_v24 = vld [vmem:[%s6285_s1 + $0x248] sm:$0xff]   ;;  %v4838_v33 = vld [vmem:[%s6285_s1 + $0x2d8] sm:$0xff]   ;;  %v4841_v36 = vld [vmem:[%s6285_s1 + $0x260] sm:$0xff]  }
  0x1a   :  { %4292 = vmatprep.subr.bf16.mxu1 %v4785_v25  ;;  %v4830_v25 = vld [vmem:[%s6285_s1 + $0x2c8] sm:$0xff]   ;;  %v4839_v34 = vld [vmem:[%s6285_s1 + $0x218] sm:$0xff]   ;;  %v4842_v37 = vld [vmem:[%s6285_s1 + $0x2e0] sm:$0xff]  }
  0x1b   :  { %v4844_v39 = vld [vmem:[%s6285_s1 + $0x2a0] sm:$0xff]   ;;  %v4847_v43 = vld [vmem:[%s6285_s1 + $0x228] sm:$0xff]  }
  0x1c   :  { %4271 = vmatpush3.bf16.msra.mxu0 %v4786_v26  ;;  %v4831_v26 = vld [vmem:[%s6285_s1 + $0x208] sm:$0xff]  }
  0x1d   :  { %4293 = vmatpush3.bf16.msra.mxu1 %v4787_v27  ;;  %4272 = vmatprep.subr.bf16.mxu0 %v4788_v29  ;;  %v4832_v27 = vld [vmem:[%s6285_s1 + $0x288] sm:$0xff]   ;;  %v4834_v29 = vld [vmem:[%s6285_s1 + $0x2d0] sm:$0xff]  }
  0x1e   :  { %4294 = vmatprep.subr.bf16.mxu1 %v4789_v30  ;;  %v4835_v30 = vld [vmem:[%s6285_s1 + $0x210] sm:$0xff]   ;;  %v4848_v44 = vld [vmem:[%s6285_s1 + $0x2a8] sm:$0xff]  }
  0x1f   :  { %v23_v46 = vld [vmem:[%s6284_s0 + $0x8] sm:$0xff] }
  0x20   :  { %4273 = vmatpush3.bf16.msra.mxu0 %v4790_v31  ;;  %v4836_v31 = vld [vmem:[%s6285_s1 + $0x290] sm:$0xff]   ;;  %v733_v48 = vrot.slane %v23_v46, %v5264_v41 }
  0x21   :  { %4295 = vmatpush3.bf16.msra.mxu1 %v4791_v32  ;;  %4302 = vmatprep.subr.bf16.mxu0 %v4793_v35  ;;  %v4837_v32 = vld [vmem:[%s6285_s1 + $0x258] sm:$0xff]  }
  0x22   :  { %4324 = vmatprep.subr.bf16.mxu1 %v4794_v38  ;;  %v4840_v35 = vld [vmem:[%s6285_s1 + $0x298] sm:$0xff]   ;;  %v4843_v38 = vld [vmem:[%s6285_s1 + $0x220] sm:$0xff]  }
  0x23   :  { %2915 = vmatmul.mubr.bf16.vlgmr.msra.gmra.mrb[0].mxu0 %v700_v45  ;;  %v4849_v45 = vld [vmem:[%s6285_s1 + $0x270] sm:$0xff]  }
  0x24   :  { %4303 = vmatpush3.bf16.msra.mxu0 %v4795_v47  ;;  %2955 = vmatmul.mubr.bf16.vlgmr.msra.gmra.mrb[0].mxu1 %v722_v51  ;;  %v4850_v47 = vld [vmem:[%s6285_s1 + $0x2f0] sm:$0xff]  }
  0x25   :  { %4304 = vmatprep.subr.bf16.mxu0 %v4797_v52  ;;  %4325 = vmatpush3.bf16.msra.mxu1 %v4796_v49  ;;  %v726_v49 = vcombine.high %v23_v46, %v23_v46  ;;  %v4852_v51 = vld [vmem:[%s6285_s1 + $0x2b0] sm:$0xff]   ;;  %v741_v52 = vcombine.high %v733_v48, %v733_v48 }
  0x26   :  { %2994 = vmatprep.mubr.bf16.mxu0 %v721_v50  ;;  %4326 = vmatprep.subr.bf16.mxu1 %v4798_v54  ;;  %v4851_v50 = vld [vmem:[%s6285_s1 + $0x230] sm:$0xff]   ;;  %v4853_v54 = vld [vmem:[%s6285_s1 + $0x278] sm:$0xff]  }
  0x27   :  { %3034 = vmatprep.mubr.bf16.mxu1 %v725_v56  ;;  %v5456_v53 = vrot.slane %v726_v49, %v5264_v41  ;;  %v763_v56 = vrot.slane %v741_v52, %v5264_v41  ;;  %v4900_v46 = vld [vmem:[%s6285_s1 + $0x410] sm:$0xff]   ;;  %v4903_v49 = vld [vmem:[%s6285_s1 + $0x4d8] sm:$0xff]   ;;  %v4906_v52 = vld [vmem:[%s6285_s1 + $0x460] sm:$0xff]  }
  0x28   :  { %4305 = vmatpush3.bf16.msra.mxu0 %v4799_v55  ;;  %v4854_v55 = vld [vmem:[%s6285_s1 + $0x2f8] sm:$0xff]  }
  0x29   :  { %4306 = vmatprep.subr.bf16.mxu0 %v4801_v58  ;;  %4327 = vmatpush3.bf16.msra.mxu1 %v4800_v57  ;;  %v742_v57 = vcombine.high %v5456_v53, %v5456_v53  ;;  %v4855_v58 = vld [vmem:[%s6285_s1 + $0x238] sm:$0xff]  }
  0x2a   :  { %4328 = vmatprep.subr.bf16.mxu1 %v4802_v59  ;;  %v4856_v59 = vld [vmem:[%s6285_s1 + $0x2b8] sm:$0xff]  }
  0x2c   :  { %4307 = vmatpush3.bf16.msra.mxu0 %v4803_v60  ;;  %v773_v60 = vcombine.high %v763_v56, %v763_v56 }
  0x2d   :  { %4308 = vmatprep.subr.bf16.mxu0 %v4805_v62  ;;  %4329 = vmatpush3.bf16.msra.mxu1 %v4804_v61  ;;  %v749_v61 = vrot.slane %v733_v48, %v5264_v41  ;;  %v4857_v62 = vld [vmem:[%s6285_s1 + $0x340] sm:$0xff]   ;;  %v4902_v48 = vld [vmem:[%s6285_s1 + $0x458] sm:$0xff]  }
  0x2e   :  { %4330 = vmatprep.subr.bf16.mxu1 %v4806_v63  ;;  %v4858_v63 = vld [vmem:[%s6285_s1 + $0x3c0] sm:$0xff]  }
  0x30   :  { %4309 = vmatpush3.bf16.msra.mxu0 %v4807_v0  ;;  %v770_v0 = vrot.slane %v742_v57, %v5264_v41  ;;  %v4911_v57 = vld [vmem:[%s6285_s1 + $0x4e8] sm:$0xff]  }
  0x31   :  { %4310 = vmatprep.subr.bf16.mxu0 %v4809_v2  ;;  %4331 = vmatpush3.bf16.msra.mxu1 %v4808_v1  ;;  %v4859_v1 = vld [vmem:[%s6285_s1 + $0x300] sm:$0xff]  }
  0x32   :  { %4332 = vmatprep.subr.bf16.mxu1 %v4810_v3  ;;  %v4860_v2 = vld [vmem:[%s6285_s1 + $0x380] sm:$0xff]   ;;  %v771_v3 = vcombine.high %v749_v61, %v749_v61 }
  0x34   :  { %4311 = vmatpush3.bf16.msra.mxu0 %v4811_v4  ;;  %v4861_v4 = vld [vmem:[%s6285_s1 + $0x348] sm:$0xff]  }
  0x35   :  { %4312 = vmatprep.subr.bf16.mxu0 %v4813_v6  ;;  %4333 = vmatpush3.bf16.msra.mxu1 %v4812_v5  ;;  %v4862_v5 = vld [vmem:[%s6285_s1 + $0x3c8] sm:$0xff]   ;;  %v774_v6 = vcombine.high %v770_v0, %v770_v0 }
  0x36   :  { %4334 = vmatprep.subr.bf16.mxu1 %v4814_v7  ;;  %v4863_v7 = vld [vmem:[%s6285_s1 + $0x308] sm:$0xff]  }
  0x38   :  { %4313 = vmatpush3.bf16.msra.mxu0 %v4815_v8  ;;  %v4864_v8 = vld [vmem:[%s6285_s1 + $0x388] sm:$0xff]  }
  0x39   :  { %4314 = vmatprep.subr.bf16.mxu0 %v4817_v10  ;;  %4335 = vmatpush3.bf16.msra.mxu1 %v4816_v9  ;;  %v4865_v9 = vld [vmem:[%s6285_s1 + $0x350] sm:$0xff]  }
  0x3a   :  { %4336 = vmatprep.subr.bf16.mxu1 %v4818_v11  ;;  %v4866_v10 = vld [vmem:[%s6285_s1 + $0x3d0] sm:$0xff]  }
  0x3b   :  { %v4867_v11 = vld [vmem:[%s6285_s1 + $0x310] sm:$0xff]  }
  0x3c   :  { %4315 = vmatpush3.bf16.msra.mxu0 %v4819_v12  ;;  %v4868_v12 = vld [vmem:[%s6285_s1 + $0x390] sm:$0xff]  }
  0x3d   :  { %4316 = vmatprep.subr.bf16.mxu0 %v4821_v14  ;;  %4337 = vmatpush3.bf16.msra.mxu1 %v4820_v13  ;;  %v4869_v13 = vld [vmem:[%s6285_s1 + $0x358] sm:$0xff]  }
  0x3e   :  { %4338 = vmatprep.subr.bf16.mxu1 %v4822_v15  ;;  %v4870_v14 = vld [vmem:[%s6285_s1 + $0x3d8] sm:$0xff]  }
  0x3f   :  { %v4871_v15 = vld [vmem:[%s6285_s1 + $0x318] sm:$0xff]  }
  0x40   :  { %4317 = vmatpush3.bf16.msra.mxu0 %v4823_v16  ;;  %v4872_v16 = vld [vmem:[%s6285_s1 + $0x398] sm:$0xff]  }
  0x41   :  { %4346 = vmatprep.subr.bf16.mxu0 %v4825_v19  ;;  %4339 = vmatpush3.bf16.msra.mxu1 %v4824_v17  ;;  %v4873_v17 = vld [vmem:[%s6285_s1 + $0x360] sm:$0xff]  }
  0x42   :  { %4368 = vmatprep.subr.bf16.mxu1 %v4826_v20  ;;  %v4875_v19 = vld [vmem:[%s6285_s1 + $0x320] sm:$0xff]  }
  0x43   :  { %2995 = vmatmul.mubr.bf16.vlgmr.msra.gmra.mrb[4].mxu0 %v707_v18  ;;  %v4874_v18 = vld [vmem:[%s6285_s1 + $0x3e0] sm:$0xff]  }
  0x44   :  { %4347 = vmatpush3.bf16.msra.mxu0 %v4827_v21  ;;  %3035 = vmatmul.mubr.bf16.vlgmr.msra.gmra.mrb[4].mxu1 %v723_v23  ;;  %v4876_v20 = vld [vmem:[%s6285_s1 + $0x3a0] sm:$0xff]   ;;  %v4877_v21 = vld [vmem:[%s6285_s1 + $0x368] sm:$0xff]  }
  0x45   :  { %4348 = vmatprep.subr.bf16.mxu0 %v4829_v24  ;;  %4369 = vmatpush3.bf16.msra.mxu1 %v4828_v22  ;;  %v4878_v22 = vld [vmem:[%s6285_s1 + $0x3e8] sm:$0xff]  }
  0x46   :  { %4370 = vmatprep.subr.bf16.mxu1 %v4830_v25  ;;  %3074 = vmatprep.mubr.bf16.mxu0 %v763_v56  ;;  %v4879_v23 = vld [vmem:[%s6285_s1 + $0x328] sm:$0xff]   ;;  %v4881_v25 = vld [vmem:[%s6285_s1 + $0x370] sm:$0xff]  }
  0x47   :  { %3114 = vmatprep.mubr.bf16.mxu1 %v773_v60  ;;  %v4880_v24 = vld [vmem:[%s6285_s1 + $0x3a8] sm:$0xff]   ;;  %v4914_v60 = vld [vmem:[%s6285_s1 + $0x470] sm:$0xff]  }
  0x48   :  { %4349 = vmatpush3.bf16.msra.mxu0 %v4831_v26  ;;  %v4882_v26 = vld [vmem:[%s6285_s1 + $0x3f0] sm:$0xff]   ;;  %v4910_v56 = vld [vmem:[%s6285_s1 + $0x468] sm:$0xff]  }
  0x49   :  { %4350 = vmatprep.subr.bf16.mxu0 %v4833_v28  ;;  %4371 = vmatpush3.bf16.msra.mxu1 %v4832_v27  ;;  %v4883_v27 = vld [vmem:[%s6285_s1 + $0x330] sm:$0xff]  }
  0x4a   :  { %4372 = vmatprep.subr.bf16.mxu1 %v4834_v29  ;;  %v4884_v28 = vld [vmem:[%s6285_s1 + $0x3b0] sm:$0xff]   ;;  %v4885_v29 = vld [vmem:[%s6285_s1 + $0x378] sm:$0xff]  }
  0x4c   :  { %4351 = vmatpush3.bf16.msra.mxu0 %v4835_v30  ;;  %v4886_v30 = vld [vmem:[%s6285_s1 + $0x3f8] sm:$0xff]  }
  0x4d   :  { %4352 = vmatprep.subr.bf16.mxu0 %v4837_v32  ;;  %4373 = vmatpush3.bf16.msra.mxu1 %v4836_v31  ;;  %v4887_v31 = vld [vmem:[%s6285_s1 + $0x338] sm:$0xff]  }
  0x4e   :  { %4374 = vmatprep.subr.bf16.mxu1 %v4838_v33  ;;  %v4888_v32 = vld [vmem:[%s6285_s1 + $0x3b8] sm:$0xff]   ;;  %v756_v33 = vrot.slane %v5456_v53, %v5264_v41  ;;  %v4907_v53 = vld [vmem:[%s6285_s1 + $0x4e0] sm:$0xff]  }
  0x50   :  { %4353 = vmatpush3.bf16.msra.mxu0 %v4839_v34  ;;  %v4890_v34 = vld [vmem:[%s6285_s1 + $0x440] sm:$0xff]  }
  0x51   :  { %4354 = vmatprep.subr.bf16.mxu0 %v4841_v36  ;;  %4375 = vmatpush3.bf16.msra.mxu1 %v4840_v35  ;;  %v4891_v35 = vld [vmem:[%s6285_s1 + $0x4c0] sm:$0xff]  }
  0x52   :  { %4376 = vmatprep.subr.bf16.mxu1 %v4842_v37  ;;  %v4892_v36 = vld [vmem:[%s6285_s1 + $0x400] sm:$0xff]  }
  0x53   :  { %v4893_v37 = vld [vmem:[%s6285_s1 + $0x480] sm:$0xff]  }
  0x54   :  { %4355 = vmatpush3.bf16.msra.mxu0 %v4843_v38  ;;  %v772_v38 = vcombine.high %v756_v33, %v756_v33 }
  0x55   :  { %4356 = vmatprep.subr.bf16.mxu0 %v4845_v40  ;;  %4377 = vmatpush3.bf16.msra.mxu1 %v4844_v39  ;;  %v4894_v39 = vld [vmem:[%s6285_s1 + $0x448] sm:$0xff]  }
  0x56   :  { %4378 = vmatprep.subr.bf16.mxu1 %v4846_v42  ;;  %v4895_v40 = vld [vmem:[%s6285_s1 + $0x4c8] sm:$0xff]  }
  0x57   :  { %v4896_v42 = vld [vmem:[%s6285_s1 + $0x408] sm:$0xff]  }
  0x58   :  { %4357 = vmatpush3.bf16.msra.mxu0 %v4847_v43  ;;  %v4897_v43 = vld [vmem:[%s6285_s1 + $0x488] sm:$0xff]  }
  0x59   :  { %4358 = vmatprep.subr.bf16.mxu0 %v4849_v45  ;;  %4379 = vmatpush3.bf16.msra.mxu1 %v4848_v44  ;;  %v4898_v44 = vld [vmem:[%s6285_s1 + $0x450] sm:$0xff]  }
  0x5a   :  { %4380 = vmatprep.subr.bf16.mxu1 %v4850_v47  ;;  %v4899_v45 = vld [vmem:[%s6285_s1 + $0x4d0] sm:$0xff]  }
  0x5b   :  { %v4901_v47 = vld [vmem:[%s6285_s1 + $0x490] sm:$0xff]  }
  0x5c   :  { %4359 = vmatpush3.bf16.msra.mxu0 %v4851_v50  ;;  %v4904_v50 = vld [vmem:[%s6285_s1 + $0x418] sm:$0xff]  }
  0x5d   :  { %4360 = vmatprep.subr.bf16.mxu0 %v4853_v54  ;;  %4381 = vmatpush3.bf16.msra.mxu1 %v4852_v51  ;;  %v4905_v51 = vld [vmem:[%s6285_s1 + $0x498] sm:$0xff]   ;;  %v4908_v54 = vld [vmem:[%s6285_s1 + $0x420] sm:$0xff]  }
  0x5e   :  { %4382 = vmatprep.subr.bf16.mxu1 %v4854_v55  ;;  %v4909_v55 = vld [vmem:[%s6285_s1 + $0x4a0] sm:$0xff]  }
  0x60   :  { %4361 = vmatpush3.bf16.msra.mxu0 %v4855_v58  ;;  %v4912_v58 = vld [vmem:[%s6285_s1 + $0x428] sm:$0xff]  }
  0x61   :  { %4390 = vmatprep.subr.bf16.mxu0 %v4857_v62  ;;  %4383 = vmatpush3.bf16.msra.mxu1 %v4856_v59  ;;  %v4913_v59 = vld [vmem:[%s6285_s1 + $0x4a8] sm:$0xff]   ;;  %v4915_v62 = vld [vmem:[%s6285_s1 + $0x4f0] sm:$0xff]  }
  0x62   :  { %4412 = vmatprep.subr.bf16.mxu1 %v4858_v63 }
  0x63   :  { %3075 = vmatmul.mubr.bf16.vlgmr.msra.gmra.mrb[8].mxu0 %v749_v61  ;;  %v24_v61 = vld [vmem:[%s6284_s0 + $0x10] sm:$0xff] }
  0x64   :  { %4391 = vmatpush3.bf16.msra.mxu0 %v4859_v1  ;;  %3154 = vmatprep.mubr.bf16.mxu0 %v770_v0  ;;  %v782_v63 = vrot.slane %v24_v61, %v5264_v41  ;;  %v775_v0 = vcombine.high %v24_v61, %v24_v61  ;;  %v4916_v1 = vld [vmem:[%s6285_s1 + $0x430] sm:$0xff]  }
  0x65   :  { %3115 = vmatmul.mubr.bf16.vlgmr.msra.gmra.mrb[8].mxu1 %v771_v3  ;;  %4392 = vmatprep.subr.bf16.mxu0 %v4861_v4  ;;  %v4965_v61 = vld [vmem:[%s6285_s1 + $0x610] sm:$0xff]  }
  0x66   :  { %4413 = vmatpush3.bf16.msra.mxu1 %v4860_v2  ;;  %3194 = vmatprep.mubr.bf16.mxu1 %v774_v6  ;;  %v4917_v2 = vld [vmem:[%s6285_s1 + $0x4b0] sm:$0xff]   ;;  %v790_v3 = vcombine.high %v782_v63, %v782_v63  ;;  %v5662_v4 = vrot.slane %v775_v0, %v5264_v41  ;;  %v4919_v6 = vld [vmem:[%s6285_s1 + $0x4f8] sm:$0xff]  }
  0x67   :  { %4414 = vmatprep.subr.bf16.mxu1 %v4862_v5  ;;  %v4918_v5 = vld [vmem:[%s6285_s1 + $0x478] sm:$0xff]  }
  0x68   :  { %4393 = vmatpush3.bf16.msra.mxu0 %v4863_v7  ;;  %v812_v7 = vrot.slane %v790_v3, %v5264_v41  ;;  %v4968_v0 = vld [vmem:[%s6285_s1 + $0x6d8] sm:$0xff]   ;;  %v4971_v3 = vld [vmem:[%s6285_s1 + $0x660] sm:$0xff]  }
  0x69   :  { %4394 = vmatprep.subr.bf16.mxu0 %v4865_v9  ;;  %v4920_v9 = vld [vmem:[%s6285_s1 + $0x438] sm:$0xff]  }
  0x6a   :  { %4415 = vmatpush3.bf16.msra.mxu1 %v4864_v8  ;;  %v791_v8 = vcombine.high %v5662_v4, %v5662_v4 }
  0x6b   :  { %4416 = vmatprep.subr.bf16.mxu1 %v4866_v10  ;;  %v4921_v10 = vld [vmem:[%s6285_s1 + $0x4b8] sm:$0xff]  }
  0x6c   :  { %4395 = vmatpush3.bf16.msra.mxu0 %v4867_v11  ;;  %v822_v11 = vcombine.high %v812_v7, %v812_v7 }
  0x6d   :  { %4396 = vmatprep.subr.bf16.mxu0 %v4869_v13  ;;  %v4922_v13 = vld [vmem:[%s6285_s1 + $0x540] sm:$0xff]  }
  0x6e   :  { %4417 = vmatpush3.bf16.msra.mxu1 %v4868_v12  ;;  %v798_v12 = vrot.slane %v782_v63, %v5264_v41  ;;  %v4967_v63 = vld [vmem:[%s6285_s1 + $0x658] sm:$0xff]  }
  0x6f   :  { %4418 = vmatprep.subr.bf16.mxu1 %v4870_v14  ;;  %v4923_v14 = vld [vmem:[%s6285_s1 + $0x5c0] sm:$0xff]  }
  0x70   :  { %4397 = vmatpush3.bf16.msra.mxu0 %v4871_v15  ;;  %v819_v15 = vrot.slane %v791_v8, %v5264_v41  ;;  %v4976_v8 = vld [vmem:[%s6285_s1 + $0x6e8] sm:$0xff]  }
  0x71   :  { %4398 = vmatprep.subr.bf16.mxu0 %v4873_v17  ;;  %v4925_v17 = vld [vmem:[%s6285_s1 + $0x580] sm:$0xff]  }
  0x72   :  { %4419 = vmatpush3.bf16.msra.mxu1 %v4872_v16  ;;  %v4924_v16 = vld [vmem:[%s6285_s1 + $0x500] sm:$0xff]  }
  0x73   :  { %4420 = vmatprep.subr.bf16.mxu1 %v4874_v18  ;;  %v820_v18 = vcombine.high %v798_v12, %v798_v12 }
  0x74   :  { %4399 = vmatpush3.bf16.msra.mxu0 %v4875_v19  ;;  %v4926_v19 = vld [vmem:[%s6285_s1 + $0x548] sm:$0xff]  }
  0x75   :  { %4400 = vmatprep.subr.bf16.mxu0 %v4877_v21  ;;  %v823_v21 = vcombine.high %v819_v15, %v819_v15 }
  0x76   :  { %4421 = vmatpush3.bf16.msra.mxu1 %v4876_v20  ;;  %v4927_v20 = vld [vmem:[%s6285_s1 + $0x5c8] sm:$0xff]  }
  0x77   :  { %4422 = vmatprep.subr.bf16.mxu1 %v4878_v22  ;;  %v4928_v22 = vld [vmem:[%s6285_s1 + $0x508] sm:$0xff]  }
  0x78   :  { %4401 = vmatpush3.bf16.msra.mxu0 %v4879_v23  ;;  %v4929_v23 = vld [vmem:[%s6285_s1 + $0x588] sm:$0xff]  }
  0x79   :  { %4402 = vmatprep.subr.bf16.mxu0 %v4881_v25  ;;  %v4931_v25 = vld [vmem:[%s6285_s1 + $0x5d0] sm:$0xff]  }
  0x7a   :  { %4423 = vmatpush3.bf16.msra.mxu1 %v4880_v24  ;;  %v4930_v24 = vld [vmem:[%s6285_s1 + $0x550] sm:$0xff]  }
  0x7b   :  { %4424 = vmatprep.subr.bf16.mxu1 %v4882_v26  ;;  %v4932_v26 = vld [vmem:[%s6285_s1 + $0x510] sm:$0xff]  }
  0x7c   :  { %4403 = vmatpush3.bf16.msra.mxu0 %v4883_v27  ;;  %v4933_v27 = vld [vmem:[%s6285_s1 + $0x590] sm:$0xff]  }
  0x7d   :  { %4404 = vmatprep.subr.bf16.mxu0 %v4885_v29  ;;  %v4935_v29 = vld [vmem:[%s6285_s1 + $0x5d8] sm:$0xff]  }
  0x7e   :  { %4425 = vmatpush3.bf16.msra.mxu1 %v4884_v28  ;;  %v4934_v28 = vld [vmem:[%s6285_s1 + $0x558] sm:$0xff]  }
  0x7f   :  { %4426 = vmatprep.subr.bf16.mxu1 %v4886_v30  ;;  %v4936_v30 = vld [vmem:[%s6285_s1 + $0x518] sm:$0xff]  }
  0x80   :  { %4405 = vmatpush3.bf16.msra.mxu0 %v4887_v31  ;;  %v4937_v31 = vld [vmem:[%s6285_s1 + $0x598] sm:$0xff]  }
  0x81   :  { %4434 = vmatprep.subr.bf16.mxu0 %v4890_v34  ;;  %v4940_v34 = vld [vmem:[%s6285_s1 + $0x520] sm:$0xff]  }
  0x82   :  { %4427 = vmatpush3.bf16.msra.mxu1 %v4888_v32  ;;  %v4938_v32 = vld [vmem:[%s6285_s1 + $0x560] sm:$0xff]  }
  0x83   :  { %3155 = vmatmul.mubr.bf16.vlgmr.msra.gmra.mrb[12].mxu0 %v756_v33  ;;  %4456 = vmatprep.subr.bf16.mxu1 %v4891_v35  ;;  %v4939_v33 = vld [vmem:[%s6285_s1 + $0x5e0] sm:$0xff]  }
  0x84   :  { %4435 = vmatpush3.bf16.msra.mxu0 %v4892_v36  ;;  %3234 = vmatprep.mubr.bf16.mxu0 %v812_v7  ;;  %v4941_v35 = vld [vmem:[%s6285_s1 + $0x5a0] sm:$0xff]   ;;  %v4942_v36 = vld [vmem:[%s6285_s1 + $0x568] sm:$0xff]  }
  0x85   :  { %3195 = vmatmul.mubr.bf16.vlgmr.msra.gmra.mrb[12].mxu1 %v772_v38  ;;  %4436 = vmatprep.subr.bf16.mxu0 %v4894_v39  ;;  %v4944_v38 = vld [vmem:[%s6285_s1 + $0x528] sm:$0xff]  }
  0x86   :  { %4457 = vmatpush3.bf16.msra.mxu1 %v4893_v37  ;;  %3274 = vmatprep.mubr.bf16.mxu1 %v822_v11  ;;  %v4943_v37 = vld [vmem:[%s6285_s1 + $0x5e8] sm:$0xff]   ;;  %v4979_v11 = vld [vmem:[%s6285_s1 + $0x670] sm:$0xff]  }
  0x87   :  { %4458 = vmatprep.subr.bf16.mxu1 %v4895_v40  ;;  %v4945_v39 = vld [vmem:[%s6285_s1 + $0x5a8] sm:$0xff]   ;;  %v4946_v40 = vld [vmem:[%s6285_s1 + $0x570] sm:$0xff]  }
  0x88   :  { %4437 = vmatpush3.bf16.msra.mxu0 %v4896_v42  ;;  %v4947_v42 = vld [vmem:[%s6285_s1 + $0x5f0] sm:$0xff]   ;;  %v4975_v7 = vld [vmem:[%s6285_s1 + $0x668] sm:$0xff]  }
  0x89   :  { %4438 = vmatprep.subr.bf16.mxu0 %v4898_v44  ;;  %v4949_v44 = vld [vmem:[%s6285_s1 + $0x5b0] sm:$0xff]  }
  0x8a   :  { %4459 = vmatpush3.bf16.msra.mxu1 %v4897_v43  ;;  %v4948_v43 = vld [vmem:[%s6285_s1 + $0x530] sm:$0xff]  }
  0x8b   :  { %4460 = vmatprep.subr.bf16.mxu1 %v4899_v45  ;;  %v4950_v45 = vld [vmem:[%s6285_s1 + $0x578] sm:$0xff]  }
  0x8c   :  { %4439 = vmatpush3.bf16.msra.mxu0 %v4900_v46  ;;  %v4951_v46 = vld [vmem:[%s6285_s1 + $0x5f8] sm:$0xff]  }
  0x8d   :  { %4440 = vmatprep.subr.bf16.mxu0 %v4902_v48  ;;  %v4953_v48 = vld [vmem:[%s6285_s1 + $0x5b8] sm:$0xff]  }
  0x8e   :  { %4461 = vmatpush3.bf16.msra.mxu1 %v4901_v47  ;;  %v4952_v47 = vld [vmem:[%s6285_s1 + $0x538] sm:$0xff]  }
  0x8f   :  { %4462 = vmatprep.subr.bf16.mxu1 %v4903_v49  ;;  %v805_v49 = vrot.slane %v5662_v4, %v5264_v41  ;;  %v4972_v4 = vld [vmem:[%s6285_s1 + $0x6e0] sm:$0xff]  }
  0x90   :  { %4441 = vmatpush3.bf16.msra.mxu0 %v4904_v50  ;;  %v4955_v50 = vld [vmem:[%s6285_s1 + $0x640] sm:$0xff]  }
  0x91   :  { %4442 = vmatprep.subr.bf16.mxu0 %v4906_v52  ;;  %v4957_v52 = vld [vmem:[%s6285_s1 + $0x600] sm:$0xff]  }
  0x92   :  { %4463 = vmatpush3.bf16.msra.mxu1 %v4905_v51  ;;  %v4956_v51 = vld [vmem:[%s6285_s1 + $0x6c0] sm:$0xff]  }
  0x93   :  { %4464 = vmatprep.subr.bf16.mxu1 %v4907_v53  ;;  %v4958_v53 = vld [vmem:[%s6285_s1 + $0x680] sm:$0xff]  }
  0x94   :  { %4443 = vmatpush3.bf16.msra.mxu0 %v4908_v54  ;;  %v821_v54 = vcombine.high %v805_v49, %v805_v49 }
  0x95   :  { %4444 = vmatprep.subr.bf16.mxu0 %v4910_v56  ;;  %v4960_v56 = vld [vmem:[%s6285_s1 + $0x6c8] sm:$0xff]  }
  0x96   :  { %4465 = vmatpush3.bf16.msra.mxu1 %v4909_v55  ;;  %v4959_v55 = vld [vmem:[%s6285_s1 + $0x648] sm:$0xff]  }
  0x97   :  { %4466 = vmatprep.subr.bf16.mxu1 %v4911_v57  ;;  %v4961_v57 = vld [vmem:[%s6285_s1 + $0x608] sm:$0xff]  }
  0x98   :  { %4445 = vmatpush3.bf16.msra.mxu0 %v4912_v58  ;;  %v4962_v58 = vld [vmem:[%s6285_s1 + $0x688] sm:$0xff]  }
  0x99   :  { %4446 = vmatprep.subr.bf16.mxu0 %v4914_v60  ;;  %v4964_v60 = vld [vmem:[%s6285_s1 + $0x6d0] sm:$0xff]  }
  0x9a   :  { %4467 = vmatpush3.bf16.msra.mxu1 %v4913_v59  ;;  %v4963_v59 = vld [vmem:[%s6285_s1 + $0x650] sm:$0xff]  }
  0x9b   :  { %4468 = vmatprep.subr.bf16.mxu1 %v4915_v62  ;;  %v4966_v62 = vld [vmem:[%s6285_s1 + $0x690] sm:$0xff]  }
  0x9c   :  { %4447 = vmatpush3.bf16.msra.mxu0 %v4916_v1  ;;  %v4969_v1 = vld [vmem:[%s6285_s1 + $0x618] sm:$0xff]  }
  0x9d   :  { %4448 = vmatprep.subr.bf16.mxu0 %v4918_v5  ;;  %v4973_v5 = vld [vmem:[%s6285_s1 + $0x620] sm:$0xff]  }
  0x9e   :  { %4469 = vmatpush3.bf16.msra.mxu1 %v4917_v2  ;;  %v4970_v2 = vld [vmem:[%s6285_s1 + $0x698] sm:$0xff]  }
  0x9f   :  { %4470 = vmatprep.subr.bf16.mxu1 %v4919_v6  ;;  %v4974_v6 = vld [vmem:[%s6285_s1 + $0x6a0] sm:$0xff]  }
  0xa0   :  { %4449 = vmatpush3.bf16.msra.mxu0 %v4920_v9  ;;  %v4977_v9 = vld [vmem:[%s6285_s1 + $0x628] sm:$0xff]  }
  0xa1   :  { %4478 = vmatprep.subr.bf16.mxu0 %v4922_v13  ;;  %v4980_v13 = vld [vmem:[%s6285_s1 + $0x6f0] sm:$0xff]  }
  0xa2   :  { %4471 = vmatpush3.bf16.msra.mxu1 %v4921_v10  ;;  %v4978_v10 = vld [vmem:[%s6285_s1 + $0x6a8] sm:$0xff]  }
  0xa3   :  { %3235 = vmatmul.mubr.bf16.vlgmr.msra.gmra.mrb[16].mxu0 %v798_v12  ;;  %4500 = vmatprep.subr.bf16.mxu1 %v4923_v14  ;;  %v25_v12 = vld [vmem:[%s6284_s0 + $0x18] sm:$0xff] }
  0xa4   :  { %4479 = vmatpush3.bf16.msra.mxu0 %v4924_v16  ;;  %3314 = vmatprep.mubr.bf16.mxu0 %v819_v15  ;;  %v831_v14 = vrot.slane %v25_v12, %v5264_v41  ;;  %v824_v15 = vcombine.high %v25_v12, %v25_v12  ;;  %v4981_v16 = vld [vmem:[%s6285_s1 + $0x630] sm:$0xff]   ;;  %v5018_v12 = vld [vmem:[%s6285_s1 + $0x7b8] sm:$0xff]  }
  0xa5   :  { %3275 = vmatmul.mubr.bf16.vlgmr.msra.gmra.mrb[16].mxu1 %v820_v18  ;;  %4480 = vmatprep.subr.bf16.mxu0 %v4926_v19 }
  0xa6   :  { %4501 = vmatpush3.bf16.msra.mxu1 %v4925_v17  ;;  %3354 = vmatprep.mubr.bf16.mxu1 %v823_v21  ;;  %v4983_v17 = vld [vmem:[%s6285_s1 + $0x678] sm:$0xff]   ;;  %v839_v18 = vcombine.high %v831_v14, %v831_v14  ;;  %v5868_v19 = vrot.slane %v824_v15, %v5264_v41  ;;  %v5021_v15 = vld [vmem:[%s6285_s1 + $0x8c0] sm:$0xff]  }
  0xa7   :  { %4502 = vmatprep.subr.bf16.mxu1 %v4927_v20  ;;  %v4982_v20 = vld [vmem:[%s6285_s1 + $0x6b0] sm:$0xff]   ;;  %v4984_v21 = vld [vmem:[%s6285_s1 + $0x6f8] sm:$0xff]  }
  0xa8   :  { %4481 = vmatpush3.bf16.msra.mxu0 %v4928_v22  ;;  %v861_v22 = vrot.slane %v839_v18, %v5264_v41 }
  0xa9   :  { %4482 = vmatprep.subr.bf16.mxu0 %v4930_v24  ;;  %v4985_v24 = vld [vmem:[%s6285_s1 + $0x638] sm:$0xff]  }
  0xaa   :  { %4503 = vmatpush3.bf16.msra.mxu1 %v4929_v23  ;;  %v840_v23 = vcombine.high %v5868_v19, %v5868_v19 }
  0xab   :  { %4504 = vmatprep.subr.bf16.mxu1 %v4931_v25  ;;  %v871_v25 = vcombine.high %v861_v22, %v861_v22 }
  0xac   :  { %4483 = vmatpush3.bf16.msra.mxu0 %v4932_v26  ;;  %v847_v26 = vrot.slane %v831_v14, %v5264_v41  ;;  %v5020_v14 = vld [vmem:[%s6285_s1 + $0x840] sm:$0xff]  }
  0xad   :  { %4484 = vmatprep.subr.bf16.mxu0 %v4934_v28  ;;  %v4986_v28 = vld [vmem:[%s6285_s1 + $0x6b8] sm:$0xff]  }
  0xae   :  { %4505 = vmatpush3.bf16.msra.mxu1 %v4933_v27  ;;  %v4987_v27 = vld [vmem:[%s6285_s1 + $0x740] sm:$0xff]  }
  0xaf   :  { %4506 = vmatprep.subr.bf16.mxu1 %v4935_v29  ;;  %v868_v29 = vrot.slane %v840_v23, %v5264_v41  ;;  %v5028_v23 = vld [vmem:[%s6285_s1 + $0x850] sm:$0xff]  }
  0xb0   :  { %4485 = vmatpush3.bf16.msra.mxu0 %v4936_v30  ;;  %v4988_v30 = vld [vmem:[%s6285_s1 + $0x7c0] sm:$0xff]  }
  0xb1   :  { %4486 = vmatprep.subr.bf16.mxu0 %v4938_v32  ;;  %v869_v32 = vcombine.high %v847_v26, %v847_v26 }
  0xb2   :  { %4507 = vmatpush3.bf16.msra.mxu1 %v4937_v31  ;;  %v4989_v31 = vld [vmem:[%s6285_s1 + $0x700] sm:$0xff]  }
  0xb3   :  { %4508 = vmatprep.subr.bf16.mxu1 %v4939_v33  ;;  %v4991_v33 = vld [vmem:[%s6285_s1 + $0x748] sm:$0xff]  }
  0xb4   :  { %4487 = vmatpush3.bf16.msra.mxu0 %v4940_v34  ;;  %v4990_v34 = vld [vmem:[%s6285_s1 + $0x780] sm:$0xff]  }
  0xb5   :  { %4488 = vmatprep.subr.bf16.mxu0 %v4942_v36  ;;  %v4992_v36 = vld [vmem:[%s6285_s1 + $0x7c8] sm:$0xff]  }
  0xb6   :  { %4509 = vmatpush3.bf16.msra.mxu1 %v4941_v35  ;;  %v872_v35 = vcombine.high %v868_v29, %v868_v29 }
  0xb7   :  { %4510 = vmatprep.subr.bf16.mxu1 %v4943_v37  ;;  %v4993_v37 = vld [vmem:[%s6285_s1 + $0x708] sm:$0xff]  }
  0xb8   :  { %4489 = vmatpush3.bf16.msra.mxu0 %v4944_v38  ;;  %v4995_v38 = vld [vmem:[%s6285_s1 + $0x750] sm:$0xff]  }
  0xb9   :  { %4490 = vmatprep.subr.bf16.mxu0 %v4946_v40  ;;  %v4996_v40 = vld [vmem:[%s6285_s1 + $0x7d0] sm:$0xff]  }
  0xba   :  { %4511 = vmatpush3.bf16.msra.mxu1 %v4945_v39  ;;  %v4994_v39 = vld [vmem:[%s6285_s1 + $0x788] sm:$0xff]  }
  0xbb   :  { %4512 = vmatprep.subr.bf16.mxu1 %v4947_v42  ;;  %v4997_v42 = vld [vmem:[%s6285_s1 + $0x710] sm:$0xff]  }
  0xbc   :  { %4491 = vmatpush3.bf16.msra.mxu0 %v4948_v43  ;;  %v4999_v43 = vld [vmem:[%s6285_s1 + $0x758] sm:$0xff]  }
  0xbd   :  { %4492 = vmatprep.subr.bf16.mxu0 %v4950_v45  ;;  %v5000_v45 = vld [vmem:[%s6285_s1 + $0x7d8] sm:$0xff]  }
  0xbe   :  { %4513 = vmatpush3.bf16.msra.mxu1 %v4949_v44  ;;  %v4998_v44 = vld [vmem:[%s6285_s1 + $0x790] sm:$0xff]  }
  0xbf   :  { %4514 = vmatprep.subr.bf16.mxu1 %v4951_v46  ;;  %v5001_v46 = vld [vmem:[%s6285_s1 + $0x718] sm:$0xff]  }
  0xc0   :  { %4493 = vmatpush3.bf16.msra.mxu0 %v4952_v47  ;;  %v5002_v47 = vld [vmem:[%s6285_s1 + $0x798] sm:$0xff]  }
  0xc1   :  { %4522 = vmatprep.subr.bf16.mxu0 %v4955_v50  ;;  %v5005_v50 = vld [vmem:[%s6285_s1 + $0x720] sm:$0xff]  }
  0xc2   :  { %4515 = vmatpush3.bf16.msra.mxu1 %v4953_v48  ;;  %v5003_v48 = vld [vmem:[%s6285_s1 + $0x760] sm:$0xff]  }
  0xc3   :  { %3315 = vmatmul.mubr.bf16.vlgmr.msra.gmra.mrb[20].mxu0 %v805_v49  ;;  %4544 = vmatprep.subr.bf16.mxu1 %v4956_v51  ;;  %v5004_v49 = vld [vmem:[%s6285_s1 + $0x7e0] sm:$0xff]  }
  0xc4   :  { %4523 = vmatpush3.bf16.msra.mxu0 %v4957_v52  ;;  %3394 = vmatprep.mubr.bf16.mxu0 %v861_v22  ;;  %v5006_v51 = vld [vmem:[%s6285_s1 + $0x7a0] sm:$0xff]   ;;  %v5007_v52 = vld [vmem:[%s6285_s1 + $0x768] sm:$0xff]  }
  0xc5   :  { %3355 = vmatmul.mubr.bf16.vlgmr.msra.gmra.mrb[20].mxu1 %v821_v54  ;;  %4524 = vmatprep.subr.bf16.mxu0 %v4959_v55  ;;  %v5009_v54 = vld [vmem:[%s6285_s1 + $0x728] sm:$0xff]  }
  0xc6   :  { %4545 = vmatpush3.bf16.msra.mxu1 %v4958_v53  ;;  %3434 = vmatprep.mubr.bf16.mxu1 %v871_v25  ;;  %v5008_v53 = vld [vmem:[%s6285_s1 + $0x7e8] sm:$0xff]   ;;  %v5030_v25 = vld [vmem:[%s6285_s1 + $0x810] sm:$0xff]  }
  0xc7   :  { %4546 = vmatprep.subr.bf16.mxu1 %v4960_v56  ;;  %v5010_v55 = vld [vmem:[%s6285_s1 + $0x7a8] sm:$0xff]   ;;  %v3919_v56 = vld [vmem:[%s6288_s4 + $0x2] ss:$0 sm:$0xff] }
  0xc8   :  { %4525 = vmatpush3.bf16.msra.mxu0 %v4961_v57  ;;  %v5011_v57 = vld [vmem:[%s6285_s1 + $0x770] sm:$0xff]   ;;  %v5027_v22 = vld [vmem:[%s6285_s1 + $0x888] sm:$0xff]  }
  0xc9   :  { %4526 = vmatprep.subr.bf16.mxu0 %v4963_v59  ;;  %v5012_v59 = vld [vmem:[%s6285_s1 + $0x7f0] sm:$0xff]  }
  0xca   :  { %4547 = vmatpush3.bf16.msra.mxu1 %v4962_v58 }
  0xcb   :  { %4548 = vmatprep.subr.bf16.mxu1 %v4964_v60 }
  0xcc   :  { %4527 = vmatpush3.bf16.msra.mxu0 %v4965_v61  ;;  %v5013_v61 = vld [vmem:[%s6285_s1 + $0x730] sm:$0xff]  }
  0xcd   :  { %4528 = vmatprep.subr.bf16.mxu0 %v4967_v63 }
  0xce   :  { %4549 = vmatpush3.bf16.msra.mxu1 %v4966_v62 }
  0xcf   :  { %4550 = vmatprep.subr.bf16.mxu1 %v4968_v0 }
  0xd0   :  { %4529 = vmatpush3.bf16.msra.mxu0 %v4969_v1  ;;  %v5014_v1 = vld [vmem:[%s6285_s1 + $0x7b0] sm:$0xff]  }
  0xd1   :  { %4530 = vmatprep.subr.bf16.mxu0 %v4971_v3 }
  0xd2   :  { %4551 = vmatpush3.bf16.msra.mxu1 %v4970_v2  ;;  %v5015_v2 = vld [vmem:[%s6285_s1 + $0x778] sm:$0xff]  }
  0xd3   :  { %4552 = vmatprep.subr.bf16.mxu1 %v4972_v4 }
  0xd4   :  { %4531 = vmatpush3.bf16.msra.mxu0 %v4973_v5 }
  0xd5   :  { %4532 = vmatprep.subr.bf16.mxu0 %v4975_v7 }
  0xd6   :  { %4553 = vmatpush3.bf16.msra.mxu1 %v4974_v6 }
  0xd7   :  { %4554 = vmatprep.subr.bf16.mxu1 %v4976_v8  ;;  %v5016_v8 = vld [vmem:[%s6285_s1 + $0x7f8] sm:$0xff]  }
  0xd8   :  { %4533 = vmatpush3.bf16.msra.mxu0 %v4977_v9 }
  0xd9   :  { %4534 = vmatprep.subr.bf16.mxu0 %v4979_v11 }
  0xda   :  { %4555 = vmatpush3.bf16.msra.mxu1 %v4978_v10  ;;  %v5017_v10 = vld [vmem:[%s6285_s1 + $0x738] sm:$0xff]  }
  0xdb   :  { %4556 = vmatprep.subr.bf16.mxu1 %v4980_v13  ;;  %v854_v13 = vrot.slane %v5868_v19, %v5264_v41  ;;  %v5024_v19 = vld [vmem:[%s6285_s1 + $0x848] sm:$0xff]  }
  0xdc   :  { %4535 = vmatpush3.bf16.msra.mxu0 %v4981_v16  ;;  %v5022_v16 = vld [vmem:[%s6285_s1 + $0x800] sm:$0xff]  }
  0xdd   :  { %4536 = vmatprep.subr.bf16.mxu0 %v4983_v17  ;;  %v5023_v17 = vld [vmem:[%s6285_s1 + $0x880] sm:$0xff]   ;;  %v870_v18 = vcombine.high %v854_v13, %v854_v13 }
  0xde   :  { %4557 = vmatpush3.bf16.msra.mxu1 %v4982_v20  ;;  %v5025_v20 = vld [vmem:[%s6285_s1 + $0x8c8] sm:$0xff]  }
  0xdf   :  { %4558 = vmatprep.subr.bf16.mxu1 %v4984_v21  ;;  %v5026_v21 = vld [vmem:[%s6285_s1 + $0x808] sm:$0xff]  }
  0xe0   :  { %4537 = vmatpush3.bf16.msra.mxu0 %v4985_v24  ;;  %v5029_v24 = vld [vmem:[%s6285_s1 + $0x8d0] sm:$0xff]  }
  0xe1   :  { %4566 = vmatprep.subr.bf16.mxu0 %v4987_v27  ;;  %v5032_v27 = vld [vmem:[%s6285_s1 + $0x858] sm:$0xff]  }
  0xe2   :  { %4559 = vmatpush3.bf16.msra.mxu1 %v4986_v28  ;;  %v5033_v28 = vld [vmem:[%s6285_s1 + $0x8d8] sm:$0xff]  }
  0xe3   :  { %3395 = vmatmul.mubr.bf16.vlgmr.msra.gmra.mrb[24].mxu0 %v847_v26  ;;  %4588 = vmatprep.subr.bf16.mxu1 %v4988_v30  ;;  %v5031_v26 = vld [vmem:[%s6285_s1 + $0x890] sm:$0xff]   ;;  %v5035_v30 = vld [vmem:[%s6285_s1 + $0x898] sm:$0xff]  }
  0xe4   :  { %4567 = vmatpush3.bf16.msra.mxu0 %v4989_v31  ;;  %3474 = vmatprep.mubr.bf16.mxu0 %v868_v29  ;;  %v5034_v29 = vld [vmem:[%s6285_s1 + $0x818] sm:$0xff]   ;;  %v5036_v31 = vld [vmem:[%s6285_s1 + $0x860] sm:$0xff]  }
  0xe5   :  { %3435 = vmatmul.mubr.bf16.vlgmr.msra.gmra.mrb[24].mxu1 %v869_v32  ;;  %4568 = vmatprep.subr.bf16.mxu0 %v4991_v33  ;;  %v5037_v32 = vld [vmem:[%s6285_s1 + $0x8e0] sm:$0xff]  }
  0xe6   :  { %4589 = vmatpush3.bf16.msra.mxu1 %v4990_v34  ;;  %3514 = vmatprep.mubr.bf16.mxu1 %v872_v35  ;;  %v5038_v33 = vld [vmem:[%s6285_s1 + $0x820] sm:$0xff]   ;;  %v5040_v35 = vld [vmem:[%s6285_s1 + $0x868] sm:$0xff]  }
  0xe7   :  { %4590 = vmatprep.subr.bf16.mxu1 %v4992_v36  ;;  %v5039_v34 = vld [vmem:[%s6285_s1 + $0x8a0] sm:$0xff]   ;;  %v5041_v36 = vld [vmem:[%s6285_s1 + $0x8e8] sm:$0xff]  }
  0xe8   :  { %4569 = vmatpush3.bf16.msra.mxu0 %v4993_v37  ;;  %v5042_v37 = vld [vmem:[%s6285_s1 + $0x828] sm:$0xff]  }
  0xe9   :  { %4570 = vmatprep.subr.bf16.mxu0 %v4995_v38  ;;  %v5043_v38 = vld [vmem:[%s6285_s1 + $0x8a8] sm:$0xff]  }
  0xea   :  { %4591 = vmatpush3.bf16.msra.mxu1 %v4994_v39  ;;  %v5044_v39 = vld [vmem:[%s6285_s1 + $0x870] sm:$0xff]  }
  0xeb   :  { %4592 = vmatprep.subr.bf16.mxu1 %v4996_v40  ;;  %v5045_v40 = vld [vmem:[%s6285_s1 + $0x8f0] sm:$0xff]  }
  0xec   :  { %4571 = vmatpush3.bf16.msra.mxu0 %v4997_v42 }
  0xed   :  { %4572 = vmatprep.subr.bf16.mxu0 %v4999_v43  ;;  %v5046_v43 = vld [vmem:[%s6285_s1 + $0x830] sm:$0xff]  }
  0xee   :  { %4593 = vmatpush3.bf16.msra.mxu1 %v4998_v44 }
  0xef   :  { %4594 = vmatprep.subr.bf16.mxu1 %v5000_v45  ;;  %v26_v45 = vld [vmem:[%s6284_s0 + $0x20] sm:$0xff] }
  0xf0   :  { %4573 = vmatpush3.bf16.msra.mxu0 %v5001_v46 }
  0xf1   :  { %4574 = vmatprep.subr.bf16.mxu0 %v5003_v48 }
  0xf2   :  { %4595 = vmatpush3.bf16.msra.mxu1 %v5002_v47 }
  0xf3   :  { %4596 = vmatprep.subr.bf16.mxu1 %v5004_v49  ;;  %v5047_v49 = vld [vmem:[%s6285_s1 + $0x8b0] sm:$0xff]  }
  0xf4   :  { %4575 = vmatpush3.bf16.msra.mxu0 %v5005_v50  ;;  %v5048_v50 = vld [vmem:[%s6285_s1 + $0x878] sm:$0xff]  }
  0xf5   :  { %4576 = vmatprep.subr.bf16.mxu0 %v5007_v52  ;;  %v873_v52 = vcombine.high %v26_v45, %v26_v45 }
  0xf6   :  { %4597 = vmatpush3.bf16.msra.mxu1 %v5006_v51  ;;  %v4274_v58 = vpop.f32.mrb[0].mxu0  ;;  %v880_v51 = vrot.slane %v26_v45, %v5264_v41 }
  0xf7   :  { %v4275_v60 = vpop.f32.mrb[1].mxu0  ;;  %4598 = vmatprep.subr.bf16.mxu1 %v5008_v53  ;;  %v4296_v62 = vpop.f32.mrb[0].mxu1 }
  0xf8   :  { %v4276_v63 = vadd.f32 %v4275_v60, %v4274_v58  ;;  %v4277_v0 = vpop.f32.mrb[2].mxu0  ;;  %4577 = vmatpush3.bf16.msra.mxu0 %v5009_v54  ;;  %v4297_v3 = vpop.f32.mrb[1].mxu1  ;;  %v5049_v58 = vld [vmem:[%s6285_s1 + $0x8f8] sm:$0xff]  }
  0xf9   :  { %v4278_v4 = vpop.f32.mrb[3].mxu0  ;;  %4578 = vmatprep.subr.bf16.mxu0 %v5011_v57  ;;  %v4298_v6 = vadd.f32 %v4297_v3, %v4296_v62  ;;  %v4299_v7 = vpop.f32.mrb[2].mxu1  ;;  %v6089_v62 = vrot.slane %v873_v52, %v5264_v41  ;;  %v5051_v0 = vld [vmem:[%s6285_s1 + $0x8b8] sm:$0xff]   ;;  %v5052_v3 = vld [vmem:[%s6285_s1 + $0x940] sm:$0xff]  }
  0xfa   :  { %v2917_v5 = vadd.f32 %v4276_v63, %v3919_v56  ;;  %4599 = vmatpush3.bf16.msra.mxu1 %v5010_v55  ;;  %v4300_v9 = vpop.f32.mrb[3].mxu1  ;;  %v5054_v7 = vld [vmem:[%s6285_s1 + $0x900] sm:$0xff]   ;;  %v5083_v52 = vld [vmem:[%s6285_s1 + $0x9b8] sm:$0xff]  }
  0xfb   :  { %4600 = vmatprep.subr.bf16.mxu1 %v5012_v59  ;;  %v888_v59 = vcombine.high %v880_v51, %v880_v51  ;;  %v889_v4 = vcombine.high %v6089_v62, %v6089_v62  ;;  %v5055_v9 = vld [vmem:[%s6285_s1 + $0x980] sm:$0xff]  }
  0xfc   :  { %v5983_v11 = vadd.f32 %v4298_v6, %v2917_v5  ;;  %4579 = vmatpush3.bf16.msra.mxu0 %v5013_v61  ;;  %v5050_v61 = vld [vmem:[%s6285_s1 + $0x838] sm:$0xff]   ;;  %v5053_v6 = vld [vmem:[%s6285_s1 + $0x9c0] sm:$0xff]  }
  0xfd   :  { %4580 = vmatprep.subr.bf16.mxu0 %v5015_v2  ;;  %v896_v2 = vrot.slane %v880_v51, %v5264_v41 }
  0xfe   :  { %4601 = vmatpush3.bf16.msra.mxu1 %v5014_v1  ;;  %v910_v1 = vrot.slane %v888_v59, %v5264_v41 }
  0xff   :  { %4602 = vmatprep.subr.bf16.mxu1 %v5016_v8  ;;  %v917_v8 = vrot.slane %v889_v4, %v5264_v41 }
 0x100   :  { %4581 = vmatpush3.bf16.msra.mxu0 %v5017_v10  ;;  %v920_v5 = vcombine.high %v910_v1, %v910_v1  ;;  %v918_v10 = vcombine.high %v896_v2, %v896_v2 }
 0x101   :  { %4610 = vmatprep.subr.bf16.mxu0 %v5020_v14  ;;  %v5058_v14 = vld [vmem:[%s6285_s1 + $0x908] sm:$0xff]  }
 0x102   :  { %4603 = vmatpush3.bf16.msra.mxu1 %v5018_v12  ;;  %v5057_v12 = vld [vmem:[%s6285_s1 + $0x9c8] sm:$0xff]  }
 0x103   :  { %3475 = vmatmul.mubr.bf16.vlgmr.msra.gmra.mrb[28].mxu0 %v854_v13  ;;  %4632 = vmatprep.subr.bf16.mxu1 %v5021_v15  ;;  %v921_v13 = vcombine.high %v917_v8, %v917_v8  ;;  %v5059_v15 = vld [vmem:[%s6285_s1 + $0x988] sm:$0xff]  }
 0x104   :  { %4611 = vmatpush3.bf16.msra.mxu0 %v5022_v16  ;;  %3554 = vmatprep.mubr.bf16.mxu0 %v910_v1  ;;  %v5060_v16 = vld [vmem:[%s6285_s1 + $0x950] sm:$0xff]  }
 0x105   :  { %3515 = vmatmul.mubr.bf16.vlgmr.msra.gmra.mrb[28].mxu1 %v870_v18  ;;  %4612 = vmatprep.subr.bf16.mxu0 %v5024_v19  ;;  %v5062_v18 = vld [vmem:[%s6285_s1 + $0x910] sm:$0xff]  }
 0x106   :  { %4633 = vmatpush3.bf16.msra.mxu1 %v5023_v17  ;;  %3594 = vmatprep.mubr.bf16.mxu1 %v920_v5  ;;  %v5061_v17 = vld [vmem:[%s6285_s1 + $0x9d0] sm:$0xff]  }
 0x107   :  { %4634 = vmatprep.subr.bf16.mxu1 %v5025_v20  ;;  %v5063_v19 = vld [vmem:[%s6285_s1 + $0x990] sm:$0xff]   ;;  %v5064_v20 = vld [vmem:[%s6285_s1 + $0x958] sm:$0xff]  }
 0x108   :  { %4613 = vmatpush3.bf16.msra.mxu0 %v5026_v21  ;;  %v5065_v21 = vld [vmem:[%s6285_s1 + $0x9d8] sm:$0xff]  }
 0x109   :  { %4614 = vmatprep.subr.bf16.mxu0 %v5028_v23  ;;  %v5067_v23 = vld [vmem:[%s6285_s1 + $0x998] sm:$0xff]  }
 0x10a   :  { %4635 = vmatpush3.bf16.msra.mxu1 %v5027_v22  ;;  %v5066_v22 = vld [vmem:[%s6285_s1 + $0x918] sm:$0xff]  }
 0x10b   :  { %4636 = vmatprep.subr.bf16.mxu1 %v5029_v24  ;;  %v5068_v24 = vld [vmem:[%s6285_s1 + $0x960] sm:$0xff]  }
 0x10c   :  { %4615 = vmatpush3.bf16.msra.mxu0 %v5030_v25  ;;  %v5069_v25 = vld [vmem:[%s6285_s1 + $0x9e0] sm:$0xff]  }
 0x10d   :  { %4616 = vmatprep.subr.bf16.mxu0 %v5032_v27  ;;  %v5071_v27 = vld [vmem:[%s6285_s1 + $0x9a0] sm:$0xff]  }
 0x10e   :  { %4637 = vmatpush3.bf16.msra.mxu1 %v5031_v26  ;;  %v5070_v26 = vld [vmem:[%s6285_s1 + $0x920] sm:$0xff]  }
 0x10f   :  { %4638 = vmatprep.subr.bf16.mxu1 %v5033_v28  ;;  %v5072_v28 = vld [vmem:[%s6285_s1 + $0x968] sm:$0xff]  }
 0x110   :  { %4617 = vmatpush3.bf16.msra.mxu0 %v5034_v29  ;;  %v5073_v29 = vld [vmem:[%s6285_s1 + $0x9e8] sm:$0xff]  }
 0x111   :  { %4618 = vmatprep.subr.bf16.mxu0 %v5036_v31  ;;  %v5075_v31 = vld [vmem:[%s6285_s1 + $0x9a8] sm:$0xff]  }
 0x112   :  { %4639 = vmatpush3.bf16.msra.mxu1 %v5035_v30  ;;  %v5074_v30 = vld [vmem:[%s6285_s1 + $0x928] sm:$0xff]  }
 0x113   :  { %4640 = vmatprep.subr.bf16.mxu1 %v5037_v32  ;;  %v5076_v32 = vld [vmem:[%s6285_s1 + $0x970] sm:$0xff]  }
 0x114   :  { %4619 = vmatpush3.bf16.msra.mxu0 %v5038_v33  ;;  %v5077_v33 = vld [vmem:[%s6285_s1 + $0x9f0] sm:$0xff]  }
 0x115   :  { %4620 = vmatprep.subr.bf16.mxu0 %v5040_v35  ;;  %v5078_v35 = vld [vmem:[%s6285_s1 + $0x930] sm:$0xff]  }
 0x116   :  { %4641 = vmatpush3.bf16.msra.mxu1 %v5039_v34  ;;  %v4318_v42 = vpop.f32.mrb[4].mxu0 }
 0x117   :  { %v4319_v44 = vpop.f32.mrb[5].mxu0  ;;  %4642 = vmatprep.subr.bf16.mxu1 %v5041_v36  ;;  %v4340_v46 = vpop.f32.mrb[4].mxu1 }
 0x118   :  { %v4320_v47 = vadd.f32 %v4319_v44, %v4318_v42  ;;  %v4321_v48 = vpop.f32.mrb[6].mxu0  ;;  %4621 = vmatpush3.bf16.msra.mxu0 %v5042_v37  ;;  %v4341_v53 = vpop.f32.mrb[5].mxu1  ;;  %v5080_v37 = vld [vmem:[%s6285_s1 + $0x978] sm:$0xff]   ;;  %v5079_v42 = vld [vmem:[%s6285_s1 + $0x9b0] sm:$0xff]  }
 0x119   :  { %v4322_v54 = vpop.f32.mrb[7].mxu0  ;;  %4622 = vmatprep.subr.bf16.mxu0 %v5044_v39  ;;  %v4342_v56 = vadd.f32 %v4341_v53, %v4340_v46  ;;  %v4343_v57 = vpop.f32.mrb[6].mxu1  ;;  %v5081_v48 = vld [vmem:[%s6285_s1 + $0x9f8] sm:$0xff]   ;;  %v903_v53 = vrot.slane %v6089_v62, %v5264_v41 }
 0x11a   :  { %v2997_v55 = vadd.f32 %v4320_v47, %v5983_v11  ;;  %4643 = vmatpush3.bf16.msra.mxu1 %v5043_v38  ;;  %v4344_v60 = vpop.f32.mrb[7].mxu1  ;;  %v5056_v11 = vld [vmem:[%s6285_s1 + $0x948] sm:$0xff]  }
 0x11b   :  { %4644 = vmatprep.subr.bf16.mxu1 %v5045_v40  ;;  %v919_v54 = vcombine.high %v903_v53, %v903_v53 }
 0x11c   :  { %v6091_v63 = vadd.f32 %v4342_v56, %v2997_v55  ;;  %4623 = vmatpush3.bf16.msra.mxu0 %v5046_v43 }
 0x11d   :  { %4624 = vmatprep.subr.bf16.mxu0 %v5048_v50  ;;  %v5082_v50 = vld [vmem:[%s6285_s1 + $0x938] sm:$0xff]  }
 0x11e   :  { %4645 = vmatpush3.bf16.msra.mxu1 %v5047_v49 }
 0x11f   :  { %4646 = vmatprep.subr.bf16.mxu1 %v5049_v58 }
 0x120   :  { %4625 = vmatpush3.bf16.msra.mxu0 %v5050_v61 }
 0x121   :  { %4654 = vmatprep.subr.bf16.mxu0 %v5052_v3 }
 0x122   :  { %4647 = vmatpush3.bf16.msra.mxu1 %v5051_v0 }
 0x123   :  { %3555 = vmatmul.mubr.bf16.vlgmr.msra.gmra.mrb[32].mxu0 %v896_v2  ;;  %4676 = vmatprep.subr.bf16.mxu1 %v5053_v6 }
 0x124   :  { %4655 = vmatpush3.bf16.msra.mxu0 %v5054_v7  ;;  %3634 = vmatprep.mubr.bf16.mxu0 %v917_v8 }
 0x125   :  { %3595 = vmatmul.mubr.bf16.vlgmr.msra.gmra.mrb[32].mxu1 %v918_v10  ;;  %4656 = vmatprep.subr.bf16.mxu0 %v5056_v11 }
 0x126   :  { %4677 = vmatpush3.bf16.msra.mxu1 %v5055_v9  ;;  %3674 = vmatprep.mubr.bf16.mxu1 %v921_v13 }
 0x127   :  { %4678 = vmatprep.subr.bf16.mxu1 %v5057_v12 }
 0x128   :  { %4657 = vmatpush3.bf16.msra.mxu0 %v5058_v14 }
 0x129   :  { %4658 = vmatprep.subr.bf16.mxu0 %v5060_v16 }
 0x12a   :  { %4679 = vmatpush3.bf16.msra.mxu1 %v5059_v15 }
 0x12b   :  { %4680 = vmatprep.subr.bf16.mxu1 %v5061_v17 }
 0x12c   :  { %4659 = vmatpush3.bf16.msra.mxu0 %v5062_v18 }
 0x12d   :  { %4660 = vmatprep.subr.bf16.mxu0 %v5064_v20 }
 0x12e   :  { %4681 = vmatpush3.bf16.msra.mxu1 %v5063_v19 }
 0x12f   :  { %4682 = vmatprep.subr.bf16.mxu1 %v5065_v21 }
 0x130   :  { %4661 = vmatpush3.bf16.msra.mxu0 %v5066_v22 }
 0x131   :  { %4662 = vmatprep.subr.bf16.mxu0 %v5068_v24 }
 0x132   :  { %4683 = vmatpush3.bf16.msra.mxu1 %v5067_v23 }
 0x133   :  { %4684 = vmatprep.subr.bf16.mxu1 %v5069_v25 }
 0x134   :  { %4663 = vmatpush3.bf16.msra.mxu0 %v5070_v26 }
 0x135   :  { %4664 = vmatprep.subr.bf16.mxu0 %v5072_v28 }
 0x136   :  { %4685 = vmatpush3.bf16.msra.mxu1 %v5071_v27  ;;  %v4362_v34 = vpop.f32.mrb[8].mxu0 }
 0x137   :  { %v4363_v36 = vpop.f32.mrb[9].mxu0  ;;  %4686 = vmatprep.subr.bf16.mxu1 %v5073_v29 }
 0x138   :  { %v4384_v38 = vpop.f32.mrb[8].mxu1  ;;  %v4364_v39 = vadd.f32 %v4363_v36, %v4362_v34  ;;  %v4365_v40 = vpop.f32.mrb[10].mxu0  ;;  %4665 = vmatpush3.bf16.msra.mxu0 %v5074_v30 }
 0x139   :  { %v4385_v43 = vpop.f32.mrb[9].mxu1  ;;  %v4366_v44 = vpop.f32.mrb[11].mxu0  ;;  %4666 = vmatprep.subr.bf16.mxu0 %v5076_v32 }
 0x13a   :  { %v3077_v45 = vadd.f32 %v4364_v39, %v6091_v63  ;;  %v4386_v46 = vadd.f32 %v4385_v43, %v4384_v38  ;;  %v4387_v47 = vpop.f32.mrb[10].mxu1  ;;  %4687 = vmatpush3.bf16.msra.mxu1 %v5075_v31 }
 0x13b   :  { %v4388_v49 = vpop.f32.mrb[11].mxu1  ;;  %4688 = vmatprep.subr.bf16.mxu1 %v5077_v33 }
 0x13c   :  { %v3117_v51 = vadd.f32 %v4386_v46, %v3077_v45  ;;  %4667 = vmatpush3.bf16.msra.mxu0 %v5078_v35 }
 0x13d   :  { %4668 = vmatprep.subr.bf16.mxu0 %v5080_v37 }
 0x13e   :  { %4689 = vmatpush3.bf16.msra.mxu1 %v5079_v42 }
 0x13f   :  { %4690 = vmatprep.subr.bf16.mxu1 %v5081_v48 }
 0x140   :  { %4669 = vmatpush3.bf16.msra.mxu0 %v5082_v50 }
 0x142   :  { %4691 = vmatpush3.bf16.msra.mxu1 %v5083_v52 }
 0x143   :  { %3635 = vmatmul.mubr.bf16.vlgmr.msra.gmra.mrb[36].mxu0 %v903_v53 }
 0x144   :  { %10 = vsyncpa [#allocation3], 0  ;;  %v5085_v14 = vld [vmem:[%s6286_s2] sm:$0xff]   ;;  %v5126_v15 = vmov 0.0   ;;  %v5086_v16 = vld [vmem:[%s6286_s2 + $0x8] sm:$0xff]   ;;  %vm5127_vm0 = vmmov 0  }
 0x145   :  { %3675 = vmatmul.mubr.bf16.vlgmr.msra.gmra.mrb[36].mxu1 %v919_v54  ;;  %4716 = vmatprep.subr.bf16.mxu0 %v5126_v15  ;;  %v5087_v17 = vld [vmem:[%s6286_s2 + $0x10] sm:$0xff]   ;;  %v5088_v18 = vld [vmem:[%s6286_s2 + $0x18] sm:$0xff]   ;;  %v5089_v19 = vld [vmem:[%s6286_s2 + $0x20] sm:$0xff]   ;;  %s5128_s24 = smov [#allocation2]  }
 0x146   :  { %4736 = vmatprep.subr.bf16.mxu1 %v5126_v15  ;;  %4717 = vmatpush3.bf16.msra.mxu0 %v5085_v14  ;;  %v5090_v22 = vld [vmem:[%s6286_s2 + $0x28] sm:$0xff]   ;;  %v5091_v32 = vld [vmem:[%s6286_s2 + $0x30] sm:$0xff]   ;;  %v5092_v34 = vld [vmem:[%s6286_s2 + $0x38] sm:$0xff]   ;;  %s3911_s0 = sshll.u32 %s5128_s24, 4  ;;  %s3912_s0 = int_to_ptr.vmem [resolvable:$true] %s3911_s0 }
 0x147   :  { %4718 = vmatprep.subr.bf16.mxu0 %v5126_v15  ;;  %4732 = vmatprep.mubr.msk.bf16.mxu0 %vm5127_vm0, %v5126_v15  ;;  %v5093_v35 = vld [vmem:[%s6287_s3] sm:$0xff]   ;;  %v5094_v36 = vld [vmem:[%s6287_s3 + $0x8] sm:$0xff]   ;;  %v5095_v37 = vld [vmem:[%s6287_s3 + $0x10] sm:$0xff]   ;;  %p5106_p1 = scmp.lt.s32.totalorder %s3912_s0, %s3912_s0 }
 0x148   :  { %4752 = vmatprep.mubr.msk.bf16.mxu1 %vm5127_vm0, %v5126_v15  ;;  %4737 = vmatpush3.bf16.msra.mxu1 %v5093_v35  ;;  %v5096_v38 = vld [vmem:[%s6287_s3 + $0x18] sm:$0xff]   ;;  %v5097_v39 = vld [vmem:[%s6287_s3 + $0x20] sm:$0xff]   ;;  %v5098_v40 = vld [vmem:[%s6287_s3 + $0x28] sm:$0xff]  }
 0x149   :  { %4738 = vmatprep.subr.bf16.mxu1 %v5126_v15 }
 0x14a   :  { %4719 = vmatpush3.bf16.msra.mxu0 %v5086_v16 }
 0x14b   :  { %4720 = vmatprep.subr.bf16.mxu0 %v5126_v15 }
 0x14c   :  { %4739 = vmatpush3.bf16.msra.mxu1 %v5094_v36 }
 0x14d   :  { %4740 = vmatprep.subr.bf16.mxu1 %v5126_v15 }
 0x14e   :  { %4721 = vmatpush3.bf16.msra.mxu0 %v5087_v17 }
 0x14f   :  { %4722 = vmatprep.subr.bf16.mxu0 %v5126_v15 }
 0x150   :  { %4741 = vmatpush3.bf16.msra.mxu1 %v5095_v37 }
 0x151   :  { %4742 = vmatprep.subr.bf16.mxu1 %v5126_v15 }
 0x152   :  { %4723 = vmatpush3.bf16.msra.mxu0 %v5088_v18 }
 0x153   :  { %4724 = vmatprep.subr.bf16.mxu0 %v5126_v15 }
 0x154   :  { %4743 = vmatpush3.bf16.msra.mxu1 %v5096_v38 }
 0x155   :  { %4744 = vmatprep.subr.bf16.mxu1 %v5126_v15 }
 0x156   :  { %v4406_v55 = vpop.f32.mrb[12].mxu0  ;;  %4725 = vmatpush3.bf16.msra.mxu0 %v5089_v19 }
 0x157   :  { %v4407_v56 = vpop.f32.mrb[13].mxu0  ;;  %4726 = vmatprep.subr.bf16.mxu0 %v5126_v15 }
 0x158   :  { %v4428_v57 = vpop.f32.mrb[12].mxu1  ;;  %v4408_v58 = vadd.f32 %v4407_v56, %v4406_v55  ;;  %v4409_v59 = vpop.f32.mrb[14].mxu0  ;;  %4745 = vmatpush3.bf16.msra.mxu1 %v5097_v39 }
 0x159   :  { %v4429_v60 = vpop.f32.mrb[13].mxu1  ;;  %v4410_v61 = vpop.f32.mrb[15].mxu0  ;;  %4746 = vmatprep.subr.bf16.mxu1 %v5126_v15 }
 0x15a   :  { %v3157_v63 = vadd.f32 %v4408_v58, %v3117_v51  ;;  %v4430_v0 = vadd.f32 %v4429_v60, %v4428_v57  ;;  %v4431_v1 = vpop.f32.mrb[14].mxu1  ;;  %4727 = vmatpush3.bf16.msra.mxu0 %v5090_v22 }
 0x15b   :  { %v4432_v2 = vpop.f32.mrb[15].mxu1  ;;  %4728 = vmatprep.subr.bf16.mxu0 %v5126_v15 }
 0x15c   :  { %v3197_v41 = vadd.f32 %v4430_v0, %v3157_v63  ;;  %4747 = vmatpush3.bf16.msra.mxu1 %v5098_v40 }
 0x15d   :  { %4748 = vmatprep.subr.bf16.mxu1 %v5126_v15 }
 0x15e   :  { %4729 = vmatpush3.bf16.msra.mxu0 %v5091_v32 }
 0x15f   :  { %4730 = vmatprep.subr.bf16.mxu0 %v5126_v15 }
 0x162   :  { %4731 = vmatpush3.bf16.msra.mxu0 %v5092_v34 }
 0x176   :  { %v4450_v62 = vpop.f32.mrb[16].mxu0 }
 0x177   :  { %v4451_v3 = vpop.f32.mrb[17].mxu0 }
 0x178   :  { %v4472_v4 = vpop.f32.mrb[16].mxu1  ;;  %v4452_v5 = vadd.f32 %v4451_v3, %v4450_v62  ;;  %v4453_v6 = vpop.f32.mrb[18].mxu0 }
 0x179   :  { %v4473_v7 = vpop.f32.mrb[17].mxu1  ;;  %v4454_v8 = vpop.f32.mrb[19].mxu0 }
 0x17a   :  { %v3237_v9 = vadd.f32 %v4452_v5, %v3197_v41  ;;  %v4474_v10 = vadd.f32 %v4473_v7, %v4472_v4  ;;  %v4475_v11 = vpop.f32.mrb[18].mxu1 }
 0x17b   :  { %v4476_v12 = vpop.f32.mrb[19].mxu1 }
 0x17c   :  { %v3277_v13 = vadd.f32 %v4474_v10, %v3237_v9 }
 0x196   :  { %v4494_v20 = vpop.f32.mrb[20].mxu0 }
 0x197   :  { %v4495_v21 = vpop.f32.mrb[21].mxu0 }
 0x198   :  { %v4516_v23 = vpop.f32.mrb[20].mxu1  ;;  %v4496_v24 = vadd.f32 %v4495_v21, %v4494_v20  ;;  %v4497_v25 = vpop.f32.mrb[22].mxu0 }
 0x199   :  { %v4517_v26 = vpop.f32.mrb[21].mxu1  ;;  %v4498_v27 = vpop.f32.mrb[23].mxu0 }
 0x19a   :  { %v3317_v28 = vadd.f32 %v4496_v24, %v3277_v13  ;;  %v4518_v29 = vadd.f32 %v4517_v26, %v4516_v23  ;;  %v4519_v30 = vpop.f32.mrb[22].mxu1 }
 0x19b   :  { %v4520_v31 = vpop.f32.mrb[23].mxu1  ;;  %v4240_v30 = vld [vmem:[%s6288_s4 + $0x3] ss:$0 sm:$0xff] }
 0x19c   :  { %v3357_v33 = vadd.f32 %v4518_v29, %v3317_v28  ;;  %v5099_v28 = vld [vmem:[%s6287_s3 + $0x30] sm:$0xff]   ;;  %v5100_v29 = vld [vmem:[%s6287_s3 + $0x38] sm:$0xff]   ;;  %s5101_s3 = scalar_lea.vmem %s3912_s0, 32 }
 0x19d   :  { %4749 = vmatpush3.bf16.msra.mxu1 %v5099_v28  ;;  %p5102_p0 = scmp.ne.s32.totalorder %s3912_s0, %s5101_s3  ;;  %p5107_p2 = scmp.lt.s32.totalorder %s5101_s3, %s5101_s3 }
 0x19e   :  { %4750 = vmatprep.subr.bf16.mxu1 %v5126_v15  ;;  %v4249_v15 = vld [vmem:[%s6288_s4 + $0x4] ss:$0 sm:$0xff] }
 0x19f   :  { %p5108_p3 = por %p5107_p2, %p5106_p1 }
 0x1a1   :  { %4751 = vmatpush3.bf16.msra.mxu1 %v5100_v29  ;;  %p5109_p4 = pnand %p5108_p3, %p5102_p0 }
 0x1b6   :  { %v4538_v42 = vpop.f32.mrb[24].mxu0 }
 0x1b7   :  { %v4539_v43 = vpop.f32.mrb[25].mxu0 }
 0x1b8   :  { %v4560_v44 = vpop.f32.mrb[24].mxu1  ;;  %v4540_v45 = vadd.f32 %v4539_v43, %v4538_v42  ;;  %v4541_v46 = vpop.f32.mrb[26].mxu0 }
 0x1b9   :  { %v4561_v47 = vpop.f32.mrb[25].mxu1  ;;  %v4542_v48 = vpop.f32.mrb[27].mxu0 }
 0x1ba   :  { %v3397_v49 = vadd.f32 %v4540_v45, %v3357_v33  ;;  %v4562_v50 = vadd.f32 %v4561_v47, %v4560_v44  ;;  %v4563_v51 = vpop.f32.mrb[26].mxu1 }
 0x1bb   :  { %v4564_v52 = vpop.f32.mrb[27].mxu1 }
 0x1bc   :  { %v3437_v53 = vadd.f32 %v4562_v50, %v3397_v49 }
 0x1d6   :  { %v4582_v54 = vpop.f32.mrb[28].mxu0 }
 0x1d7   :  { %v4583_v55 = vpop.f32.mrb[29].mxu0 }
 0x1d8   :  { %v4604_v56 = vpop.f32.mrb[28].mxu1  ;;  %v4584_v57 = vadd.f32 %v4583_v55, %v4582_v54  ;;  %v4585_v58 = vpop.f32.mrb[30].mxu0 }
 0x1d9   :  { %v4605_v59 = vpop.f32.mrb[29].mxu1  ;;  %v4586_v60 = vpop.f32.mrb[31].mxu0 }
 0x1da   :  { %v3477_v61 = vadd.f32 %v4584_v57, %v3437_v53  ;;  %v4606_v63 = vadd.f32 %v4605_v59, %v4604_v56  ;;  %v4607_v0 = vpop.f32.mrb[30].mxu1 }
 0x1db   :  { %v4608_v1 = vpop.f32.mrb[31].mxu1 }
 0x1dc   :  { %v3517_v2 = vadd.f32 %v4606_v63, %v3477_v61 }
 0x1f6   :  { %v4626_v41 = vpop.f32.mrb[32].mxu0 }
 0x1f7   :  { %v4627_v62 = vpop.f32.mrb[33].mxu0 }
 0x1f8   :  { %v4648_v3 = vpop.f32.mrb[32].mxu1  ;;  %v4628_v4 = vadd.f32 %v4627_v62, %v4626_v41  ;;  %v4629_v5 = vpop.f32.mrb[34].mxu0 }
 0x1f9   :  { %v4649_v6 = vpop.f32.mrb[33].mxu1  ;;  %v4630_v7 = vpop.f32.mrb[35].mxu0 }
 0x1fa   :  { %v3557_v8 = vadd.f32 %v4628_v4, %v3517_v2  ;;  %v4650_v9 = vadd.f32 %v4649_v6, %v4648_v3  ;;  %v4651_v10 = vpop.f32.mrb[34].mxu1 }
 0x1fb   :  { %v4652_v11 = vpop.f32.mrb[35].mxu1 }
 0x1fc   :  { %v3597_v12 = vadd.f32 %v4650_v9, %v3557_v8 }
 0x216   :  { %v4670_v13 = vpop.f32.mrb[36].mxu0 }
 0x217   :  { %v4671_v14 = vpop.f32.mrb[37].mxu0 }
 0x218   :  { %v4692_v16 = vpop.f32.mrb[36].mxu1  ;;  %v4672_v17 = vadd.f32 %v4671_v14, %v4670_v13  ;;  %v4673_v18 = vpop.f32.mrb[38].mxu0 }
 0x219   :  { %v4693_v19 = vpop.f32.mrb[37].mxu1  ;;  %v4674_v20 = vpop.f32.mrb[39].mxu0 }
 0x21a   :  { %v3637_v21 = vadd.f32 %v4672_v17, %v3597_v12  ;;  %v4694_v22 = vadd.f32 %v4693_v19, %v4692_v16  ;;  %v4695_v23 = vpop.f32.mrb[38].mxu1 }
 0x21b   :  { %v4696_v24 = vpop.f32.mrb[39].mxu1 }
 0x21c   :  { %v3677_v25 = vadd.f32 %v4694_v22, %v3637_v21 }
 0x21e   :  { %v3682_v26 = vmax.f32 %v3677_v25, 0.0 }
 0x220   :  { %v3683_v27 = vpack.c.bf16 %v3682_v26, %v3682_v26 }
 0x222   :  { %4733 = vmatmul.mubr.bf16.vlgmr.msra.gmra.mrb[40].mxu0 %v3683_v27 }
 0x2f5   :  { %v3787_v31 = vpop.f32.mrb[40].mxu0 }
 0x2f6   :  { %v3788_v32 = vadd.f32 %v4240_v30, %v3787_v31  ;;  %v4734_v33 = vpop.f32.mrb[41].mxu0 }
 0x2f7   :  { %v3790_v34 = vpop.f32.mrb[42].mxu0 }
 0x2f8   :  { %v3793_v35 = vmax.f32 %v3788_v32, 0.0  ;;  %v4735_v36 = vpop.f32.mrb[43].mxu0 }
 0x2fa   :  { %v3794_v37 = vpack.c.bf16 %v3793_v35, %v3793_v35 }
 0x2fc   :  { %4753 = vmatmul.mubr.bf16.vlgmr.msra.gmra.mrb[40].mxu1 %v3794_v37 }
 0x3cf   :  { %v3898_v38 = vpop.f32.mrb[40].mxu1 }
 0x3d0   :  { %v3899_v39 = vadd.f32 %v4249_v15, %v3898_v38  ;;  %v4754_v40 = vpop.f32.mrb[41].mxu1 }
 0x3d1   :  { %v3901_v42 = vpop.f32.mrb[42].mxu1 }
 0x3d2   :  { %3904 = vst [vmem:[#allocation2] sm:$0x3] %v3899_v39  ;;  %v4755_v43 = vpop.f32.mrb[43].mxu1 }
 0x3d3   :  { %5112 = shalt.err (!%p5109_p4)
}
 0x3d4   :  { %s5113_s4 = scalar_lea.hbm %s6289_s5, 32 }
 0x3d5   :  { %p5114_p5 = scmp.ne.s32.totalorder %s6289_s5, %s5113_s4  ;;  %p5117_p6 = scmp.lt.u32.totalorder %s5113_s4, %s6289_s5 }
 0x3d7   :  { %p5119_p7 = pnand %p5117_p6, %p5114_p5 }
 0x3d9   :  { %5122 = shalt.err (!%p5119_p7)
}
 0x3da   :  { %3914 = dma.vmem_to_hbm [thread:$0]  %s3912_s0, 32, %s6289_s5, [#allocation3]  }
 0x3db   :  { %5123 = dma.done.wait [#allocation3], 32  }
 0x3dc   :  { %5124 = vsyncadd [#allocation3], 4294967264 }
 0x3dd   :  { %3918 = vsyncpa [#allocation3], 1 }

</bundles_post_ra>
